<compile_context>
chip_gen: v5e
topology: v5e:2x2
jax: 0.10.0
libtpu: 0.0.40
codegen_flags: <defaults>
</compile_context>

<pallas_src>
import math
from functools import partial

import numpy as np
import jax
import jax.numpy as jnp
from jax import lax
from jax.experimental import pallas as pl
from jax.experimental.pallas import tpu as pltpu

LN_EPS = 1e-5  # torch.nn.LayerNorm default


def _gelu_tanh(x):
    # tanh-approx GELU: 0.5*x*(1+tanh(sqrt(2/pi)*(x+0.044715*x^3))).
    c = math.sqrt(2.0 / math.pi)
    return 0.5 * x * (1.0 + jnp.tanh(c * (x + 0.044715 * (x * x * x))))


def _layernorm(v, g, b):
    # One-pass statistics (E[x], E[x^2]) in f32.
    mu = jnp.mean(v, axis=-1, keepdims=True)
    m2 = jnp.mean(v * v, axis=-1, keepdims=True)
    var = m2 - mu * mu
    return (v - mu) * lax.rsqrt(var + LN_EPS) * g + b


def block_kernel(x_ref, g1_ref, be1_ref, wqkv_ref, wp_ref, bp_ref,
                 g2_ref, be2_ref, w1_ref, b1_ref, dww_ref, dwb_ref, w2_ref, b2_ref,
                 o_ref, o_scr, *, num_heads, H, W):
    f32, bf16 = jnp.float32, jnp.bfloat16

    x = x_ref[...]                                   # (N, C) f32 — one image per grid step
    N, C = x.shape
    hd = C // num_heads

    # ----------------- attention branch: x + proj(MHSA(LN1(x))) -----------------
    n1 = _layernorm(x, g1_ref[...], be1_ref[...]).astype(bf16)
    # Fused q|k|v matmul, 3C-wide lane-dense output; attention scale pre-folded into q cols.
    qkv = jnp.dot(n1, wqkv_ref[...], preferred_element_type=f32)        # (N, 3C)

    for h in range(num_heads):                       # static unroll over heads only
        lo = h * hd
        q_h = qkv[:, lo:lo + hd].astype(bf16)
        k_h = qkv[:, C + lo:C + lo + hd].astype(bf16)
        v_h = qkv[:, 2 * C + lo:2 * C + lo + hd].astype(bf16)
        s = lax.dot_general(q_h, k_h, (((1,), (1,)), ((), ())),
                            preferred_element_type=f32)                 # (N, N) f32
        s = s - jnp.max(s, axis=-1, keepdims=True)
        e = jnp.exp(s)
        p = e * pl.reciprocal(jnp.sum(e, axis=-1, keepdims=True), approx=True)
        # Per-head output goes into its lane slice of the scratch slab.
        o_scr[:, lo:lo + hd] = jnp.dot(p.astype(bf16), v_h, preferred_element_type=f32)

    # Single K=C output projection over all heads at once.
    o_attn = o_scr[...].astype(bf16)                                    # (N, C)
    x1 = x + jnp.dot(o_attn, wp_ref[...], preferred_element_type=f32) + bp_ref[...]

    # ---------- MLP branch: x1 + fc2(GELU(dwconv3x3(fc1(LN2(x1))))) ----------
    n2 = _layernorm(x1, g2_ref[...], be2_ref[...]).astype(bf16)
    h1 = jnp.dot(n2, w1_ref[...], preferred_element_type=f32) + b1_ref[...]   # (N, hid) f32

    # 3x3 depthwise conv over the HxW token grid of this image: 8 pltpu.roll token shifts
    # (XLU) + (N,1) edge-mask columns + per-tap VPU multiply-adds (plus the centre tap).
    # Rolls wrap within the image only at positions the edge masks zero out.
    tok = lax.broadcasted_iota(jnp.int32, (N, 1), 0)
    if (W & (W - 1)) == 0:                           # power of two -> cheap bit op
        tw = jnp.bitwise_and(tok, W - 1)             # column index w
    else:
        tw = tok % W
    up_ok = (tok >= W).astype(f32)                   # token row h >= 1
    down_ok = (tok < N - W).astype(f32)              # token row h <= H-2
    left_ok = (tw >= 1).astype(f32)                  # column w >= 1
    right_ok = (tw < W - 1).astype(f32)              # column w <= W-2
    ones_col = jnp.ones((N, 1), f32)
    vmask = (up_ok, ones_col, down_ok)
    hmask = (left_ok, ones_col, right_ok)

    d = h1 * dww_ref[4] + dwb_ref[...]               # centre tap (di=0, dj=0) + conv bias
    for di in (-1, 0, 1):
        for dj in (-1, 0, 1):
            if di == 0 and dj == 0:
                continue
            t = (di + 1) * 3 + (dj + 1)              # torch tap index i*3+j
            delta = di * W + dj
            shifted = pltpu.roll(h1, shift=(-delta) % N, axis=0)   # out[m] = h1[m + delta]
            mask_col = vmask[di + 1] * hmask[dj + 1]               # (N, 1) — tiny VPU work
            d = d + shifted * (mask_col * dww_ref[t])              # (N,1)*(1,hid) -> (N,hid)

    h2 = jnp.dot(_gelu_tanh(d).astype(bf16), w2_ref[...],
                 preferred_element_type=f32) + b2_ref[...]
    o_ref[...] = x1 + h2


def block_forward(x, params, *, num_heads, H, W):
    B, N, C = x.shape
    assert N == H * W
    hd = C // num_heads
    scale = float(hd) ** -0.5
    bf16 = jnp.bfloat16

    # One-time weight prep: fuse q|k|v (scale folded into q before the bf16 cast),
    # cast matmul weights to bf16 (f32 accumulation happens in-kernel).
    wqkv = jnp.concatenate([params["wq"] * scale, params["wk"], params["wv"]],
                           axis=1).astype(bf16)                          # (C, 3C)
    wp = params["wp"].astype(bf16)
    w1 = params["w1"].astype(bf16)
    w2 = params["w2"].astype(bf16)

    args = [params["g1"], params["be1"], wqkv, wp, params["bp"],
            params["g2"], params["be2"], w1, params["b1"],
            params["dww"], params["dwb"], w2, params["b2"]]

    def full_spec(a):
        return pl.BlockSpec(a.shape, lambda b, _nd=a.ndim: (0,) * _nd)

    x2 = x.reshape(B * N, C)
    out = pl.pallas_call(
        partial(block_kernel, num_heads=num_heads, H=H, W=W),
        out_shape=jax.ShapeDtypeStruct((B * N, C), jnp.float32),
        grid=(B,),
        in_specs=[pl.BlockSpec((N, C), lambda b: (b, 0))] + [full_spec(a) for a in args],
        out_specs=pl.BlockSpec((N, C), lambda b: (b, 0)),
        scratch_shapes=[pltpu.VMEM((N, C), jnp.float32)],
        compiler_params=pltpu.CompilerParams(dimension_semantics=("parallel",)),
    )(x2, *args)
    return out.reshape(B, N, C)


def block_reference(x, params, *, num_heads, H, W):
    """Pure-JAX (HIGHEST precision) reference reproducing the PyTorch Block forward."""
    B, N, C = x.shape
    hd = C // num_heads
    scale = hd ** -0.5
    hp = partial(jnp.matmul, precision=lax.Precision.HIGHEST)

    def ln(v, g, b):
        mu = jnp.mean(v, axis=-1, keepdims=True)
        var = jnp.mean((v - mu) ** 2, axis=-1, keepdims=True)
        return (v - mu) / jnp.sqrt(var + LN_EPS) * g + b

    n1 = ln(x, params["g1"], params["be1"])
    q = hp(n1, params["wq"]).reshape(B, N, num_heads, hd).transpose(0, 2, 1, 3)
    k = hp(n1, params["wk"]).reshape(B, N, num_heads, hd).transpose(0, 2, 1, 3)
    v = hp(n1, params["wv"]).reshape(B, N, num_heads, hd).transpose(0, 2, 1, 3)
    att = jax.nn.softmax(
        jnp.einsum("bhqd,bhkd->bhqk", q, k, precision=lax.Precision.HIGHEST) * scale, axis=-1)
    o = jnp.einsum("bhqk,bhkd->bhqd", att, v,
                   precision=lax.Precision.HIGHEST).transpose(0, 2, 1, 3).reshape(B, N, C)
    x1 = x + hp(o, params["wp"]) + params["bp"]

    n2 = ln(x1, params["g2"], params["be2"])
    h1 = hp(n2, params["w1"]) + params["b1"]
    hid = h1.shape[-1]
    img = h1.reshape(B, H, W, hid)
    kern = params["dww"].reshape(3, 3, 1, hid)          # tap t=i*3+j -> kern[i, j, 0, :]
    conv = lax.conv_general_dilated(img, kern, (1, 1), "SAME",
                                    dimension_numbers=("NHWC", "HWIO", "NHWC"),
                                    feature_group_count=hid,
                                    precision=lax.Precision.HIGHEST)
    d = conv.reshape(B, N, hid) + params["dwb"]
    h2 = hp(jax.nn.gelu(d, approximate=False), params["w2"]) + params["b2"]
    return x1 + h2


if __name__ == "__main__":
    B, H, W = 2, 8, 8
    dim, num_heads, mlp_ratio = 64, 2, 4.0
    N = H * W
    hid = int(dim * mlp_ratio)
    f32 = jnp.float32

    key = jax.random.PRNGKey(0)
    ks = jax.random.split(key, 16)

    def w_init(k, shape, fan_in):
        return jax.random.normal(k, shape, f32) * (fan_in ** -0.5)

    params = {
        # norm1 / norm2 (LayerNorm affine)
        "g1": jnp.ones((1, dim), f32),
        "be1": jnp.zeros((1, dim), f32),
        "g2": jnp.ones((1, dim), f32) + 0.01 * jax.random.normal(ks[4], (1, dim), f32),
        "be2": 0.01 * jax.random.normal(ks[5], (1, dim), f32),
        # attention (qkv_bias=False): weights stored pre-transposed (in, out); kv split
        "wq": w_init(ks[0], (dim, dim), dim),
        "wk": w_init(ks[1], (dim, dim), dim),
        "wv": w_init(ks[13], (dim, dim), dim),
        "wp": w_init(ks[2], (dim, dim), dim),
        "bp": 0.01 * jax.random.normal(ks[3], (1, dim), f32),
        # Mlp: fc1, depthwise 3x3 conv (per-tap per-channel weights + bias), fc2
        "w1": w_init(ks[6], (dim, hid), dim),
        "b1": 0.01 * jax.random.normal(ks[7], (1, hid), f32),
        "dww": w_init(ks[8], (9, 1, hid), 9),     # tap t=i*3+j of the torch (hid,1,3,3) kernel
        "dwb": 0.01 * jax.random.normal(ks[9], (1, hid), f32),
        "w2": w_init(ks[10], (hid, dim), hid),
        "b2": 0.01 * jax.random.normal(ks[11], (1, dim), f32),
    }

    x = jax.random.normal(ks[12], (B, N, dim), f32)

    out = block_forward(x, params, num_heads=num_heads, H=H, W=W)
    out = jax.block_until_ready(out)

    ref = block_reference(x, params, num_heads=num_heads, H=H, W=W)
    assert out.shape == (B, N, dim)
    assert bool(jnp.all(jnp.isfinite(out)))
    # Tolerance sized for bf16 MXU operands with f32 accumulation + tanh-GELU / approx
    # reciprocal (reference is f32 HIGHEST, exact-erf GELU).
    np.testing.assert_allclose(np.asarray(out), np.asarray(ref), rtol=2e-2, atol=3e-2)
    print("KERNEL_OK")
</pallas_src>

<mosaic_0001>
module attributes {stable_mosaic.version = 11 : i64} {
  func.func @block_kernel(%arg0: i32, %arg1: memref<64x64xf32, #tpu.memory_space<vmem>>, %arg2: memref<1x64xf32, #tpu.memory_space<vmem>>, %arg3: memref<1x64xf32, #tpu.memory_space<vmem>>, %arg4: memref<64x192xbf16, #tpu.memory_space<vmem>>, %arg5: memref<64x64xbf16, #tpu.memory_space<vmem>>, %arg6: memref<1x64xf32, #tpu.memory_space<vmem>>, %arg7: memref<1x64xf32, #tpu.memory_space<vmem>>, %arg8: memref<1x64xf32, #tpu.memory_space<vmem>>, %arg9: memref<64x256xbf16, #tpu.memory_space<vmem>>, %arg10: memref<1x256xf32, #tpu.memory_space<vmem>>, %arg11: memref<9x1x256xf32, #tpu.memory_space<vmem>>, %arg12: memref<1x256xf32, #tpu.memory_space<vmem>>, %arg13: memref<256x64xbf16, #tpu.memory_space<vmem>>, %arg14: memref<1x64xf32, #tpu.memory_space<vmem>>, %arg15: memref<64x64xf32, #tpu.memory_space<vmem>>, %arg16: memref<64x64xf32, #tpu.memory_space<vmem>>) attributes {dimension_semantics = [#tpu.dimension_semantics<parallel>], iteration_bounds = array<i64: 2>, scalar_prefetch = 0 : i64, scratch_operands = 1 : i64, tpu.core_type = #tpu.core_type<tc>, window_params = [{transform_indices = @transform_0, window_bounds = array<i64: 64, 64>}, {pipeline_mode = #tpu.pipeline_mode<synchronous>, transform_indices = @transform_1, window_bounds = array<i64: 1, 64>}, {pipeline_mode = #tpu.pipeline_mode<synchronous>, transform_indices = @transform_2, window_bounds = array<i64: 1, 64>}, {pipeline_mode = #tpu.pipeline_mode<synchronous>, transform_indices = @transform_3, window_bounds = array<i64: 64, 192>}, {pipeline_mode = #tpu.pipeline_mode<synchronous>, transform_indices = @transform_4, window_bounds = array<i64: 64, 64>}, {pipeline_mode = #tpu.pipeline_mode<synchronous>, transform_indices = @transform_5, window_bounds = array<i64: 1, 64>}, {pipeline_mode = #tpu.pipeline_mode<synchronous>, transform_indices = @transform_6, window_bounds = array<i64: 1, 64>}, {pipeline_mode = #tpu.pipeline_mode<synchronous>, transform_indices = @transform_7, window_bounds = array<i64: 1, 64>}, {pipeline_mode = #tpu.pipeline_mode<synchronous>, transform_indices = @transform_8, window_bounds = array<i64: 64, 256>}, {pipeline_mode = #tpu.pipeline_mode<synchronous>, transform_indices = @transform_9, window_bounds = array<i64: 1, 256>}, {pipeline_mode = #tpu.pipeline_mode<synchronous>, transform_indices = @transform_10, window_bounds = array<i64: 9, 1, 256>}, {pipeline_mode = #tpu.pipeline_mode<synchronous>, transform_indices = @transform_11, window_bounds = array<i64: 1, 256>}, {pipeline_mode = #tpu.pipeline_mode<synchronous>, transform_indices = @transform_12, window_bounds = array<i64: 256, 64>}, {pipeline_mode = #tpu.pipeline_mode<synchronous>, transform_indices = @transform_13, window_bounds = array<i64: 1, 64>}, {transform_indices = @transform_14, window_bounds = array<i64: 64, 64>}]} {
    %c0 = arith.constant 0 : index
    %c0_0 = arith.constant 0 : index
    %0 = vector.load %arg1[%c0, %c0_0] : memref<64x64xf32, #tpu.memory_space<vmem>>, vector<64x64xf32>
    %c0_1 = arith.constant 0 : index
    %c0_2 = arith.constant 0 : index
    %1 = vector.load %arg2[%c0_1, %c0_2] : memref<1x64xf32, #tpu.memory_space<vmem>>, vector<1x64xf32>
    %c0_3 = arith.constant 0 : index
    %c0_4 = arith.constant 0 : index
    %2 = vector.load %arg3[%c0_3, %c0_4] : memref<1x64xf32, #tpu.memory_space<vmem>>, vector<1x64xf32>
    %cst = arith.constant dense<0.000000e+00> : vector<64xf32>
    %3 = vector.multi_reduction <add>, %0, %cst [1] : vector<64x64xf32> to vector<64xf32>
    %4 = vector.shape_cast %3 : vector<64xf32> to vector<64x1xf32>
    %cst_5 = arith.constant 6.400000e+01 : f32
    %5 = vector.broadcast %cst_5 : f32 to vector<64x1xf32>
    %6 = arith.divf %4, %5 : vector<64x1xf32>
    %7 = arith.mulf %0, %0 : vector<64x64xf32>
    %cst_6 = arith.constant dense<0.000000e+00> : vector<64xf32>
    %8 = vector.multi_reduction <add>, %7, %cst_6 [1] : vector<64x64xf32> to vector<64xf32>
    %9 = vector.shape_cast %8 : vector<64xf32> to vector<64x1xf32>
    %cst_7 = arith.constant 6.400000e+01 : f32
    %10 = vector.broadcast %cst_7 : f32 to vector<64x1xf32>
    %11 = arith.divf %9, %10 : vector<64x1xf32>
    %12 = arith.mulf %6, %6 : vector<64x1xf32>
    %13 = arith.subf %11, %12 : vector<64x1xf32>
    %14 = vector.broadcast %6 : vector<64x1xf32> to vector<64x64xf32>
    %15 = arith.subf %0, %14 : vector<64x64xf32>
    %cst_8 = arith.constant 9.99999974E-6 : f32
    %16 = vector.broadcast %cst_8 : f32 to vector<64x1xf32>
    %17 = arith.addf %13, %16 : vector<64x1xf32>
    %18 = math.rsqrt %17 : vector<64x1xf32>
    %19 = vector.broadcast %18 : vector<64x1xf32> to vector<64x64xf32>
    %20 = arith.mulf %15, %19 : vector<64x64xf32>
    %21 = vector.broadcast %1 : vector<1x64xf32> to vector<64x64xf32>
    %22 = arith.mulf %20, %21 : vector<64x64xf32>
    %23 = vector.broadcast %2 : vector<1x64xf32> to vector<64x64xf32>
    %24 = arith.addf %22, %23 : vector<64x64xf32>
    %25 = arith.truncf %24 : vector<64x64xf32> to vector<64x64xbf16>
    %c0_9 = arith.constant 0 : index
    %c0_10 = arith.constant 0 : index
    %26 = vector.load %arg4[%c0_9, %c0_10] : memref<64x192xbf16, #tpu.memory_space<vmem>>, vector<64x192xbf16>
    %cst_11 = arith.constant dense<0.000000e+00> : vector<64x192xf32>
    %27 = tpu.matmul %25, %26, %cst_11 {dimension_numbers = #tpu.dot_dimension_numbers<[1], [0], [0], [1], [0, 0, 1, 1], [], []>} : vector<64x64xbf16>, vector<64x192xbf16>, vector<64x192xf32> -> vector<64x192xf32>
    %28 = vector.extract_strided_slice %27 {offsets = [0, 0], sizes = [64, 32], strides = [1, 1]} : vector<64x192xf32> to vector<64x32xf32>
    %29 = arith.truncf %28 : vector<64x32xf32> to vector<64x32xbf16>
    %30 = vector.extract_strided_slice %27 {offsets = [0, 64], sizes = [64, 32], strides = [1, 1]} : vector<64x192xf32> to vector<64x32xf32>
    %31 = arith.truncf %30 : vector<64x32xf32> to vector<64x32xbf16>
    %32 = vector.extract_strided_slice %27 {offsets = [0, 128], sizes = [64, 32], strides = [1, 1]} : vector<64x192xf32> to vector<64x32xf32>
    %33 = arith.truncf %32 : vector<64x32xf32> to vector<64x32xbf16>
    %cst_12 = arith.constant dense<0.000000e+00> : vector<64x64xf32>
    %34 = tpu.matmul %29, %31, %cst_12 {dimension_numbers = #tpu.dot_dimension_numbers<[1], [1], [0], [0], [0, 0, 1, 0], [], []>} : vector<64x32xbf16>, vector<64x32xbf16>, vector<64x64xf32> -> vector<64x64xf32>
    %cst_13 = arith.constant dense<0xFF800000> : vector<64xf32>
    %35 = vector.multi_reduction <maximumf>, %34, %cst_13 [1] : vector<64x64xf32> to vector<64xf32>
    %36 = vector.shape_cast %35 : vector<64xf32> to vector<64x1xf32>
    %37 = vector.broadcast %36 : vector<64x1xf32> to vector<64x64xf32>
    %38 = arith.subf %34, %37 : vector<64x64xf32>
    %39 = math.exp %38 : vector<64x64xf32>
    %cst_14 = arith.constant dense<0.000000e+00> : vector<64xf32>
    %40 = vector.multi_reduction <add>, %39, %cst_14 [1] : vector<64x64xf32> to vector<64xf32>
    %41 = vector.shape_cast %40 : vector<64xf32> to vector<64x1xf32>
    %42 = tpu.reciprocal %41 {approx = true} : vector<64x1xf32> -> vector<64x1xf32>
    %43 = vector.broadcast %42 : vector<64x1xf32> to vector<64x64xf32>
    %44 = arith.mulf %39, %43 : vector<64x64xf32>
    %45 = arith.truncf %44 : vector<64x64xf32> to vector<64x64xbf16>
    %cst_15 = arith.constant dense<0.000000e+00> : vector<64x32xf32>
    %46 = tpu.matmul %45, %33, %cst_15 {dimension_numbers = #tpu.dot_dimension_numbers<[1], [0], [0], [1], [0, 0, 1, 1], [], []>} : vector<64x64xbf16>, vector<64x32xbf16>, vector<64x32xf32> -> vector<64x32xf32>
    %c0_16 = arith.constant 0 : index
    %c0_17 = arith.constant 0 : index
    %47 = vector.load %arg16[%c0_16, %c0_17] : memref<64x64xf32, #tpu.memory_space<vmem>>, vector<64x32xf32>
    tpu.vector_store %arg16[%c0_16, %c0_17], %46 {strides = array<i32>} : memref<64x64xf32, #tpu.memory_space<vmem>>, vector<64x32xf32>,
    %48 = vector.extract_strided_slice %27 {offsets = [0, 32], sizes = [64, 32], strides = [1, 1]} : vector<64x192xf32> to vector<64x32xf32>
    %49 = arith.truncf %48 : vector<64x32xf32> to vector<64x32xbf16>
    %50 = vector.extract_strided_slice %27 {offsets = [0, 96], sizes = [64, 32], strides = [1, 1]} : vector<64x192xf32> to vector<64x32xf32>
    %51 = arith.truncf %50 : vector<64x32xf32> to vector<64x32xbf16>
    %52 = vector.extract_strided_slice %27 {offsets = [0, 160], sizes = [64, 32], strides = [1, 1]} : vector<64x192xf32> to vector<64x32xf32>
    %53 = arith.truncf %52 : vector<64x32xf32> to vector<64x32xbf16>
    %cst_18 = arith.constant dense<0.000000e+00> : vector<64x64xf32>
    %54 = tpu.matmul %49, %51, %cst_18 {dimension_numbers = #tpu.dot_dimension_numbers<[1], [1], [0], [0], [0, 0, 1, 0], [], []>} : vector<64x32xbf16>, vector<64x32xbf16>, vector<64x64xf32> -> vector<64x64xf32>
    %cst_19 = arith.constant dense<0xFF800000> : vector<64xf32>
    %55 = vector.multi_reduction <maximumf>, %54, %cst_19 [1] : vector<64x64xf32> to vector<64xf32>
    %56 = vector.shape_cast %55 : vector<64xf32> to vector<64x1xf32>
    %57 = vector.broadcast %56 : vector<64x1xf32> to vector<64x64xf32>
    %58 = arith.subf %54, %57 : vector<64x64xf32>
    %59 = math.exp %58 : vector<64x64xf32>
    %cst_20 = arith.constant dense<0.000000e+00> : vector<64xf32>
    %60 = vector.multi_reduction <add>, %59, %cst_20 [1] : vector<64x64xf32> to vector<64xf32>
    %61 = vector.shape_cast %60 : vector<64xf32> to vector<64x1xf32>
    %62 = tpu.reciprocal %61 {approx = true} : vector<64x1xf32> -> vector<64x1xf32>
    %63 = vector.broadcast %62 : vector<64x1xf32> to vector<64x64xf32>
    %64 = arith.mulf %59, %63 : vector<64x64xf32>
    %65 = arith.truncf %64 : vector<64x64xf32> to vector<64x64xbf16>
    %cst_21 = arith.constant dense<0.000000e+00> : vector<64x32xf32>
    %66 = tpu.matmul %65, %53, %cst_21 {dimension_numbers = #tpu.dot_dimension_numbers<[1], [0], [0], [1], [0, 0, 1, 1], [], []>} : vector<64x64xbf16>, vector<64x32xbf16>, vector<64x32xf32> -> vector<64x32xf32>
    %c0_22 = arith.constant 0 : index
    %c32 = arith.constant 32 : index
    %67 = vector.load %arg16[%c0_22, %c32] : memref<64x64xf32, #tpu.memory_space<vmem>>, vector<64x32xf32>
    tpu.vector_store %arg16[%c0_22, %c32], %66 {strides = array<i32>} : memref<64x64xf32, #tpu.memory_space<vmem>>, vector<64x32xf32>,
    %c0_23 = arith.constant 0 : index
    %c0_24 = arith.constant 0 : index
    %68 = vector.load %arg16[%c0_23, %c0_24] : memref<64x64xf32, #tpu.memory_space<vmem>>, vector<64x64xf32>
    %69 = arith.truncf %68 : vector<64x64xf32> to vector<64x64xbf16>
    %c0_25 = arith.constant 0 : index
    %c0_26 = arith.constant 0 : index
    %70 = vector.load %arg5[%c0_25, %c0_26] : memref<64x64xbf16, #tpu.memory_space<vmem>>, vector<64x64xbf16>
    %cst_27 = arith.constant dense<0.000000e+00> : vector<64x64xf32>
    %71 = tpu.matmul %69, %70, %cst_27 {dimension_numbers = #tpu.dot_dimension_numbers<[1], [0], [0], [1], [0, 0, 1, 1], [], []>} : vector<64x64xbf16>, vector<64x64xbf16>, vector<64x64xf32> -> vector<64x64xf32>
    %72 = arith.addf %0, %71 : vector<64x64xf32>
    %c0_28 = arith.constant 0 : index
    %c0_29 = arith.constant 0 : index
    %73 = vector.load %arg6[%c0_28, %c0_29] : memref<1x64xf32, #tpu.memory_space<vmem>>, vector<1x64xf32>
    %74 = vector.broadcast %73 : vector<1x64xf32> to vector<64x64xf32>
    %75 = arith.addf %72, %74 : vector<64x64xf32>
    %c0_30 = arith.constant 0 : index
    %c0_31 = arith.constant 0 : index
    %76 = vector.load %arg7[%c0_30, %c0_31] : memref<1x64xf32, #tpu.memory_space<vmem>>, vector<1x64xf32>
    %c0_32 = arith.constant 0 : index
    %c0_33 = arith.constant 0 : index
    %77 = vector.load %arg8[%c0_32, %c0_33] : memref<1x64xf32, #tpu.memory_space<vmem>>, vector<1x64xf32>
    %cst_34 = arith.constant dense<0.000000e+00> : vector<64xf32>
    %78 = vector.multi_reduction <add>, %75, %cst_34 [1] : vector<64x64xf32> to vector<64xf32>
    %79 = vector.shape_cast %78 : vector<64xf32> to vector<64x1xf32>
    %cst_35 = arith.constant 6.400000e+01 : f32
    %80 = vector.broadcast %cst_35 : f32 to vector<64x1xf32>
    %81 = arith.divf %79, %80 : vector<64x1xf32>
    %82 = arith.mulf %75, %75 : vector<64x64xf32>
    %cst_36 = arith.constant dense<0.000000e+00> : vector<64xf32>
    %83 = vector.multi_reduction <add>, %82, %cst_36 [1] : vector<64x64xf32> to vector<64xf32>
    %84 = vector.shape_cast %83 : vector<64xf32> to vector<64x1xf32>
    %cst_37 = arith.constant 6.400000e+01 : f32
    %85 = vector.broadcast %cst_37 : f32 to vector<64x1xf32>
    %86 = arith.divf %84, %85 : vector<64x1xf32>
    %87 = arith.mulf %81, %81 : vector<64x1xf32>
    %88 = arith.subf %86, %87 : vector<64x1xf32>
    %89 = vector.broadcast %81 : vector<64x1xf32> to vector<64x64xf32>
    %90 = arith.subf %75, %89 : vector<64x64xf32>
    %cst_38 = arith.constant 9.99999974E-6 : f32
    %91 = vector.broadcast %cst_38 : f32 to vector<64x1xf32>
    %92 = arith.addf %88, %91 : vector<64x1xf32>
    %93 = math.rsqrt %92 : vector<64x1xf32>
    %94 = vector.broadcast %93 : vector<64x1xf32> to vector<64x64xf32>
    %95 = arith.mulf %90, %94 : vector<64x64xf32>
    %96 = vector.broadcast %76 : vector<1x64xf32> to vector<64x64xf32>
    %97 = arith.mulf %95, %96 : vector<64x64xf32>
    %98 = vector.broadcast %77 : vector<1x64xf32> to vector<64x64xf32>
    %99 = arith.addf %97, %98 : vector<64x64xf32>
    %100 = arith.truncf %99 : vector<64x64xf32> to vector<64x64xbf16>
    %c0_39 = arith.constant 0 : index
    %c0_40 = arith.constant 0 : index
    %101 = vector.load %arg9[%c0_39, %c0_40] : memref<64x256xbf16, #tpu.memory_space<vmem>>, vector<64x256xbf16>
    %cst_41 = arith.constant dense<0.000000e+00> : vector<64x256xf32>
    %102 = tpu.matmul %100, %101, %cst_41 {dimension_numbers = #tpu.dot_dimension_numbers<[1], [0], [0], [1], [0, 0, 1, 1], [], []>} : vector<64x64xbf16>, vector<64x256xbf16>, vector<64x256xf32> -> vector<64x256xf32>
    %c0_42 = arith.constant 0 : index
    %c0_43 = arith.constant 0 : index
    %103 = vector.load %arg10[%c0_42, %c0_43] : memref<1x256xf32, #tpu.memory_space<vmem>>, vector<1x256xf32>
    %104 = vector.broadcast %103 : vector<1x256xf32> to vector<64x256xf32>
    %105 = arith.addf %102, %104 : vector<64x256xf32>
    %106 = tpu.iota {dimensions = array<i32: 0>} : vector<64x1xi32>
    %c7_i32 = arith.constant 7 : i32
    %107 = vector.broadcast %c7_i32 : i32 to vector<64x1xi32>
    %108 = arith.andi %106, %107 : vector<64x1xi32>
    %c8_i32 = arith.constant 8 : i32
    %109 = vector.broadcast %c8_i32 : i32 to vector<64x1xi32>
    %110 = arith.cmpi sge, %106, %109 : vector<64x1xi32>
    %111 = arith.extui %110 : vector<64x1xi1> to vector<64x1xi32>
    %112 = arith.sitofp %111 : vector<64x1xi32> to vector<64x1xf32>
    %c56_i32 = arith.constant 56 : i32
    %113 = vector.broadcast %c56_i32 : i32 to vector<64x1xi32>
    %114 = arith.cmpi slt, %106, %113 : vector<64x1xi32>
    %115 = arith.extui %114 : vector<64x1xi1> to vector<64x1xi32>
    %116 = arith.sitofp %115 : vector<64x1xi32> to vector<64x1xf32>
    %c1_i32 = arith.constant 1 : i32
    %117 = vector.broadcast %c1_i32 : i32 to vector<64x1xi32>
    %118 = arith.cmpi sge, %108, %117 : vector<64x1xi32>
    %119 = arith.extui %118 : vector<64x1xi1> to vector<64x1xi32>
    %120 = arith.sitofp %119 : vector<64x1xi32> to vector<64x1xf32>
    %c7_i32_44 = arith.constant 7 : i32
    %121 = vector.broadcast %c7_i32_44 : i32 to vector<64x1xi32>
    %122 = arith.cmpi slt, %108, %121 : vector<64x1xi32>
    %123 = arith.extui %122 : vector<64x1xi1> to vector<64x1xi32>
    %124 = arith.sitofp %123 : vector<64x1xi32> to vector<64x1xf32>
    %cst_45 = arith.constant 1.000000e+00 : f32
    %125 = vector.broadcast %cst_45 : f32 to vector<64x1xf32>
    %c4 = arith.constant 4 : index
    %c0_46 = arith.constant 0 : index
    %c0_47 = arith.constant 0 : index
    %126 = vector.load %arg11[%c4, %c0_46, %c0_47] : memref<9x1x256xf32, #tpu.memory_space<vmem>>, vector<1x1x256xf32>
    %127 = vector.shape_cast %126 : vector<1x1x256xf32> to vector<1x256xf32>
    %128 = vector.broadcast %127 : vector<1x256xf32> to vector<64x256xf32>
    %129 = arith.mulf %105, %128 : vector<64x256xf32>
    %c0_48 = arith.constant 0 : index
    %c0_49 = arith.constant 0 : index
    %130 = vector.load %arg12[%c0_48, %c0_49] : memref<1x256xf32, #tpu.memory_space<vmem>>, vector<1x256xf32>
    %131 = vector.broadcast %130 : vector<1x256xf32> to vector<64x256xf32>
    %132 = arith.addf %129, %131 : vector<64x256xf32>
    %c9_i32 = arith.constant 9 : i32
    %133 = tpu.dynamic_rotate %105 by %c9_i32 dim 0 : vector<64x256xf32>, i32 -> vector<64x256xf32>
    %134 = arith.mulf %112, %120 : vector<64x1xf32>
    %c0_50 = arith.constant 0 : index
    %c0_51 = arith.constant 0 : index
    %c0_52 = arith.constant 0 : index
    %135 = vector.load %arg11[%c0_50, %c0_51, %c0_52] : memref<9x1x256xf32, #tpu.memory_space<vmem>>, vector<1x1x256xf32>
    %136 = vector.shape_cast %135 : vector<1x1x256xf32> to vector<1x256xf32>
    %137 = vector.broadcast %134 : vector<64x1xf32> to vector<64x256xf32>
    %138 = vector.broadcast %136 : vector<1x256xf32> to vector<64x256xf32>
    %139 = arith.mulf %137, %138 : vector<64x256xf32>
    %140 = arith.mulf %133, %139 : vector<64x256xf32>
    %141 = arith.addf %132, %140 : vector<64x256xf32>
    %c8_i32_53 = arith.constant 8 : i32
    %142 = tpu.dynamic_rotate %105 by %c8_i32_53 dim 0 : vector<64x256xf32>, i32 -> vector<64x256xf32>
    %143 = arith.mulf %112, %125 : vector<64x1xf32>
    %c1 = arith.constant 1 : index
    %c0_54 = arith.constant 0 : index
    %c0_55 = arith.constant 0 : index
    %144 = vector.load %arg11[%c1, %c0_54, %c0_55] : memref<9x1x256xf32, #tpu.memory_space<vmem>>, vector<1x1x256xf32>
    %145 = vector.shape_cast %144 : vector<1x1x256xf32> to vector<1x256xf32>
    %146 = vector.broadcast %143 : vector<64x1xf32> to vector<64x256xf32>
    %147 = vector.broadcast %145 : vector<1x256xf32> to vector<64x256xf32>
    %148 = arith.mulf %146, %147 : vector<64x256xf32>
    %149 = arith.mulf %142, %148 : vector<64x256xf32>
    %150 = arith.addf %141, %149 : vector<64x256xf32>
    %c7_i32_56 = arith.constant 7 : i32
    %151 = tpu.dynamic_rotate %105 by %c7_i32_56 dim 0 : vector<64x256xf32>, i32 -> vector<64x256xf32>
    %152 = arith.mulf %112, %124 : vector<64x1xf32>
    %c2 = arith.constant 2 : index
    %c0_57 = arith.constant 0 : index
    %c0_58 = arith.constant 0 : index
    %153 = vector.load %arg11[%c2, %c0_57, %c0_58] : memref<9x1x256xf32, #tpu.memory_space<vmem>>, vector<1x1x256xf32>
    %154 = vector.shape_cast %153 : vector<1x1x256xf32> to vector<1x256xf32>
    %155 = vector.broadcast %152 : vector<64x1xf32> to vector<64x256xf32>
    %156 = vector.broadcast %154 : vector<1x256xf32> to vector<64x256xf32>
    %157 = arith.mulf %155, %156 : vector<64x256xf32>
    %158 = arith.mulf %151, %157 : vector<64x256xf32>
    %159 = arith.addf %150, %158 : vector<64x256xf32>
    %c1_i32_59 = arith.constant 1 : i32
    %160 = tpu.dynamic_rotate %105 by %c1_i32_59 dim 0 : vector<64x256xf32>, i32 -> vector<64x256xf32>
    %161 = arith.mulf %125, %120 : vector<64x1xf32>
    %c3 = arith.constant 3 : index
    %c0_60 = arith.constant 0 : index
    %c0_61 = arith.constant 0 : index
    %162 = vector.load %arg11[%c3, %c0_60, %c0_61] : memref<9x1x256xf32, #tpu.memory_space<vmem>>, vector<1x1x256xf32>
    %163 = vector.shape_cast %162 : vector<1x1x256xf32> to vector<1x256xf32>
    %164 = vector.broadcast %161 : vector<64x1xf32> to vector<64x256xf32>
    %165 = vector.broadcast %163 : vector<1x256xf32> to vector<64x256xf32>
    %166 = arith.mulf %164, %165 : vector<64x256xf32>
    %167 = arith.mulf %160, %166 : vector<64x256xf32>
    %168 = arith.addf %159, %167 : vector<64x256xf32>
    %c63_i32 = arith.constant 63 : i32
    %169 = tpu.dynamic_rotate %105 by %c63_i32 dim 0 : vector<64x256xf32>, i32 -> vector<64x256xf32>
    %170 = arith.mulf %125, %124 : vector<64x1xf32>
    %c5 = arith.constant 5 : index
    %c0_62 = arith.constant 0 : index
    %c0_63 = arith.constant 0 : index
    %171 = vector.load %arg11[%c5, %c0_62, %c0_63] : memref<9x1x256xf32, #tpu.memory_space<vmem>>, vector<1x1x256xf32>
    %172 = vector.shape_cast %171 : vector<1x1x256xf32> to vector<1x256xf32>
    %173 = vector.broadcast %170 : vector<64x1xf32> to vector<64x256xf32>
    %174 = vector.broadcast %172 : vector<1x256xf32> to vector<64x256xf32>
    %175 = arith.mulf %173, %174 : vector<64x256xf32>
    %176 = arith.mulf %169, %175 : vector<64x256xf32>
    %177 = arith.addf %168, %176 : vector<64x256xf32>
    %c57_i32 = arith.constant 57 : i32
    %178 = tpu.dynamic_rotate %105 by %c57_i32 dim 0 : vector<64x256xf32>, i32 -> vector<64x256xf32>
    %179 = arith.mulf %116, %120 : vector<64x1xf32>
    %c6 = arith.constant 6 : index
    %c0_64 = arith.constant 0 : index
    %c0_65 = arith.constant 0 : index
    %180 = vector.load %arg11[%c6, %c0_64, %c0_65] : memref<9x1x256xf32, #tpu.memory_space<vmem>>, vector<1x1x256xf32>
    %181 = vector.shape_cast %180 : vector<1x1x256xf32> to vector<1x256xf32>
    %182 = vector.broadcast %179 : vector<64x1xf32> to vector<64x256xf32>
    %183 = vector.broadcast %181 : vector<1x256xf32> to vector<64x256xf32>
    %184 = arith.mulf %182, %183 : vector<64x256xf32>
    %185 = arith.mulf %178, %184 : vector<64x256xf32>
    %186 = arith.addf %177, %185 : vector<64x256xf32>
    %c56_i32_66 = arith.constant 56 : i32
    %187 = tpu.dynamic_rotate %105 by %c56_i32_66 dim 0 : vector<64x256xf32>, i32 -> vector<64x256xf32>
    %188 = arith.mulf %116, %125 : vector<64x1xf32>
    %c7 = arith.constant 7 : index
    %c0_67 = arith.constant 0 : index
    %c0_68 = arith.constant 0 : index
    %189 = vector.load %arg11[%c7, %c0_67, %c0_68] : memref<9x1x256xf32, #tpu.memory_space<vmem>>, vector<1x1x256xf32>
    %190 = vector.shape_cast %189 : vector<1x1x256xf32> to vector<1x256xf32>
    %191 = vector.broadcast %188 : vector<64x1xf32> to vector<64x256xf32>
    %192 = vector.broadcast %190 : vector<1x256xf32> to vector<64x256xf32>
    %193 = arith.mulf %191, %192 : vector<64x256xf32>
    %194 = arith.mulf %187, %193 : vector<64x256xf32>
    %195 = arith.addf %186, %194 : vector<64x256xf32>
    %c55_i32 = arith.constant 55 : i32
    %196 = tpu.dynamic_rotate %105 by %c55_i32 dim 0 : vector<64x256xf32>, i32 -> vector<64x256xf32>
    %197 = arith.mulf %116, %124 : vector<64x1xf32>
    %c8 = arith.constant 8 : index
    %c0_69 = arith.constant 0 : index
    %c0_70 = arith.constant 0 : index
    %198 = vector.load %arg11[%c8, %c0_69, %c0_70] : memref<9x1x256xf32, #tpu.memory_space<vmem>>, vector<1x1x256xf32>
    %199 = vector.shape_cast %198 : vector<1x1x256xf32> to vector<1x256xf32>
    %200 = vector.broadcast %197 : vector<64x1xf32> to vector<64x256xf32>
    %201 = vector.broadcast %199 : vector<1x256xf32> to vector<64x256xf32>
    %202 = arith.mulf %200, %201 : vector<64x256xf32>
    %203 = arith.mulf %196, %202 : vector<64x256xf32>
    %204 = arith.addf %195, %203 : vector<64x256xf32>
    %cst_71 = arith.constant 5.000000e-01 : f32
    %205 = vector.broadcast %cst_71 : f32 to vector<64x256xf32>
    %206 = arith.mulf %205, %204 : vector<64x256xf32>
    %207 = arith.mulf %204, %204 : vector<64x256xf32>
    %208 = arith.mulf %207, %204 : vector<64x256xf32>
    %cst_72 = arith.constant 4.471500e-02 : f32
    %209 = vector.broadcast %cst_72 : f32 to vector<64x256xf32>
    %210 = arith.mulf %209, %208 : vector<64x256xf32>
    %211 = arith.addf %204, %210 : vector<64x256xf32>
    %cst_73 = arith.constant 0.797884583 : f32
    %212 = vector.broadcast %cst_73 : f32 to vector<64x256xf32>
    %213 = arith.mulf %212, %211 : vector<64x256xf32>
    %214 = math.tanh %213 : vector<64x256xf32>
    %cst_74 = arith.constant 1.000000e+00 : f32
    %215 = vector.broadcast %cst_74 : f32 to vector<64x256xf32>
    %216 = arith.addf %215, %214 : vector<64x256xf32>
    %217 = arith.mulf %206, %216 : vector<64x256xf32>
    %218 = arith.truncf %217 : vector<64x256xf32> to vector<64x256xbf16>
    %c0_75 = arith.constant 0 : index
    %c0_76 = arith.constant 0 : index
    %219 = vector.load %arg13[%c0_75, %c0_76] : memref<256x64xbf16, #tpu.memory_space<vmem>>, vector<256x64xbf16>
    %cst_77 = arith.constant dense<0.000000e+00> : vector<64x64xf32>
    %220 = tpu.matmul %218, %219, %cst_77 {dimension_numbers = #tpu.dot_dimension_numbers<[1], [0], [0], [1], [0, 0, 1, 1], [], []>} : vector<64x256xbf16>, vector<256x64xbf16>, vector<64x64xf32> -> vector<64x64xf32>
    %c0_78 = arith.constant 0 : index
    %c0_79 = arith.constant 0 : index
    %221 = vector.load %arg14[%c0_78, %c0_79] : memref<1x64xf32, #tpu.memory_space<vmem>>, vector<1x64xf32>
    %222 = vector.broadcast %221 : vector<1x64xf32> to vector<64x64xf32>
    %223 = arith.addf %220, %222 : vector<64x64xf32>
    %224 = arith.addf %75, %223 : vector<64x64xf32>
    %c0_80 = arith.constant 0 : index
    %c0_81 = arith.constant 0 : index
    %225 = vector.load %arg15[%c0_80, %c0_81] : memref<64x64xf32, #tpu.memory_space<vmem>>, vector<64x64xf32>
    tpu.vector_store %arg15[%c0_80, %c0_81], %224 {strides = array<i32>} : memref<64x64xf32, #tpu.memory_space<vmem>>, vector<64x64xf32>,
    return
  }
  func.func @transform_0(%arg0: i32) -> (i32, i32) {
    %c0_i32 = arith.constant 0 : i32
    %c0_i32_0 = arith.constant 0 : i32
    return %arg0, %c0_i32 : i32, i32
  }
  func.func @transform_1(%arg0: i32) -> (i32, i32) {
    %c0_i32 = arith.constant 0 : i32
    %c0_i32_0 = arith.constant 0 : i32
    %c0_i32_1 = arith.constant 0 : i32
    return %c0_i32, %c0_i32_0 : i32, i32
  }
  func.func @transform_2(%arg0: i32) -> (i32, i32) {
    %c0_i32 = arith.constant 0 : i32
    %c0_i32_0 = arith.constant 0 : i32
    %c0_i32_1 = arith.constant 0 : i32
    return %c0_i32, %c0_i32_0 : i32, i32
  }
  func.func @transform_3(%arg0: i32) -> (i32, i32) {
    %c0_i32 = arith.constant 0 : i32
    %c0_i32_0 = arith.constant 0 : i32
    %c0_i32_1 = arith.constant 0 : i32
    return %c0_i32, %c0_i32_0 : i32, i32
  }
  func.func @transform_4(%arg0: i32) -> (i32, i32) {
    %c0_i32 = arith.constant 0 : i32
    %c0_i32_0 = arith.constant 0 : i32
    %c0_i32_1 = arith.constant 0 : i32
    return %c0_i32, %c0_i32_0 : i32, i32
  }
  func.func @transform_5(%arg0: i32) -> (i32, i32) {
    %c0_i32 = arith.constant 0 : i32
    %c0_i32_0 = arith.constant 0 : i32
    %c0_i32_1 = arith.constant 0 : i32
    return %c0_i32, %c0_i32_0 : i32, i32
  }
  func.func @transform_6(%arg0: i32) -> (i32, i32) {
    %c0_i32 = arith.constant 0 : i32
    %c0_i32_0 = arith.constant 0 : i32
    %c0_i32_1 = arith.constant 0 : i32
    return %c0_i32, %c0_i32_0 : i32, i32
  }
  func.func @transform_7(%arg0: i32) -> (i32, i32) {
    %c0_i32 = arith.constant 0 : i32
    %c0_i32_0 = arith.constant 0 : i32
    %c0_i32_1 = arith.constant 0 : i32
    return %c0_i32, %c0_i32_0 : i32, i32
  }
  func.func @transform_8(%arg0: i32) -> (i32, i32) {
    %c0_i32 = arith.constant 0 : i32
    %c0_i32_0 = arith.constant 0 : i32
    %c0_i32_1 = arith.constant 0 : i32
    return %c0_i32, %c0_i32_0 : i32, i32
  }
  func.func @transform_9(%arg0: i32) -> (i32, i32) {
    %c0_i32 = arith.constant 0 : i32
    %c0_i32_0 = arith.constant 0 : i32
    %c0_i32_1 = arith.constant 0 : i32
    return %c0_i32, %c0_i32_0 : i32, i32
  }
  func.func @transform_10(%arg0: i32) -> (i32, i32, i32) {
    %c0_i32 = arith.constant 0 : i32
    %c0_i32_0 = arith.constant 0 : i32
    %c0_i32_1 = arith.constant 0 : i32
    %c0_i32_2 = arith.constant 0 : i32
    return %c0_i32, %c0_i32_0, %c0_i32_1 : i32, i32, i32
  }
  func.func @transform_11(%arg0: i32) -> (i32, i32) {
    %c0_i32 = arith.constant 0 : i32
    %c0_i32_0 = arith.constant 0 : i32
    %c0_i32_1 = arith.constant 0 : i32
    return %c0_i32, %c0_i32_0 : i32, i32
  }
  func.func @transform_12(%arg0: i32) -> (i32, i32) {
    %c0_i32 = arith.constant 0 : i32
    %c0_i32_0 = arith.constant 0 : i32
    %c0_i32_1 = arith.constant 0 : i32
    return %c0_i32, %c0_i32_0 : i32, i32
  }
  func.func @transform_13(%arg0: i32) -> (i32, i32) {
    %c0_i32 = arith.constant 0 : i32
    %c0_i32_0 = arith.constant 0 : i32
    %c0_i32_1 = arith.constant 0 : i32
    return %c0_i32, %c0_i32_0 : i32, i32
  }
  func.func @transform_14(%arg0: i32) -> (i32, i32) {
    %c0_i32 = arith.constant 0 : i32
    %c0_i32_0 = arith.constant 0 : i32
    return %arg0, %c0_i32 : i32, i32
  }
}

</mosaic_0001>

<bundles_post_ra>
// kernel: tpu_custom_call.1
= control target key start
LH: loop header
LB: loop body
LE: loop exit
PB: predicated region body
PF: predicated region fallthrough
CT: control target
= control target key end

     0   :  { %s3366_s29 = smov 0   ;;  %s5389_s0 = inlined_call_operand.vmem [shape: f32[128,64], index: 0, kind: input, shape index: {}]   ;;  %s5390_s1 = inlined_call_operand.vmem [shape: f32[1,64], index: 1, kind: input, shape index: {}]   ;;  %s5391_s2 = inlined_call_operand.vmem [shape: f32[1,64], index: 2, kind: input, shape index: {}]   ;;  %s5392_s3 = inlined_call_operand.vmem [shape: bf16[64,192], index: 3, kind: input, shape index: {}]   ;;  %s5393_s4 = inlined_call_operand.vmem [shape: bf16[64,64], index: 4, kind: input, shape index: {}]   ;;  %s5394_s5 = inlined_call_operand.vmem [shape: f32[1,64], index: 5, kind: input, shape index: {}]   ;;  %s5395_s6 = inlined_call_operand.vmem [shape: f32[1,64], index: 6, kind: input, shape index: {}]   ;;  %s5396_s7 = inlined_call_operand.vmem [shape: f32[1,64], index: 7, kind: input, shape index: {}]   ;;  %s5397_s8 = inlined_call_operand.vmem [shape: bf16[64,256], index: 8, kind: input, shape index: {}]   ;;  %s5398_s9 = inlined_call_operand.vmem [shape: f32[1,256], index: 9, kind: input, shape index: {}]   ;;  %s5399_s10 = inlined_call_operand.vmem [shape: f32[9,1,256], index: 10, kind: input, shape index: {}]   ;;  %s5400_s11 = inlined_call_operand.vmem [shape: f32[1,256], index: 11, kind: input, shape index: {}]   ;;  %s5401_s12 = inlined_call_operand.vmem [shape: bf16[256,64], index: 12, kind: input, shape index: {}]   ;;  %s5402_s13 = inlined_call_operand.vmem [shape: f32[1,64], index: 13, kind: input, shape index: {}]   ;;  %s5403_s14 = inlined_call_operand.vmem [shape: f32[128,64], index: 14, kind: output, shape index: {}]  }
   0x1 LB: > { %s2858_s30 = sadd.s32 4294967295, %s3284_s29   ;;  %p2862_p0 = scmp.ge.s32.totalorder %s3284_s29, 1  ;;  %s3284_s29 = sphi %s3366_s29, %s24_s29  }
   0x2   : > { %p413_p1 = scmp.lt.s32.totalorder %s3284_s29, 3 }
   0x4   : > { %p414_p2 = pnand %p2862_p0, %p413_p1 }
   0x6   : > { %417 = sbr.rel (%p414_p2) target bundleno = 1931 (0x78b), region = 76 }
   0xb   : > { %s2863_s15 = sshll.u32 %s2858_s30, 3  ;;  %vm482_vm0 = vcmask 523264   ;;  %v3286_v32 = vmov 64.0   ;;  %v2893_v38 = vld [vmem:[%s5392_s3 + $0x30] sm:$0xf]  ;;  %s3287_s20 = smov 32  }
   0xc   : > { %p460_p3 = scmp.lt.s32.totalorder %s2863_s15, 15  ;;  %3140 = vrcp.f32 %v3286_v32  ;;  %v3080_v39 = vld [vmem:[%s5392_s3 + $0x34] sm:$0xf0]  ;;  %v2885_v42 = vld [vmem:[%s5392_s3 + $0x20] sm:$0xf]  ;;  %s3288_s21 = smov 64  }
   0xd   : > { %v2894_v40 = vor.u32 %v3080_v39, %v2893_v38  ;;  %v3078_v43 = vld [vmem:[%s5392_s3 + $0x24] sm:$0xf0]  ;;  %v2877_v49 = vld [vmem:[%s5392_s3 + $0x10] sm:$0xf]  ;;  %v3076_v50 = vld [vmem:[%s5392_s3 + $0x14] sm:$0xf0] }
   0xe   : > { %s5716_s15 = smov (!%p460_p3, %s2863_s15), 15  ;;  %v2886_v44 = vor.u32 %v3078_v43, %v2885_v42  ;;  %v2878_v53 = vor.u32 %v3076_v50, %v2877_v49  ;;  %v2869_v55 = vld [vmem:[%s5392_s3] sm:$0xf]  ;;  %v3074_v56 = vld [vmem:[%s5392_s3 + $0x4] sm:$0xf0]  ;;  %s3289_s22 = smov 96  }
   0xf   : > { %s2864_s16 = sshll.u32 %s5716_s15, 3  ;;  %3109 = vmatpush.bf16.msra.mxu2 %v2894_v40  ;;  %772 = vmatpush.bf16.msra.mxu0 %v2894_v40  ;;  %v2870_v57 = vor.u32 %v3074_v56, %v2869_v55  ;;  %v2879_v40 = vld [vmem:[%s5392_s3 + $0x18] sm:$0xf0] }
  0x10   : > { %s3382_s19 = scalar_lea.vmem %s5389_s0, %s2864_s16 }
  0x11   : > { %v3385_v0 = vld [vmem:[%s3382_s19 + $0x20] sm:$0xff]  ;;  %v3388_v1 = vld [vmem:[%s3382_s19 + $0x30] sm:$0xff]  ;;  %v3397_v5 = vld [vmem:[%s3382_s19 + $0x28] sm:$0xff] }
  0x12   : > { %v495_v2 = vsel %vm482_vm0, %v3385_v0, 0.0  ;;  %v501_v3 = vsel %vm482_vm0, %v3388_v1, 0.0  ;;  %v526_v4 = vmul.f32 %v3385_v0, %v3385_v0  ;;  %v3401_v7 = vld [vmem:[%s3382_s19 + $0x38] sm:$0xff]  ;;  %v527_v8 = vmul.f32 %v3397_v5, %v3397_v5  ;;  %v3413_v13 = vld [vmem:[%s3382_s19] sm:$0xff]  ;;  %v3421_v17 = vld [vmem:[%s3382_s19 + $0x8] sm:$0xff]  ;;  %v3141_v33 = vpop.eup %3140 }
  0x13   : > { %496 = vadd.xlane.f32.xlu0 %v495_v2  ;;  %502 = vadd.xlane.f32.xlu2 %v501_v3  ;;  %v498_v9 = vsel %vm482_vm0, %v3397_v5, 0.0  ;;  %v504_v10 = vsel %vm482_vm0, %v3401_v7, 0.0  ;;  %v528_v12 = vmul.f32 %v3388_v1, %v3388_v1  ;;  %v529_v14 = vmul.f32 %v3401_v7, %v3401_v7  ;;  %v3432_v23 = vld [vmem:[%s3382_s19 + $0x10] sm:$0xff]  ;;  %v3438_v26 = vld [vmem:[%s3382_s19 + $0x18] sm:$0xff] }
  0x14   : > { %v542_v6 = vsel %vm482_vm0, %v526_v4, 0.0  ;;  %v545_v11 = vsel %vm482_vm0, %v527_v8, 0.0  ;;  %v483_v16 = vsel %vm482_vm0, %v3413_v13, 0.0  ;;  %v523_v19 = vmul.f32 %v3421_v17, %v3421_v17  ;;  %3110 = vmatpush.bf16.msra.mxu2 %v2886_v44  ;;  %773 = vmatpush.bf16.msra.mxu0 %v2886_v44 }
  0x15   : > { %543 = vadd.xlane.f32.xlu1 %v542_v6  ;;  %v548_v15 = vsel %vm482_vm0, %v528_v12, 0.0  ;;  %v551_v18 = vsel %vm482_vm0, %v529_v14, 0.0  ;;  %v522_v20 = vmul.f32 %v3413_v13, %v3413_v13  ;;  %v486_v21 = vsel %vm482_vm0, %v3421_v17, 0.0 }
  0x16   : > { %v533_v22 = vsel %vm482_vm0, %v523_v19, 0.0  ;;  %v524_v25 = vmul.f32 %v3432_v23, %v3432_v23  ;;  %v489_v27 = vsel %vm482_vm0, %v3432_v23, 0.0  ;;  %v492_v29 = vsel %vm482_vm0, %v3438_v26, 0.0 }
  0x17   : > { %v530_v24 = vsel %vm482_vm0, %v522_v20, 0.0  ;;  %v525_v30 = vmul.f32 %v3438_v26, %v3438_v26  ;;  %v508_v34 = vmul.f32 64.0, %v3141_v33  ;;  %vm512_vm1 = vweird.f32 %v3141_v33 }
  0x18   : > { %v536_v28 = vsel %vm482_vm0, %v524_v25, 0.0  ;;  %3111 = vmatpush.bf16.msra.mxu2 %v2878_v53  ;;  %774 = vmatpush.bf16.msra.mxu0 %v2878_v53  ;;  %v2871_v53 = vld [vmem:[%s5392_s3 + $0x8] sm:$0xf0] }
  0x19   : > { %v539_v31 = vsel %vm482_vm0, %v525_v30, 0.0  ;;  %v509_v35 = vsub.f32 1.0, %v508_v34 }
  0x1b   : > { %499 = vadd.xlane.f32.xlu0 %v498_v9  ;;  %505 = vadd.xlane.f32.xlu2 %v504_v10  ;;  %v510_v36 = vmul.f32 %v3141_v33, %v509_v35  ;;  %v3079_v9 = vld [vmem:[%s5392_s3 + $0x34] sm:$0xf]  ;;  %v2895_v10 = vld [vmem:[%s5392_s3 + $0x38] sm:$0xf0] }
  0x1c   : > { %3112 = vmatpush.bf16.msra.mxu2 %v2870_v57  ;;  %775 = vmatpush.bf16.msra.mxu0 %v2870_v57 }
  0x1d   : > { %546 = vadd.xlane.f32.xlu1 %v545_v11  ;;  %v511_v37 = vadd.f32 %v3141_v33, %v510_v36  ;;  %v3075_v36 = vld [vmem:[%s5392_s3 + $0x14] sm:$0xf] }
  0x1f   : > { %v3454_v41 = vsel %vm512_vm1, %v3141_v33, %v511_v37 }
  0x23   : > { %549 = vadd.xlane.f32.xlu0 %v548_v15  ;;  %484 = vadd.xlane.f32.xlu2 %v483_v16  ;;  %v2898_v16 = vor.u32 %v3079_v9, %v2895_v10 }
  0x25   : > { %552 = vadd.xlane.f32.xlu1 %v551_v18  ;;  %801 = vmatpush.bf16.msra.mxu1 %v2898_v16 }
  0x2b   : > { %487 = vadd.xlane.f32.xlu0 %v486_v21  ;;  %534 = vadd.xlane.f32.xlu2 %v533_v22 }
  0x2d   : > { %531 = vadd.xlane.f32.xlu1 %v530_v24 }
  0x33   : > { %490 = vadd.xlane.f32.xlu0 %v489_v27  ;;  %537 = vadd.xlane.f32.xlu2 %v536_v28  ;;  %v3077_v27 = vld [vmem:[%s5392_s3 + $0x24] sm:$0xf]  ;;  %v2887_v28 = vld [vmem:[%s5392_s3 + $0x28] sm:$0xf0] }
  0x35   : > { %493 = vadd.xlane.f32.xlu1 %v492_v29  ;;  %v2890_v29 = vor.u32 %v3077_v27, %v2887_v28 }
  0x37   : > { %802 = vmatpush.bf16.msra.mxu1 %v2890_v29 }
  0x3b   : > { %540 = vadd.xlane.f32.xlu0 %v539_v31 }
  0x86   : > { %v497_v45 = vpop.xlane.xlu0 %496  ;;  %v503_v46 = vpop.xlane.xlu2 %502 }
  0x87   : > { %v3463_v47 = vmul.f32 %v3454_v41, %v497_v45  ;;  %v3487_v63 = vmul.f32 %v3454_v41, %v503_v46 }
  0x88   : > { %v544_v48 = vpop.xlane.xlu1 %543 }
  0x89   : > { %v566_v51 = vmul.f32 %v3463_v47, %v3463_v47  ;;  %v558_v52 = vmul.f32 %v544_v48, %v3454_v41  ;;  %v568_v8 = vmul.f32 %v3487_v63, %v3487_v63  ;;  %v2882_v48 = vor.u32 %v3075_v36, %v2879_v40 }
  0x8b   : > { %v574_v54 = vsub.f32 %v558_v52, %v566_v51  ;;  %v3073_v52 = vld [vmem:[%s5392_s3 + $0x4] sm:$0xf]  ;;  %803 = vmatpush.bf16.msra.mxu1 %v2882_v48 }
  0x8c   : > { %v2874_v55 = vor.u32 %v3073_v52, %v2871_v53 }
  0x8d   : > { %v3480_v58 = vadd.f32 1e-05, %v574_v54 }
  0x8e   : > { %v500_v59 = vpop.xlane.xlu0 %499  ;;  %v506_v60 = vpop.xlane.xlu2 %505 }
  0x8f   : > { %v3483_v61 = vmul.f32 %v3454_v41, %v500_v59  ;;  %3142 = vrsqrt.f32 %v3480_v58  ;;  %v3493_v4 = vmul.f32 %v3454_v41, %v506_v60  ;;  %vm640_vm3 = vweird.f32 %v3480_v58  ;;  %804 = vmatpush.bf16.msra.mxu1 %v2874_v55 }
  0x90   : > { %v547_v62 = vpop.xlane.xlu1 %546 }
  0x91   : > { %v567_v2 = vmul.f32 %v3483_v61, %v3483_v61  ;;  %v559_v3 = vmul.f32 %v547_v62, %v3454_v41  ;;  %v569_v19 = vmul.f32 %v3493_v4, %v3493_v4  ;;  %v585_v53 = vsub.f32 %v3401_v7, %v3493_v4 }
  0x93   : > { %v575_v6 = vsub.f32 %v559_v3, %v567_v2 }
  0x95   : > { %v3503_v11 = vpop.eup %3142  ;;  %v3505_v12 = vadd.f32 1e-05, %v575_v6 }
  0x96   : > { %v550_v14 = vpop.xlane.xlu0 %549  ;;  %v485_v15 = vpop.xlane.xlu2 %484  ;;  %v635_v18 = vmul.f32 %v3503_v11, %v3480_v58  ;;  %vm641_vm2 = vweird.f32 %v3503_v11  ;;  %v582_v58 = vsub.f32 %v3385_v0, %v3463_v47  ;;  %v583_v0 = vsub.f32 %v3397_v5, %v3483_v61 }
  0x97   : > { %v560_v20 = vmul.f32 %v550_v14, %v3454_v41  ;;  %3144 = vrsqrt.f32 %v3505_v12  ;;  %v3524_v33 = vmul.f32 %v3454_v41, %v485_v15  ;;  %vm3557_vm4 = vmor %vm640_vm3, %vm641_vm2  ;;  %vm650_vm6 = vweird.f32 %v3505_v12 }
  0x98   : > { %v553_v21 = vpop.xlane.xlu1 %552  ;;  %v636_v22 = vmul.f32 %v3503_v11, %v635_v18 }
  0x99   : > { %v576_v24 = vsub.f32 %v560_v20, %v568_v8  ;;  %v561_v25 = vmul.f32 %v553_v21, %v3454_v41  ;;  %v562_v43 = vmul.f32 %v3524_v33, %v3524_v33 }
  0x9a   : > { %v637_v30 = vmul.f32 0.5, %v636_v22  ;;  %v3589_v22 = vld [vmem:[%s5390_s1] ss:$0 sm:$0xff] }
  0x9b   : > { %v3521_v31 = vadd.f32 1e-05, %v576_v24  ;;  %v577_v32 = vsub.f32 %v561_v25, %v569_v19 }
  0x9c   : > { %v638_v34 = vsub.f32 1.5, %v637_v30 }
  0x9d   : > { %3146 = vrsqrt.f32 %v3521_v31  ;;  %v3527_v35 = vadd.f32 1e-05, %v577_v32  ;;  %v3145_v37 = vpop.eup %3144  ;;  %vm660_vm11 = vweird.f32 %v3521_v31 }
  0x9e   : > { %v488_v38 = vpop.xlane.xlu0 %487  ;;  %v535_v39 = vpop.xlane.xlu2 %534  ;;  %v645_v42 = vmul.f32 %v3145_v37, %v3505_v12  ;;  %v639_v49 = vmul.f32 %v3503_v11, %v638_v34  ;;  %vm651_vm5 = vweird.f32 %v3145_v37  ;;  %v3601_v34 = vld [vmem:[%s5391_s2] ss:$0 sm:$0xff] }
  0x9f   : > { %3148 = vrsqrt.f32 %v3527_v35  ;;  %v3540_v44 = vmul.f32 %v3454_v41, %v488_v38  ;;  %v555_v46 = vmul.f32 %v535_v39, %v3454_v41  ;;  %vm652_vm7 = vmor %vm650_vm6, %vm651_vm5  ;;  %vm670_vm8 = vweird.f32 %v3527_v35 }
  0xa0   : > { %v532_v45 = vpop.xlane.xlu1 %531  ;;  %v646_v50 = vmul.f32 %v3145_v37, %v645_v42  ;;  %v643_v6 = vsel %vm3557_vm4, %v3503_v11, %v639_v49 }
  0xa1   : > { %v554_v51 = vmul.f32 %v532_v45, %v3454_v41  ;;  %v563_v54 = vmul.f32 %v3540_v44, %v3540_v44  ;;  %v678_v21 = vmul.f32 %v643_v6, %v582_v58 }
  0xa2   : > { %v647_v57 = vmul.f32 0.5, %v646_v50 }
  0xa3   : > { %v3554_v56 = vpop.eup %3146  ;;  %v570_v59 = vsub.f32 %v554_v51, %v562_v43  ;;  %v571_v2 = vsub.f32 %v555_v46, %v563_v54  ;;  %v689_v32 = vmul.f32 %v3589_v22, %v678_v21 }
  0xa4   : > { %v655_v62 = vmul.f32 %v3554_v56, %v3521_v31  ;;  %v648_v8 = vsub.f32 1.5, %v647_v57  ;;  %vm661_vm10 = vweird.f32 %v3554_v56 }
  0xa5   : > { %v3563_v3 = vpop.eup %3148  ;;  %v3568_v9 = vadd.f32 1e-05, %v570_v59  ;;  %v3575_v15 = vadd.f32 1e-05, %v571_v2  ;;  %v700_v51 = vadd.f32 %v3601_v34, %v689_v32  ;;  %vm3634_vm15 = vmor %vm660_vm11, %vm661_vm10  ;;  %vm846_vm11 = vcmask 261120  }
  0xa6   : > { %v656_v10 = vmul.f32 %v3554_v56, %v655_v62  ;;  %v665_v14 = vmul.f32 %v3563_v3, %v3527_v35  ;;  %v491_v16 = vpop.xlane.xlu0 %490  ;;  %v538_v18 = vpop.xlane.xlu2 %537  ;;  %v649_v19 = vmul.f32 %v3145_v37, %v648_v8  ;;  %vm671_vm9 = vweird.f32 %v3563_v3 }
  0xa7   : > { %3150 = vrsqrt.f32 %v3568_v9  ;;  %v3580_v11 = vmul.f32 %v3454_v41, %v491_v16  ;;  %v556_v27 = vmul.f32 %v538_v18, %v3454_v41  ;;  %vm3624_vm12 = vmor %vm670_vm8, %vm671_vm9  ;;  %vm610_vm13 = vweird.f32 %v3575_v15 }
  0xa8   : > { %v666_v47 = vmul.f32 %v3563_v3, %v665_v14  ;;  %3152 = vrsqrt.f32 %v3575_v15  ;;  %v494_v20 = vpop.xlane.xlu1 %493  ;;  %v653_v12 = vsel %vm652_vm7, %v3145_v37, %v649_v19  ;;  %v657_v24 = vmul.f32 0.5, %v656_v10 }
  0xa9   : > { %v564_v25 = vmul.f32 %v3580_v11, %v3580_v11  ;;  %v3595_v61 = vmul.f32 %v3454_v41, %v494_v20  ;;  %v679_v28 = vmul.f32 %v653_v12, %v583_v0  ;;  %vm600_vm1 = vweird.f32 %v3568_v9 }
  0xaa   : > { %v667_v5 = vmul.f32 0.5, %v666_v47  ;;  %v658_v37 = vsub.f32 1.5, %v657_v24  ;;  %v579_v18 = vsub.f32 %v3421_v17, %v3540_v44 }
  0xab   : > { %v572_v29 = vsub.f32 %v556_v27, %v564_v25  ;;  %v690_v39 = vmul.f32 %v3589_v22, %v679_v28  ;;  %v565_v43 = vmul.f32 %v3595_v61, %v3595_v61 }
  0xac   : > { %v668_v30 = vsub.f32 1.5, %v667_v5  ;;  %v659_v54 = vmul.f32 %v3554_v56, %v658_v37 }
  0xad   : > { %v3151_v36 = vpop.eup %3150  ;;  %v3603_v38 = vadd.f32 1e-05, %v572_v29  ;;  %v701_v52 = vadd.f32 %v3601_v34, %v690_v39 }
  0xae   : > { %v3153_v40 = vpop.eup %3152  ;;  %v595_v42 = vmul.f32 %v3151_v36, %v3568_v9  ;;  %v541_v45 = vpop.xlane.xlu0 %540  ;;  %v669_v46 = vmul.f32 %v3563_v3, %v668_v30  ;;  %vm601_vm2 = vweird.f32 %v3151_v36  ;;  %v663_v8 = vsel %vm3634_vm15, %v3554_v56, %v659_v54 }
  0xaf   : > { %v605_v48 = vmul.f32 %v3153_v40, %v3575_v15  ;;  %3154 = vrsqrt.f32 %v3603_v38  ;;  %v557_v50 = vmul.f32 %v541_v45, %v3454_v41  ;;  %v3628_v62 = vpack.c.bf16 %v701_v52, %v700_v51  ;;  %vm602_vm4 = vmor %vm600_vm1, %vm601_vm2 }
  0xb0   : > { %v596_v49 = vmul.f32 %v3151_v36, %v595_v42  ;;  %v673_v7 = vsel %vm3624_vm12, %v3563_v3, %v669_v46  ;;  %vm611_vm14 = vweird.f32 %v3153_v40  ;;  %v584_v3 = vsub.f32 %v3388_v1, %v3487_v63 }
  0xb1   : > { %v606_v55 = vmul.f32 %v3153_v40, %v605_v48  ;;  %v573_v60 = vsub.f32 %v557_v50, %v565_v43  ;;  %2901 = vmatmul.msk.bf16.vlgmr.msra.gmra.mxu2 %vm482_vm0, %v3628_v62  ;;  %vm612_vm3 = vmor %vm610_vm13, %vm611_vm14  ;;  %v681_v9 = vmul.f32 %v673_v7, %v585_v53  ;;  %v578_v15 = vsub.f32 %v3413_v13, %v3524_v33 }
  0xb2   : > { %v597_v59 = vmul.f32 0.5, %v596_v49  ;;  %v680_v19 = vmul.f32 %v663_v8, %v584_v3  ;;  %vm620_vm5 = vweird.f32 %v3603_v38  ;;  %v580_v42 = vsub.f32 %v3432_v23, %v3580_v11 }
  0xb3   : > { %v607_v4 = vmul.f32 0.5, %v606_v55  ;;  %v589_v2 = vadd.f32 1e-05, %v573_v60  ;;  %v692_v21 = vmul.f32 %v3589_v22, %v681_v9  ;;  %v581_v45 = vsub.f32 %v3438_v26, %v3595_v61 }
  0xb4   : > { %v598_v35 = vsub.f32 1.5, %v597_v59  ;;  %v691_v33 = vmul.f32 %v3589_v22, %v680_v19  ;;  %vm1291_vm12 = vcmask 523520  }
  0xb5   : > { %v3155_v6 = vpop.eup %3154  ;;  %v608_v58 = vsub.f32 1.5, %v607_v4  ;;  %3156 = vrsqrt.f32 %v589_v2  ;;  %v703_v5 = vadd.f32 %v3601_v34, %v692_v21  ;;  %vm630_vm8 = vweird.f32 %v589_v2 }
  0xb6   : > { %v599_v10 = vmul.f32 %v3151_v36, %v598_v35  ;;  %v615_v14 = vmul.f32 %v3155_v6, %v3603_v38  ;;  %vm621_vm6 = vweird.f32 %v3155_v6 }
  0xb7   : > { %v609_v16 = vmul.f32 %v3153_v40, %v608_v58  ;;  %vm3659_vm7 = vmor %vm620_vm5, %vm621_vm6 }
  0xb8   : > { %v603_v1 = vsel %vm602_vm4, %v3151_v36, %v599_v10  ;;  %v616_v63 = vmul.f32 %v3155_v6, %v615_v14  ;;  %v702_v36 = vadd.f32 %v3601_v34, %v691_v33 }
  0xb9   : > { %v613_v0 = vsel %vm612_vm3, %v3153_v40, %v609_v16  ;;  %v674_v56 = vmul.f32 %v603_v1, %v578_v15 }
  0xba   : > { %v617_v47 = vmul.f32 0.5, %v616_v63  ;;  %v675_v20 = vmul.f32 %v613_v0, %v579_v18  ;;  %v707_v38 = vpack.c.bf16 %v703_v5, %v702_v36 }
  0xbb   : > { %v685_v12 = vmul.f32 %v3589_v22, %v674_v56  ;;  %v3157_v24 = vpop.eup %3156 }
  0xbc   : > { %v618_v25 = vsub.f32 1.5, %v617_v47  ;;  %v686_v13 = vmul.f32 %v3589_v22, %v675_v20  ;;  %v625_v17 = vmul.f32 %v3157_v24, %v589_v2  ;;  %vm631_vm9 = vweird.f32 %v3157_v24 }
  0xbd   : > { %v696_v44 = vadd.f32 %v3601_v34, %v685_v12  ;;  %vm632_vm10 = vmor %vm630_vm8, %vm631_vm9 }
  0xbe   : > { %v697_v27 = vadd.f32 %v3601_v34, %v686_v13  ;;  %v619_v28 = vmul.f32 %v3155_v6, %v618_v25  ;;  %v626_v29 = vmul.f32 %v3157_v24, %v625_v17 }
  0xc0   : > { %v704_v32 = vpack.c.bf16 %v697_v27, %v696_v44  ;;  %v627_v37 = vmul.f32 0.5, %v626_v29  ;;  %v623_v39 = vsel %vm3659_vm7, %v3155_v6, %v619_v28 }
  0xc1   : > { %2902 = vmatmul.msk.bf16.gmra.mxu2 %vm482_vm0, %v707_v38  ;;  %v676_v46 = vmul.f32 %v623_v39, %v580_v42 }
  0xc2   : > { %2899 = vmatmul.msk.bf16.vlgmr.msra.gmra.mxu0 %vm482_vm0, %v704_v32  ;;  %2903 = vmatmul.msk.bf16.vlgmr.msra.gmra.mxu1 %vm482_vm0, %v704_v32  ;;  %v628_v40 = vsub.f32 1.5, %v627_v37 }
  0xc3   : > { %v687_v50 = vmul.f32 %v3589_v22, %v676_v46 }
  0xc4   : > { %v629_v43 = vmul.f32 %v3157_v24, %v628_v40 }
  0xc5   : > { %v698_v53 = vadd.f32 %v3601_v34, %v687_v50 }
  0xc6   : > { %v633_v48 = vsel %vm632_vm10, %v3157_v24, %v629_v43 }
  0xc7   : > { %v677_v49 = vmul.f32 %v633_v48, %v581_v45 }
  0xc9   : > { %v688_v51 = vmul.f32 %v3589_v22, %v677_v49 }
  0xcb   : > { %v699_v52 = vadd.f32 %v3601_v34, %v688_v51 }
  0xcd   : > { %v705_v54 = vpack.c.bf16 %v699_v52, %v698_v53 }
  0xd2   : > { %2900 = vmatmul.msk.bf16.gmra.mxu0 %vm482_vm0, %v705_v54  ;;  %2904 = vmatmul.msk.bf16.gmra.mxu1 %vm482_vm0, %v705_v54 }
  0xe2   : > { %2905 = vmatmul.msk.bf16.gmra.mxu1 %vm482_vm0, %v3628_v62 }
  0xf2   : > { %2906 = vmatmul.msk.bf16.gmra.mxu1 %vm482_vm0, %v707_v38 }
 0x134   : > { %v787_v23 = vpop.f32.mrf.mxu2 }
 0x13c   : > { %v789_v26 = vpop.f32.mrf.mxu2 }
 0x13d   : > { %v3682_v61 = vpack.c.bf16 %v789_v26, %v787_v23 }
 0x13f   : > { %v777_v11 = vpop.f32.mrf.mxu0  ;;  %v806_v22 = vpop.f32.mrf.mxu1  ;;  %1053 = vrot.lane.b32.xlu2 %v3682_v61, %s3287_s20 }
 0x144   : > { %v792_v34 = vpop.f32.mrf.mxu2 }
 0x147   : > { %v779_v55 = vpop.f32.mrf.mxu0  ;;  %v808_v59 = vpop.f32.mrf.mxu1 }
 0x148   : > { %v3686_v57 = vpack.c.bf16 %v779_v55, %v777_v11  ;;  %v3712_v15 = vpack.c.bf16 %v808_v59, %v806_v22 }
 0x14a   : > { %1049 = vrot.lane.b32.xlu2 %v3686_v57, %s3287_s20 }
 0x14c   : > { %v794_v60 = vpop.f32.mrf.mxu2 }
 0x14d   : > { %v3690_v7 = vpack.c.bf16 %v794_v60, %v792_v34 }
 0x14f   : > { %v782_v62 = vpop.f32.mrf.mxu0  ;;  %v811_v4 = vpop.f32.mrf.mxu1  ;;  %1055 = vrot.lane.b32.xlu1 %v3690_v7, %s3287_s20 }
 0x152   : > { %842 = vrot.lane.b32.xlu2 %v3682_v61, %s3288_s21 }
 0x157   : > { %v784_v31 = vpop.f32.mrf.mxu0  ;;  %v813_v2 = vpop.f32.mrf.mxu1  ;;  %844 = vrot.lane.b32.xlu1 %v3690_v7, %s3288_s21 }
 0x158   : > { %v827_v35 = vpack.c.bf16 %v784_v31, %v782_v62  ;;  %v3709_v9 = vpack.c.bf16 %v813_v2, %v811_v4 }
 0x15a   : > { %838 = vrot.lane.b32.xlu2 %v3686_v57, %s3288_s21  ;;  %1051 = vrot.lane.b32.xlu0 %v827_v35, %s3287_s20 }
 0x15f   : > { %v816_v6 = vpop.f32.mrf.mxu1  ;;  %840 = vrot.lane.b32.xlu1 %v827_v35, %s3288_s21 }
 0x162   : > { %1041 = vrot.lane.b32.xlu0 %v3686_v57, %s3289_s22 }
 0x167   : > { %v818_v3 = vpop.f32.mrf.mxu1  ;;  %1045 = vrot.lane.b32.xlu1 %v3682_v61, %s3289_s22 }
 0x168   : > { %v3706_v14 = vpack.c.bf16 %v818_v3, %v816_v6 }
 0x16a   : > { %1043 = vrot.lane.b32.xlu0 %v827_v35, %s3289_s22 }
 0x16f   : > { %v821_v8 = vpop.f32.mrf.mxu1 }
 0x172   : > { %1047 = vrot.lane.b32.xlu0 %v3690_v7, %s3289_s22 }
 0x177   : > { %v823_v58 = vpop.f32.mrf.mxu1 }
 0x178   : > { %v833_v10 = vpack.c.bf16 %v823_v58, %v821_v8 }
 0x17a   : > { %1212 = vrot.lane.b32.xlu2 %v833_v10, %s3289_s22  ;;  %3113 = vmatpush.bf16.msra.mxu3 %v833_v10 }
 0x17e   : > { %3114 = vmatpush.bf16.msra.mxu3 %v3706_v14 }
 0x182   : > { %3115 = vmatpush.bf16.msra.mxu3 %v3709_v9 }
 0x186   : > { %3116 = vmatpush.bf16.msra.mxu3 %v3712_v15 }
 0x199   : > { %v1054_v16 = vpop.permute.xlu2 %1053 }
 0x19a   : > { %v1076_v20 = vsel %vm846_vm11, %v1054_v16, 0 }
 0x1a4   : > { %v1050_v18 = vpop.permute.xlu2 %1049 }
 0x1a5   : > { %v1070_v17 = vsel %vm846_vm11, %v1050_v18, 0 }
 0x1ac   : > { %v843_v1 = vpop.permute.xlu2 %842 }
 0x1ad   : > { %v866_v12 = vsel %vm846_vm11, %v843_v1, 0 }
 0x1b4   : > { %v839_v56 = vpop.permute.xlu2 %838 }
 0x1b5   : > { %v860_v27 = vsel %vm846_vm11, %v839_v56, 0 }
 0x1c1   : > { %v1056_v63 = vpop.permute.xlu1 %1055 }
 0x1c2   : > { %v1079_v19 = vsel %vm846_vm11, %v1056_v63, 0 }
 0x1c3   : > { %1085 = vmatpush.bf16.xpose.msrb.mxu0 %v1079_v19 }
 0x1c9   : > { %v845_v0 = vpop.permute.xlu1 %844 }
 0x1ca   : > { %v869_v47 = vsel %vm846_vm11, %v845_v0, 0 }
 0x1cb   : > { %875 = vmatpush.bf16.xpose.msrb.mxu2 %v869_v47  ;;  %1086 = vmatpush.bf16.xpose.msrb.mxu0 %v1076_v20 }
 0x1cc   : > { %v1052_v21 = vpop.permute.xlu0 %1051 }
 0x1cd   : > { %v1073_v24 = vsel %vm846_vm11, %v1052_v21, 0 }
 0x1d1   : > { %v841_v13 = vpop.permute.xlu1 %840 }
 0x1d2   : > { %v863_v33 = vsel %vm846_vm11, %v841_v13, 0 }
 0x1d3   : > { %876 = vmatpush.bf16.xpose.msrb.mxu2 %v866_v12  ;;  %1087 = vmatpush.bf16.xpose.msrb.mxu0 %v1073_v24 }
 0x1d4   : > { %v1213_v25 = vpop.permute.xlu2 %1212  ;;  %v1042_v44 = vpop.permute.xlu0 %1041 }
 0x1d5   : > { %3117 = vmatpush.bf16.msrb.mxu1 %v1213_v25 }
 0x1d9   : > { %v1046_v28 = vpop.permute.xlu1 %1045 }
 0x1db   : > { %877 = vmatpush.bf16.xpose.msrb.mxu2 %v863_v33  ;;  %1088 = vmatpush.bf16.xpose.msrb.mxu0 %v1070_v17 }
 0x1dc   : > { %v1044_v5 = vpop.permute.xlu0 %1043 }
 0x1e2   : > { %2915 = vmatmul.msk.bf16.vlgmr.msrb.gmra.mxu0 %vm846_vm11, %v1042_v44 }
 0x1e3   : > { %1234 = vmatpush.bf16.msra.mxu0 %v1213_v25  ;;  %878 = vmatpush.bf16.xpose.msrb.mxu2 %v860_v27 }
 0x1e4   : > { %v1048_v29 = vpop.permute.xlu0 %1047 }
 0x1ea   : > { %2907 = vmatmul.msk.bf16.vlgmr.msrb.gmra.mxu2 %vm846_vm11, %v3686_v57 }
 0x1eb   : > { %1008 = vmatpush.bf16.msra.mxu2 %v833_v10 }
 0x1ef   : > { %1009 = vmatpush.bf16.msra.mxu2 %v3706_v14 }
 0x1f2   : > { %2916 = vmatmul.msk.bf16.gmra.mxu0 %vm846_vm11, %v1044_v5 }
 0x1f3   : > { %1010 = vmatpush.bf16.msra.mxu2 %v3709_v9 }
 0x1f7   : > { %1011 = vmatpush.bf16.msra.mxu2 %v3712_v15 }
 0x1fa   : > { %2908 = vmatmul.msk.bf16.gmra.mxu2 %vm846_vm11, %v827_v35 }
 0x202   : > { %2917 = vmatmul.msk.bf16.gmra.mxu0 %vm846_vm11, %v1046_v28 }
 0x20a   : > { %2909 = vmatmul.msk.bf16.gmra.mxu2 %vm846_vm11, %v3682_v61 }
 0x212   : > { %2918 = vmatmul.msk.bf16.gmra.mxu0 %vm846_vm11, %v1048_v29 }
 0x21a   : > { %2910 = vmatmul.msk.bf16.gmra.mxu2 %vm846_vm11, %v3690_v7 }
 0x25f   : > { %v1090_v30 = vpop.f32.mrf.mxu0 }
 0x260   : > { %v1110_v32 = vsel %vm482_vm0, %v1090_v30, -inf }
 0x261   : > { %1111 = vmax.xlane.f32.xlu2 %v1110_v32 }
 0x267   : > { %v1092_v36 = vpop.f32.mrf.mxu0 }
 0x268   : > { %v1113_v42 = vsel %vm482_vm0, %v1092_v36, -inf }
 0x26d   : > { %v880_v37 = vpop.f32.mrf.mxu2 }
 0x26e   : > { %v900_v38 = vsel %vm482_vm0, %v880_v37, -inf }
 0x26f   : > { %v3739_v39 = vpop.f32.mrf.mxu0  ;;  %901 = vmax.xlane.f32.xlu1 %v900_v38 }
 0x270   : > { %v1116_v49 = vsel %vm482_vm0, %v3739_v39, -inf }
 0x275   : > { %v3741_v40 = vpop.f32.mrf.mxu2 }
 0x276   : > { %v903_v43 = vsel %vm482_vm0, %v3741_v40, -inf }
 0x277   : > { %v1097_v45 = vpop.f32.mrf.mxu0  ;;  %1114 = vmax.xlane.f32.xlu1 %v1113_v42  ;;  %904 = vmax.xlane.f32.xlu0 %v903_v43 }
 0x278   : > { %v1119_v46 = vsel %vm482_vm0, %v1097_v45, -inf }
 0x279   : > { %1120 = vmax.xlane.f32.xlu2 %v1119_v46 }
 0x27d   : > { %v3747_v48 = vpop.f32.mrf.mxu2 }
 0x27e   : > { %v906_v52 = vsel %vm482_vm0, %v3747_v48, -inf }
 0x27f   : > { %v3751_v50 = vpop.f32.mrf.mxu0  ;;  %1117 = vmax.xlane.f32.xlu0 %v1116_v49 }
 0x280   : > { %v1122_v26 = vsel %vm482_vm0, %v3751_v50, -inf }
 0x285   : > { %v3753_v51 = vpop.f32.mrf.mxu2 }
 0x286   : > { %v909_v53 = vsel %vm482_vm0, %v3753_v51, -inf }
 0x287   : > { %v1102_v54 = vpop.f32.mrf.mxu0  ;;  %907 = vmax.xlane.f32.xlu0 %v906_v52  ;;  %910 = vmax.xlane.f32.xlu2 %v909_v53 }
 0x288   : > { %v1125_v23 = vsel %vm482_vm0, %v1102_v54, -inf }
 0x289   : > { %1126 = vmax.xlane.f32.xlu1 %v1125_v23 }
 0x28d   : > { %v3769_v55 = vpop.f32.mrf.mxu2 }
 0x28e   : > { %v912_v57 = vsel %vm482_vm0, %v3769_v55, -inf }
 0x28f   : > { %v1105_v11 = vpop.f32.mrf.mxu0  ;;  %1123 = vmax.xlane.f32.xlu2 %v1122_v26 }
 0x290   : > { %v1128_v61 = vsel %vm482_vm0, %v1105_v11, -inf }
 0x291   : > { %1129 = vmax.xlane.f32.xlu1 %v1128_v61 }
 0x295   : > { %v3802_v5 = vpop.f32.mrf.mxu2 }
 0x296   : > { %v915_v52 = vsel %vm482_vm0, %v3802_v5, -inf }
 0x297   : > { %v3763_v22 = vpop.f32.mrf.mxu0 }
 0x298   : > { %v1131_v34 = vsel %vm482_vm0, %v3763_v22, -inf }
 0x299   : > { %1132 = vmax.xlane.f32.xlu0 %v1131_v34 }
 0x2a7   : > { %1206 = vrot.lane.b32.xlu2 %v3712_v15, %s3289_s22 }
 0x2d0   : > { %913 = vmax.xlane.f32.xlu2 %v912_v57 }
 0x2d4   : > { %v1112_v59 = vpop.xlane.xlu2 %1111 }
 0x2d5   : > { %v1134_v60 = vsub.f32 %v1090_v30, %v1112_v59  ;;  %v3804_v30 = vpop.f32.mrf.mxu2 }
 0x2d7   : > { %v1142_v62 = vmul.f32 1.442695, %v1134_v60 }
 0x2d9   : > { %3158 = vpow2.f32 %v1142_v62 }
 0x2dd   : > { %v3811_v42 = vpop.f32.mrf.mxu2 }
 0x2de   : > { %v921_v43 = vsel %vm482_vm0, %v3811_v42, -inf }
 0x2df   : > { %v3773_v7 = vpop.eup %3158 }
 0x2e0   : > { %v1158_v4 = vsel %vm482_vm0, %v3773_v7, 0.0 }
 0x2e1   : > { %1159 = vadd.xlane.f32.xlu1 %v1158_v4 }
 0x2e2   : > { %v902_v31 = vpop.xlane.xlu1 %901 }
 0x2e3   : > { %v924_v58 = vsub.f32 %v880_v37, %v902_v31 }
 0x2e5   : > { %v932_v15 = vmul.f32 1.442695, %v924_v58 }
 0x2ea   : > { %v1115_v35 = vpop.xlane.xlu1 %1114  ;;  %v905_v12 = vpop.xlane.xlu0 %904 }
 0x2eb   : > { %v1135_v2 = vsub.f32 %v1092_v36, %v1115_v35  ;;  %v925_v49 = vsub.f32 %v3741_v40, %v905_v12  ;;  %v918_v40 = vsel %vm482_vm0, %v3804_v30, -inf }
 0x2ec   : > { %v1121_v6 = vpop.xlane.xlu2 %1120 }
 0x2ed   : > { %v1144_v3 = vmul.f32 1.442695, %v1135_v2  ;;  %v1137_v8 = vsub.f32 %v1097_v45, %v1121_v6 }
 0x2ef   : > { %3160 = vpow2.f32 %v1144_v3  ;;  %v1148_v10 = vmul.f32 1.442695, %v1137_v8 }
 0x2f1   : > { %3162 = vpow2.f32 %v1148_v10 }
 0x2f2   : > { %3164 = vpow2.f32 %v932_v15  ;;  %v1118_v17 = vpop.xlane.xlu0 %1117 }
 0x2f3   : > { %v1136_v27 = vsub.f32 %v3739_v39, %v1118_v17 }
 0x2f5   : > { %v3777_v16 = vpop.eup %3160  ;;  %v1146_v29 = vmul.f32 1.442695, %v1136_v27 }
 0x2f6   : > { %v1161_v18 = vsel %vm482_vm0, %v3777_v16, 0.0 }
 0x2f7   : > { %v3781_v1 = vpop.eup %3162  ;;  %1162 = vadd.xlane.f32.xlu0 %v1161_v18 }
 0x2f8   : > { %v1167_v63 = vsel %vm482_vm0, %v3781_v1, 0.0  ;;  %v3787_v0 = vpop.eup %3164 }
 0x2f9   : > { %1168 = vadd.xlane.f32.xlu2 %v1167_v63  ;;  %v948_v20 = vsel %vm482_vm0, %v3787_v0, 0.0 }
 0x2fa   : > { %1210 = vrot.lane.b32.xlu1 %v3706_v14, %s3289_s22  ;;  %v911_v28 = vpop.xlane.xlu2 %910 }
 0x2fb   : > { %v927_v39 = vsub.f32 %v3753_v51, %v911_v28  ;;  %v934_v51 = vmul.f32 1.442695, %v925_v49 }
 0x2fc   : > { %v1127_v19 = vpop.xlane.xlu1 %1126 }
 0x2fd   : > { %v1139_v56 = vsub.f32 %v1102_v54, %v1127_v19  ;;  %v938_v45 = vmul.f32 1.442695, %v927_v39  ;;  %v908_v54 = vpop.xlane.xlu0 %907 }
 0x2fe   : > { %v926_v23 = vsub.f32 %v3747_v48, %v908_v54 }
 0x2ff   : > { %v1152_v47 = vmul.f32 1.442695, %v1139_v56 }
 0x300   : > { %v936_v61 = vmul.f32 1.442695, %v926_v23 }
 0x301   : > { %3166 = vpow2.f32 %v1152_v47  ;;  %949 = vadd.xlane.f32.xlu2 %v948_v20 }
 0x302   : > { %v1124_v32 = vpop.xlane.xlu2 %1123 }
 0x304   : > { %v1130_v21 = vpop.xlane.xlu1 %1129 }
 0x305   : > { %v1140_v24 = vsub.f32 %v1105_v11, %v1130_v21 }
 0x307   : > { %v3791_v25 = vpop.eup %3166  ;;  %v1154_v13 = vmul.f32 1.442695, %v1140_v24 }
 0x308   : > { %v1173_v33 = vsel %vm482_vm0, %v3791_v25, 0.0 }
 0x309   : > { %3168 = vpow2.f32 %v1154_v13  ;;  %1174 = vadd.xlane.f32.xlu2 %v1173_v33 }
 0x30a   : > { %3170 = vpow2.f32 %v1146_v29  ;;  %v1207_v26 = vpop.permute.xlu2 %1206 }
 0x30b   : > { %1208 = vrot.lane.b32.xlu0 %v3709_v9, %s3289_s22  ;;  %v1138_v9 = vsub.f32 %v3751_v50, %v1124_v32 }
 0x30c   : > { %v1133_v34 = vpop.xlane.xlu0 %1132 }
 0x30d   : > { %v1150_v38 = vmul.f32 1.442695, %v1138_v9  ;;  %v1141_v59 = vsub.f32 %v3763_v22, %v1133_v34 }
 0x30f   : > { %v3797_v14 = vpop.eup %3168  ;;  %3172 = vpow2.f32 %v1150_v38  ;;  %v1156_v31 = vmul.f32 1.442695, %v1141_v59 }
 0x310   : > { %v1176_v44 = vsel %vm482_vm0, %v3797_v14, 0.0  ;;  %v3806_v36 = vpop.eup %3170  ;;  %3174 = vpow2.f32 %v938_v45 }
 0x311   : > { %1177 = vadd.xlane.f32.xlu2 %v1176_v44  ;;  %v1164_v37 = vsel %vm482_vm0, %v3806_v36, 0.0  ;;  %3176 = vpow2.f32 %v934_v51 }
 0x312   : > { %3178 = vpow2.f32 %v936_v61 }
 0x315   : > { %v3816_v46 = vpop.eup %3172 }
 0x316   : > { %v1170_v50 = vsel %vm482_vm0, %v3816_v46, 0.0  ;;  %v3823_v53 = vpop.eup %3174 }
 0x317   : > { %v957_v11 = vsel %vm482_vm0, %v3823_v53, 0.0  ;;  %v3830_v57 = vpop.eup %3176 }
 0x318   : > { %v951_v48 = vsel %vm482_vm0, %v3830_v57, 0.0  ;;  %v3836_v35 = vpop.eup %3178 }
 0x319   : > { %v954_v2 = vsel %vm482_vm0, %v3836_v35, 0.0 }
 0x324   : > { %1165 = vadd.xlane.f32.xlu1 %v1164_v37 }
 0x32c   : > { %922 = vmax.xlane.f32.xlu1 %v921_v43 }
 0x334   : > { %1171 = vadd.xlane.f32.xlu1 %v1170_v50 }
 0x335   : > { %916 = vmax.xlane.f32.xlu0 %v915_v52 }
 0x33c   : > { %958 = vadd.xlane.f32.xlu1 %v957_v11 }
 0x33d   : > { %919 = vmax.xlane.f32.xlu0 %v918_v40 }
 0x343   : > { %v914_v60 = vpop.xlane.xlu2 %913 }
 0x344   : > { %v928_v62 = vsub.f32 %v3769_v55, %v914_v60 }
 0x345   : > { %952 = vadd.xlane.f32.xlu0 %v951_v48 }
 0x346   : > { %v940_v4 = vmul.f32 1.442695, %v928_v62 }
 0x348   : > { %3180 = vpow2.f32 %v940_v4 }
 0x349   : > { %3182 = vpow2.f32 %v1156_v31 }
 0x34d   : > { %955 = vadd.xlane.f32.xlu0 %v954_v2 }
 0x34e   : > { %v3840_v6 = vpop.eup %3180 }
 0x34f   : > { %v960_v22 = vsel %vm482_vm0, %v3840_v6, 0.0  ;;  %v3844_v55 = vpop.eup %3182 }
 0x350   : > { %961 = vadd.xlane.f32.xlu1 %v960_v22  ;;  %v1179_v3 = vsel %vm482_vm0, %v3844_v55, 0.0 }
 0x354   : > { %v1160_v8 = vpop.xlane.xlu1 %1159 }
 0x355   : > { %1180 = vadd.xlane.f32.xlu0 %v1179_v3 }
 0x36a   : > { %v1163_v10 = vpop.xlane.xlu0 %1162 }
 0x36b   : > { %3184 = vrcp.f32 %v1163_v10 }
 0x36c   : > { %v1211_v58 = vpop.permute.xlu1 %1210  ;;  %3186 = vrcp.f32 %v1160_v8  ;;  %v1169_v20 = vpop.xlane.xlu2 %1168 }
 0x36d   : > { %1235 = vmatpush.bf16.msra.mxu0 %v1211_v58  ;;  %3118 = vmatpush.bf16.msrb.mxu1 %v1211_v58  ;;  %3188 = vrcp.f32 %v1169_v20 }
 0x371   : > { %v3185_v15 = vpop.eup %3184 }
 0x372   : > { %v3187_v63 = vpop.eup %3186  ;;  %v1191_v19 = vmul.f32 %v3185_v15, %v3777_v16 }
 0x373   : > { %v1190_v56 = vmul.f32 %v3187_v63, %v3773_v7  ;;  %v3189_v24 = vpop.eup %3188 }
 0x374   : > { %v950_v12 = vpop.xlane.xlu2 %949  ;;  %v1193_v33 = vmul.f32 %v3189_v24, %v3781_v1 }
 0x375   : > { %v1198_v47 = vpack.c.bf16 %v1191_v19, %v1190_v56 }
 0x37c   : > { %v1175_v28 = vpop.xlane.xlu2 %1174 }
 0x37d   : > { %v1209_v18 = vpop.permute.xlu0 %1208 }
 0x37e   : > { %1236 = vmatpush.bf16.msra.mxu0 %v1209_v18  ;;  %3119 = vmatpush.bf16.msrb.mxu1 %v1209_v18 }
 0x382   : > { %1237 = vmatpush.bf16.msra.mxu0 %v1207_v26  ;;  %3120 = vmatpush.bf16.msrb.mxu1 %v1207_v26 }
 0x384   : > { %v1178_v59 = vpop.xlane.xlu2 %1177 }
 0x385   : > { %2919 = vmatmul.msk.bf16.vlgmr.msra.gmra.mxu0 %vm482_vm0, %v1198_v47 }
 0x397   : > { %v1166_v21 = vpop.xlane.xlu1 %1165 }
 0x398   : > { %3190 = vrcp.f32 %v1166_v21 }
 0x39e   : > { %v3191_v13 = vpop.eup %3190 }
 0x39f   : > { %v1192_v17 = vmul.f32 %v3191_v13, %v3806_v36  ;;  %v923_v44 = vpop.xlane.xlu1 %922 }
 0x3a0   : > { %v931_v16 = vsub.f32 %v3811_v42, %v923_v44  ;;  %v3083_v44 = vld [vmem:[%s5393_s4 + $0x10] sm:$0xff] }
 0x3a1   : > { %v1199_v7 = vpack.c.bf16 %v1193_v33, %v1192_v17 }
 0x3a2   : > { %v946_v27 = vmul.f32 1.442695, %v931_v16 }
 0x3a3   : > { %2920 = vmatmul.msk.bf16.vlgmr.msrb.gmra.mxu1 %vm482_vm0, %v1199_v7 }
 0x3a4   : > { %3192 = vpow2.f32 %v946_v27 }
 0x3a5   : > { %3194 = vrcp.f32 %v1175_v28 }
 0x3a7   : > { %v1172_v29 = vpop.xlane.xlu1 %1171 }
 0x3a8   : > { %3196 = vrcp.f32 %v1172_v29  ;;  %v917_v32 = vpop.xlane.xlu0 %916 }
 0x3a9   : > { %v929_v9 = vsub.f32 %v3802_v5, %v917_v32 }
 0x3aa   : > { %v3856_v37 = vpop.eup %3192 }
 0x3ab   : > { %v942_v1 = vmul.f32 1.442695, %v929_v9  ;;  %v969_v36 = vsel %vm482_vm0, %v3856_v37, 0.0  ;;  %v3195_v38 = vpop.eup %3194 }
 0x3ac   : > { %970 = vadd.xlane.f32.xlu1 %v969_v36  ;;  %v1195_v43 = vmul.f32 %v3195_v38, %v3791_v25  ;;  %v3081_v36 = vld [vmem:[%s5393_s4] sm:$0xff] }
 0x3ad   : > { %3198 = vpow2.f32 %v942_v1  ;;  %v3082_v1 = vld [vmem:[%s5393_s4 + $0x8] sm:$0xff] }
 0x3ae   : > { %v3197_v42 = vpop.eup %3196 }
 0x3af   : > { %v1194_v39 = vmul.f32 %v3197_v42, %v3816_v46  ;;  %v959_v26 = vpop.xlane.xlu1 %958 }
 0x3b0   : > { %v920_v45 = vpop.xlane.xlu0 %919 }
 0x3b1   : > { %v930_v49 = vsub.f32 %v3804_v30, %v920_v45  ;;  %v1200_v50 = vpack.c.bf16 %v1195_v43, %v1194_v39 }
 0x3b3   : > { %v3199_v52 = vpop.eup %3198  ;;  %v944_v5 = vmul.f32 1.442695, %v930_v49  ;;  %2921 = vmatmul.msk.bf16.gmra.mxu1 %vm482_vm0, %v1200_v50 }
 0x3b4   : > { %v963_v51 = vsel %vm482_vm0, %v3199_v52, 0.0 }
 0x3b5   : > { %3200 = vpow2.f32 %v944_v5  ;;  %964 = vadd.xlane.f32.xlu2 %v963_v51 }
 0x3b6   : > { %3202 = vrcp.f32 %v950_v12 }
 0x3b8   : > { %v953_v54 = vpop.xlane.xlu0 %952 }
 0x3b9   : > { %3204 = vrcp.f32 %v953_v54 }
 0x3ba   : > { %3206 = vrcp.f32 %v959_v26 }
 0x3bb   : > { %v3201_v23 = vpop.eup %3200 }
 0x3bc   : > { %v966_v46 = vsel %vm482_vm0, %v3201_v23, 0.0  ;;  %v3203_v25 = vpop.eup %3202 }
 0x3bd   : > { %967 = vadd.xlane.f32.xlu0 %v966_v46  ;;  %v980_v30 = vmul.f32 %v3203_v25, %v3787_v0 }
 0x3bf   : > { %v3205_v11 = vpop.eup %3204 }
 0x3c0   : > { %v981_v40 = vmul.f32 %v3205_v11, %v3830_v57  ;;  %v956_v61 = vpop.xlane.xlu0 %955  ;;  %v3207_v60 = vpop.eup %3206 }
 0x3c1   : > { %3208 = vrcp.f32 %v956_v61  ;;  %v983_v31 = vmul.f32 %v3207_v60, %v3823_v53 }
 0x3c2   : > { %v988_v34 = vpack.c.bf16 %v981_v40, %v980_v30  ;;  %3210 = vrcp.f32 %v1178_v59 }
 0x3c4   : > { %2911 = vmatmul.msk.bf16.vlgmr.msra.gmra.mxu2 %vm482_vm0, %v988_v34 }
 0x3c7   : > { %v3209_v62 = vpop.eup %3208 }
 0x3c8   : > { %v1181_v48 = vpop.xlane.xlu0 %1180  ;;  %v982_v4 = vmul.f32 %v3209_v62, %v3836_v35  ;;  %v3211_v0 = vpop.eup %3210 }
 0x3c9   : > { %3212 = vrcp.f32 %v1181_v48  ;;  %v1196_v22 = vmul.f32 %v3211_v0, %v3797_v14  ;;  %v962_v35 = vpop.xlane.xlu1 %961  ;;  %v3922_v48 = vld [vmem:[%s5394_s5] ss:$0 sm:$0xff] }
 0x3ca   : > { %v989_v2 = vpack.c.bf16 %v983_v31, %v982_v4  ;;  %3214 = vrcp.f32 %v962_v35  ;;  %v3270_v31 = vld [vmem:[%s3382_s19] sm:$0xff] }
 0x3cc   : > { %2912 = vmatmul.msk.bf16.vlgmr.msra.gmra.mxu3 %vm482_vm0, %v989_v2 }
 0x3cf   : > { %v3213_v57 = vpop.eup %3212 }
 0x3d0   : > { %v1197_v3 = vmul.f32 %v3213_v57, %v3844_v55  ;;  %v3215_v14 = vpop.eup %3214 }
 0x3d1   : > { %v984_v19 = vmul.f32 %v3215_v14, %v3840_v6  ;;  %v3084_v6 = vld [vmem:[%s5393_s4 + $0x18] sm:$0xff] }
 0x3d2   : > { %v1201_v8 = vpack.c.bf16 %v1197_v3, %v1196_v22  ;;  %1360 = vmatpush.bf16.msrb.mxu3 %v3084_v6 }
 0x3d4   : > { %2922 = vmatmul.msk.bf16.gmra.mxu1 %vm482_vm0, %v1201_v8 }
 0x3d6   : > { %1361 = vmatpush.bf16.msrb.mxu3 %v3083_v44 }
 0x3da   : > { %1362 = vmatpush.bf16.msrb.mxu3 %v3082_v1 }
 0x3de   : > { %1363 = vmatpush.bf16.msrb.mxu3 %v3081_v36 }
 0x402   : > { %v1239_v58 = vpop.f32.mrf.mxu0 }
 0x403   : > { %1267 = vrot.lane.b32.xlu2 %v1239_v58, %s3287_s20  ;;  %v3271_v58 = vld [vmem:[%s3382_s19 + $0x8] sm:$0xff] }
 0x40a   : > { %v1241_v10 = vpop.f32.mrf.mxu0 }
 0x40b   : > { %1269 = vrot.lane.b32.xlu0 %v1241_v10, %s3287_s20 }
 0x41f   : > { %v971_v21 = vpop.xlane.xlu1 %970 }
 0x420   : > { %v1244_v53 = vpop.f32.mrf.mxu1 }
 0x421   : > { %1271 = vrot.lane.b32.xlu1 %v1244_v53, %s3287_s20 }
 0x428   : > { %v1246_v15 = vpop.f32.mrf.mxu1  ;;  %v965_v18 = vpop.xlane.xlu2 %964 }
 0x429   : > { %3216 = vrcp.f32 %v965_v18  ;;  %1273 = vrot.lane.b32.xlu0 %v1246_v15, %s3287_s20 }
 0x42f   : > { %v3217_v55 = vpop.eup %3216 }
 0x430   : > { %v1249_v63 = vpop.f32.mrf.mxu1  ;;  %v985_v56 = vmul.f32 %v3217_v55, %v3199_v52  ;;  %v968_v47 = vpop.xlane.xlu0 %967  ;;  %v3272_v55 = vld [vmem:[%s3382_s19 + $0x10] sm:$0xff] }
 0x431   : > { %1275 = vrot.lane.b32.xlu2 %v1249_v63, %s3287_s20  ;;  %3218 = vrcp.f32 %v968_v47 }
 0x432   : > { %v990_v20 = vpack.c.bf16 %v985_v56, %v984_v19  ;;  %3220 = vrcp.f32 %v971_v21 }
 0x434   : > { %2913 = vmatmul.msk.bf16.gmra.mxu3 %vm482_vm0, %v990_v20 }
 0x437   : > { %v3219_v24 = vpop.eup %3218 }
 0x438   : > { %v1251_v12 = vpop.f32.mrf.mxu1  ;;  %v3221_v13 = vpop.eup %3220  ;;  %v986_v33 = vmul.f32 %v3219_v24, %v3201_v23 }
 0x439   : > { %1277 = vrot.lane.b32.xlu1 %v1251_v12, %s3287_s20  ;;  %v987_v17 = vmul.f32 %v3221_v13, %v3856_v37  ;;  %v3273_v12 = vld [vmem:[%s3382_s19 + $0x18] sm:$0xff] }
 0x43b   : > { %v991_v16 = vpack.c.bf16 %v987_v17, %v986_v33 }
 0x444   : > { %2914 = vmatmul.msk.bf16.gmra.mxu3 %vm482_vm0, %v991_v16  ;;  %v3274_v16 = vld [vmem:[%s3382_s19 + $0x20] sm:$0xff] }
 0x447   : > { %v1013_v7 = vpop.f32.mrf.mxu2 }
 0x448   : > { %1033 = vst.msk [vmem:[#allocation2] sm:$0xff] %vm846_vm11, %v1013_v7 }
 0x44f   : > { %v1015_v27 = vpop.f32.mrf.mxu2  ;;  %v1018_v28 = vpop.f32.mrf.mxu3 }
 0x450   : > { %1034 = vst.msk [vmem:[#allocation2 + $0x8] sm:$0xff] %vm846_vm11, %v1015_v27 }
 0x451   : > { %1035 = vst.msk [vmem:[#allocation2 + $0x10] sm:$0xff] %vm846_vm11, %v1018_v28  ;;  %v1254_v29 = vpop.f32.mrf.mxu1 }
 0x452   : > { %1279 = vrot.lane.b32.xlu0 %v1254_v29, %s3287_s20 }
 0x457   : > { %v1020_v32 = vpop.f32.mrf.mxu3 }
 0x458   : > { %1036 = vst.msk [vmem:[#allocation2 + $0x18] sm:$0xff] %vm846_vm11, %v1020_v32 }
 0x459   : > { %v1256_v9 = vpop.f32.mrf.mxu1 }
 0x45a   : > { %1281 = vrot.lane.b32.xlu2 %v1256_v9, %s3287_s20 }
 0x45d   : > { %v1268_v37 = vpop.permute.xlu2 %1267 }
 0x45e   : > { %1292 = vst.msk [vmem:[#allocation2] sm:$0xff] %vm1291_vm12, %v1268_v37  ;;  %v3275_v37 = vld [vmem:[%s3382_s19 + $0x28] sm:$0xff] }
 0x465   : > { %v1300_v42 = vld [vmem:[#allocation2] sm:$0xff] }
 0x47d   : > { %v1270_v38 = vpop.permute.xlu0 %1269 }
 0x47e   : > { %1293 = vst.msk [vmem:[#allocation2 + $0x8] sm:$0xff] %vm1291_vm12, %v1270_v38 }
 0x485   : > { %v1301_v39 = vld [vmem:[#allocation2 + $0x8] sm:$0xff] }
 0x486   : > { %v1308_v43 = vpack.c.bf16 %v1301_v39, %v1300_v42 }
 0x488   : > { %2939 = vmatmul.msk.bf16.vlgmr.msrb.gmra.mxu3 %vm482_vm0, %v1308_v43 }
 0x48b   : > { %v1276_v54 = vpop.permute.xlu2 %1275 }
 0x493   : > { %v1272_v45 = vpop.permute.xlu1 %1271 }
 0x494   : > { %1294 = vst.msk [vmem:[#allocation2 + $0x10] sm:$0xff] %vm1291_vm12, %v1272_v45  ;;  %v3276_v45 = vld [vmem:[%s3382_s19 + $0x30] sm:$0xff] }
 0x49b   : > { %v1274_v49 = vpop.permute.xlu0 %1273  ;;  %v1302_v50 = vld [vmem:[#allocation2 + $0x10] sm:$0xff] }
 0x49c   : > { %1295 = vst.msk [vmem:[#allocation2 + $0x18] sm:$0xff] %vm1291_vm12, %v1274_v49 }
 0x4a3   : > { %v1303_v52 = vld [vmem:[#allocation2 + $0x18] sm:$0xff] }
 0x4a4   : > { %v1309_v5 = vpack.c.bf16 %v1303_v52, %v1302_v50 }
 0x4a6   : > { %2940 = vmatmul.msk.bf16.gmra.mxu3 %vm482_vm0, %v1309_v5 }
 0x4ab   : > { %v1278_v26 = vpop.permute.xlu1 %1277 }
 0x4b4   : > { %v1282_v34 = vpop.permute.xlu2 %1281 }
 0x4b7   : > { %v1023_v51 = vpop.f32.mrf.mxu3 }
 0x4b8   : > { %1037 = vst.msk [vmem:[#allocation2 + $0x20] sm:$0xff] %vm846_vm11, %v1023_v51 }
 0x4b9   : > { %1296 = vst.msk [vmem:[#allocation2 + $0x20] sm:$0xff] %vm1291_vm12, %v1276_v54 }
 0x4bf   : > { %v1025_v23 = vpop.f32.mrf.mxu3 }
 0x4c0   : > { %1038 = vst.msk [vmem:[#allocation2 + $0x28] sm:$0xff] %vm846_vm11, %v1025_v23  ;;  %v1304_v11 = vld [vmem:[#allocation2 + $0x20] sm:$0xff]  ;;  %v3277_v23 = vld [vmem:[%s3382_s19 + $0x38] sm:$0xff]  ;;  %s5360_s19 = scalar_lea.vmem %s5403_s14, %s2864_s16 }
 0x4c1   : > { %1297 = vst.msk [vmem:[#allocation2 + $0x28] sm:$0xff] %vm1291_vm12, %v1278_v26 }
 0x4c4   : > { %v1280_v25 = vpop.permute.xlu0 %1279 }
 0x4c7   : > { %v1028_v46 = vpop.f32.mrf.mxu3 }
 0x4c8   : > { %1039 = vst.msk [vmem:[#allocation2 + $0x30] sm:$0xff] %vm846_vm11, %v1028_v46  ;;  %v1305_v30 = vld [vmem:[#allocation2 + $0x28] sm:$0xff] }
 0x4c9   : > { %1298 = vst.msk [vmem:[#allocation2 + $0x30] sm:$0xff] %vm1291_vm12, %v1280_v25  ;;  %v1310_v40 = vpack.c.bf16 %v1305_v30, %v1304_v11 }
 0x4cb   : > { %2941 = vmatmul.msk.bf16.gmra.mxu3 %vm482_vm0, %v1310_v40  ;;  %v2969_v40 = vld [vmem:[%s5397_s8 + $0x30] sm:$0xf] }
 0x4cf   : > { %v1030_v61 = vpop.f32.mrf.mxu3 }
 0x4d0   : > { %1040 = vst.msk [vmem:[#allocation2 + $0x38] sm:$0xff] %vm846_vm11, %v1030_v61  ;;  %v1306_v59 = vld [vmem:[#allocation2 + $0x30] sm:$0xff]  ;;  %v3092_v61 = vld [vmem:[%s5397_s8 + $0x34] sm:$0xf0] }
 0x4d1   : > { %1299 = vst.msk [vmem:[#allocation2 + $0x38] sm:$0xff] %vm1291_vm12, %v1282_v34  ;;  %v3091_v34 = vld [vmem:[%s5397_s8 + $0x34] sm:$0xf] }
 0x4d8   : > { %v1307_v60 = vld [vmem:[#allocation2 + $0x38] sm:$0xff] }
 0x4d9   : > { %v1311_v62 = vpack.c.bf16 %v1307_v60, %v1306_v59  ;;  %v2970_v59 = vor.u32 %v3092_v61, %v2969_v40  ;;  %v2971_v60 = vld [vmem:[%s5397_s8 + $0x38] sm:$0xf0] }
 0x4db   : > { %2942 = vmatmul.msk.bf16.gmra.mxu3 %vm482_vm0, %v1311_v62  ;;  %v2974_v62 = vor.u32 %v3091_v34, %v2971_v60  ;;  %1695 = vmatpush.bf16.msrb.mxu2 %v2970_v59 }
 0x4dd   : > { %1724 = vmatpush.bf16.msrb.mxu0 %v2974_v62 }
 0x50b   : > { %v1365_v4 = vpop.f32.mrf.mxu3 }
 0x50c   : > { %v1385_v2 = vadd.f32 %v3270_v31, %v1365_v4  ;;  %v2961_v4 = vld [vmem:[%s5397_s8 + $0x20] sm:$0xf]  ;;  %v3090_v31 = vld [vmem:[%s5397_s8 + $0x24] sm:$0xf0] }
 0x50e   : > { %v3926_v0 = vadd.f32 %v3922_v48, %v1385_v2  ;;  %v3089_v2 = vld [vmem:[%s5397_s8 + $0x24] sm:$0xf] }
 0x510   : > { %5491 = vst [vmem:[#allocation3_spill] sm:$0xff] %v3926_v0  ;;  %v1407_v57 = vsel %vm482_vm0, %v3926_v0, 0.0  ;;  %v1439_v22 = vmul.f32 %v3926_v0, %v3926_v0 }
 0x511   : > { %1408 = vadd.xlane.f32.xlu1 %v1407_v57 }
 0x512   : > { %v1447_v3 = vsel %vm482_vm0, %v1439_v22, 0.0  ;;  %v2962_v22 = vor.u32 %v3090_v31, %v2961_v4 }
 0x513   : > { %1448 = vadd.xlane.f32.xlu2 %v1447_v3  ;;  %v1367_v8 = vpop.f32.mrf.mxu3  ;;  %v2963_v3 = vld [vmem:[%s5397_s8 + $0x28] sm:$0xf0] }
 0x514   : > { %v1386_v10 = vadd.f32 %v3271_v58, %v1367_v8  ;;  %v2966_v58 = vor.u32 %v3089_v2, %v2963_v3  ;;  %1696 = vmatpush.bf16.msrb.mxu2 %v2962_v22  ;;  %v4061_v2 = vld [vmem:[%s5396_s7] ss:$0 sm:$0xff] }
 0x516   : > { %v3935_v53 = vadd.f32 %v3922_v48, %v1386_v10  ;;  %1725 = vmatpush.bf16.msrb.mxu0 %v2966_v58 }
 0x518   : > { %5492 = vst [vmem:[#allocation4_spill] sm:$0xff] %v3935_v53  ;;  %v1410_v35 = vsel %vm482_vm0, %v3935_v53, 0.0  ;;  %v1440_v15 = vmul.f32 %v3935_v53, %v3935_v53 }
 0x519   : > { %1411 = vadd.xlane.f32.xlu0 %v1410_v35 }
 0x51a   : > { %v1450_v18 = vsel %vm482_vm0, %v1440_v15, 0.0  ;;  %v2953_v15 = vld [vmem:[%s5397_s8 + $0x10] sm:$0xf] }
 0x51b   : > { %1451 = vadd.xlane.f32.xlu1 %v1450_v18  ;;  %v3088_v18 = vld [vmem:[%s5397_s8 + $0x14] sm:$0xf0] }
 0x529   : > { %v1370_v14 = vpop.f32.mrf.mxu3 }
 0x52a   : > { %v1387_v63 = vadd.f32 %v3272_v55, %v1370_v14  ;;  %v3087_v14 = vld [vmem:[%s5397_s8 + $0x14] sm:$0xf] }
 0x52c   : > { %v3944_v19 = vadd.f32 %v3922_v48, %v1387_v63  ;;  %v2954_v63 = vor.u32 %v3088_v18, %v2953_v15 }
 0x52e   : > { %5493 = vst [vmem:[#allocation5_spill] sm:$0xff] %v3944_v19  ;;  %v1413_v56 = vsel %vm482_vm0, %v3944_v19, 0.0  ;;  %v1441_v47 = vmul.f32 %v3944_v19, %v3944_v19  ;;  %1697 = vmatpush.bf16.msrb.mxu2 %v2954_v63 }
 0x52f   : > { %1414 = vadd.xlane.f32.xlu0 %v1413_v56  ;;  %v2955_v56 = vld [vmem:[%s5397_s8 + $0x18] sm:$0xf0] }
 0x530   : > { %v1453_v20 = vsel %vm482_vm0, %v1441_v47, 0.0  ;;  %v2958_v47 = vor.u32 %v3087_v14, %v2955_v56 }
 0x531   : > { %1454 = vadd.xlane.f32.xlu1 %v1453_v20  ;;  %v1372_v21 = vpop.f32.mrf.mxu3 }
 0x532   : > { %v1388_v24 = vadd.f32 %v3273_v12, %v1372_v21  ;;  %1726 = vmatpush.bf16.msrb.mxu0 %v2958_v47  ;;  %v2945_v12 = vld [vmem:[%s5397_s8] sm:$0xf] }
 0x534   : > { %v3953_v13 = vadd.f32 %v3922_v48, %v1388_v24  ;;  %v3086_v24 = vld [vmem:[%s5397_s8 + $0x4] sm:$0xf0] }
 0x536   : > { %5494 = vst [vmem:[#allocation6_spill] sm:$0xff] %v3953_v13  ;;  %v1416_v33 = vsel %vm482_vm0, %v3953_v13, 0.0  ;;  %v1442_v6 = vmul.f32 %v3953_v13, %v3953_v13 }
 0x537   : > { %1417 = vadd.xlane.f32.xlu2 %v1416_v33  ;;  %v3085_v33 = vld [vmem:[%s5397_s8 + $0x4] sm:$0xf] }
 0x538   : > { %v1456_v17 = vsel %vm482_vm0, %v1442_v6, 0.0 }
 0x539   : > { %1457 = vadd.xlane.f32.xlu0 %v1456_v17  ;;  %v2946_v17 = vor.u32 %v3086_v24, %v2945_v12 }
 0x53b   : > { %1698 = vmatpush.bf16.msrb.mxu2 %v2946_v17 }
 0x54e   : > { %v1375_v44 = vpop.f32.mrf.mxu3 }
 0x54f   : > { %v1389_v7 = vadd.f32 %v3274_v16, %v1375_v44  ;;  %v2947_v44 = vld [vmem:[%s5397_s8 + $0x8] sm:$0xf0] }
 0x551   : > { %v3962_v27 = vadd.f32 %v3922_v48, %v1389_v7  ;;  %v2950_v7 = vor.u32 %v3085_v33, %v2947_v44 }
 0x553   : > { %5495 = vst [vmem:[#allocation7_spill] sm:$0xff] %v3962_v27  ;;  %v1419_v28 = vsel %vm482_vm0, %v3962_v27, 0.0  ;;  %v1443_v29 = vmul.f32 %v3962_v27, %v3962_v27  ;;  %1727 = vmatpush.bf16.msrb.mxu0 %v2950_v7 }
 0x554   : > { %1420 = vadd.xlane.f32.xlu2 %v1419_v28 }
 0x555   : > { %v1459_v32 = vsel %vm482_vm0, %v1443_v29, 0.0 }
 0x556   : > { %1460 = vadd.xlane.f32.xlu0 %v1459_v32  ;;  %v1377_v9 = vpop.f32.mrf.mxu3 }
 0x557   : > { %v1390_v1 = vadd.f32 %v3275_v37, %v1377_v9 }
 0x559   : > { %v3971_v36 = vadd.f32 %v3922_v48, %v1390_v1 }
 0x55b   : > { %5496 = vst [vmem:[#allocation8_spill] sm:$0xff] %v3971_v36  ;;  %v1422_v38 = vsel %vm482_vm0, %v3971_v36, 0.0  ;;  %v1444_v42 = vmul.f32 %v3971_v36, %v3971_v36 }
 0x55c   : > { %1423 = vadd.xlane.f32.xlu1 %v1422_v38 }
 0x55d   : > { %v1462_v39 = vsel %vm482_vm0, %v1444_v42, 0.0 }
 0x55e   : > { %1463 = vadd.xlane.f32.xlu2 %v1462_v39  ;;  %v1380_v43 = vpop.f32.mrf.mxu3 }
 0x55f   : > { %v1391_v49 = vadd.f32 %v3276_v45, %v1380_v43 }
 0x561   : > { %v3980_v50 = vadd.f32 %v3922_v48, %v1391_v49 }
 0x563   : > { %5497 = vst [vmem:[#allocation9_spill] sm:$0xff] %v3980_v50  ;;  %v1425_v52 = vsel %vm482_vm0, %v3980_v50, 0.0  ;;  %v1445_v5 = vmul.f32 %v3980_v50, %v3980_v50 }
 0x564   : > { %1426 = vadd.xlane.f32.xlu1 %v1425_v52 }
 0x565   : > { %v1465_v51 = vsel %vm482_vm0, %v1445_v5, 0.0 }
 0x566   : > { %1466 = vadd.xlane.f32.xlu2 %v1465_v51  ;;  %v1382_v54 = vpop.f32.mrf.mxu3 }
 0x567   : > { %v1392_v26 = vadd.f32 %v3277_v23, %v1382_v54 }
 0x569   : > { %v3989_v46 = vadd.f32 %v3922_v48, %v1392_v26 }
 0x56b   : > { %5498 = vst [vmem:[#allocation10_spill] sm:$0xff] %v3989_v46  ;;  %v1428_v25 = vsel %vm482_vm0, %v3989_v46, 0.0  ;;  %v1446_v11 = vmul.f32 %v3989_v46, %v3989_v46 }
 0x56c   : > { %1429 = vadd.xlane.f32.xlu0 %v1428_v25  ;;  %v4052_v25 = vld [vmem:[%s5395_s6] ss:$0 sm:$0xff] }
 0x56d   : > { %v1468_v30 = vsel %vm482_vm0, %v1446_v11, 0.0 }
 0x56e   : > { %1469 = vadd.xlane.f32.xlu1 %v1468_v30 }
 0x584   : > { %v1409_v48 = vpop.xlane.xlu1 %1408 }
 0x585   : > { %v1431_v57 = vmul.f32 %v1409_v48, %v3454_v41 }
 0x586   : > { %v1449_v8 = vpop.xlane.xlu2 %1448 }
 0x587   : > { %v1479_v10 = vmul.f32 %v1431_v57, %v1431_v57  ;;  %v1471_v35 = vmul.f32 %v1449_v8, %v3454_v41  ;;  %v1495_v54 = vsub.f32 %v3926_v0, %v1431_v57 }
 0x589   : > { %v1487_v55 = vsub.f32 %v1471_v35, %v1479_v10 }
 0x58b   : > { %v1503_v20 = vadd.f32 1e-05, %v1487_v55 }
 0x58c   : > { %v1412_v21 = vpop.xlane.xlu0 %1411 }
 0x58d   : > { %3222 = vrsqrt.f32 %v1503_v20  ;;  %v1432_v6 = vmul.f32 %v1412_v21, %v3454_v41  ;;  %vm1517_vm14 = vweird.f32 %v1503_v20 }
 0x58e   : > { %v1452_v16 = vpop.xlane.xlu1 %1451 }
 0x58f   : > { %v1480_v28 = vmul.f32 %v1432_v6, %v1432_v6  ;;  %v1472_v29 = vmul.f32 %v1452_v16, %v3454_v41  ;;  %v1496_v34 = vsub.f32 %v3935_v53, %v1432_v6 }
 0x591   : > { %v1488_v32 = vsub.f32 %v1472_v29, %v1480_v28 }
 0x593   : > { %v3223_v9 = vpop.eup %3222  ;;  %v1504_v37 = vadd.f32 1e-05, %v1488_v32 }
 0x594   : > { %v1512_v1 = vmul.f32 %v3223_v9, %v1503_v20  ;;  %vm1518_vm13 = vweird.f32 %v3223_v9 }
 0x595   : > { %3224 = vrsqrt.f32 %v1504_v37  ;;  %vm1519_vm15 = vmor %vm1517_vm14, %vm1518_vm13  ;;  %vm1527_vm2 = vweird.f32 %v1504_v37 }
 0x596   : > { %v1513_v38 = vmul.f32 %v3223_v9, %v1512_v1 }
 0x598   : > { %v1514_v42 = vmul.f32 0.5, %v1513_v38 }
 0x59a   : > { %v1515_v39 = vsub.f32 1.5, %v1514_v42 }
 0x59b   : > { %v3225_v43 = vpop.eup %3224 }
 0x59c   : > { %v1516_v45 = vmul.f32 %v3223_v9, %v1515_v39  ;;  %v1522_v49 = vmul.f32 %v3225_v43, %v1504_v37  ;;  %vm1528_vm1 = vweird.f32 %v3225_v43 }
 0x59d   : > { %vm1529_vm3 = vmor %vm1527_vm2, %vm1528_vm1 }
 0x59e   : > { %v1523_v52 = vmul.f32 %v3225_v43, %v1522_v49  ;;  %v1520_v5 = vsel %vm1519_vm15, %v3223_v9, %v1516_v45 }
 0x59f   : > { %v1591_v11 = vmul.f32 %v1520_v5, %v1495_v54 }
 0x5a0   : > { %v1524_v51 = vmul.f32 0.5, %v1523_v52 }
 0x5a1   : > { %v1602_v48 = vmul.f32 %v4052_v25, %v1591_v11 }
 0x5a2   : > { %v1525_v23 = vsub.f32 1.5, %v1524_v51  ;;  %v1415_v26 = vpop.xlane.xlu0 %1414 }
 0x5a3   : > { %v1433_v30 = vmul.f32 %v1415_v26, %v3454_v41  ;;  %v1613_v58 = vadd.f32 %v4061_v2, %v1602_v48 }
 0x5a4   : > { %v1526_v40 = vmul.f32 %v3225_v43, %v1525_v23  ;;  %v1455_v61 = vpop.xlane.xlu1 %1454 }
 0x5a5   : > { %v1481_v59 = vmul.f32 %v1433_v30, %v1433_v30  ;;  %v1473_v60 = vmul.f32 %v1455_v61, %v3454_v41  ;;  %v1497_v7 = vsub.f32 %v3944_v19, %v1433_v30 }
 0x5a6   : > { %v1530_v62 = vsel %vm1529_vm3, %v3225_v43, %v1526_v40 }
 0x5a7   : > { %v1592_v4 = vmul.f32 %v1530_v62, %v1496_v34  ;;  %v1489_v31 = vsub.f32 %v1473_v60, %v1481_v59 }
 0x5a9   : > { %v1603_v57 = vmul.f32 %v4052_v25, %v1592_v4  ;;  %v1505_v22 = vadd.f32 1e-05, %v1489_v31 }
 0x5aa   : > { %v1418_v3 = vpop.xlane.xlu2 %1417 }
 0x5ab   : > { %3226 = vrsqrt.f32 %v1505_v22  ;;  %v1434_v8 = vmul.f32 %v1418_v3, %v3454_v41  ;;  %v1614_v10 = vadd.f32 %v4061_v2, %v1603_v57  ;;  %vm1537_vm5 = vweird.f32 %v1505_v22 }
 0x5ac   : > { %v1458_v35 = vpop.xlane.xlu0 %1457 }
 0x5ad   : > { %v1482_v15 = vmul.f32 %v1434_v8, %v1434_v8  ;;  %v1474_v18 = vmul.f32 %v1458_v35, %v3454_v41  ;;  %v1621_v14 = vpack.c.bf16 %v1614_v10, %v1613_v58  ;;  %v1498_v9 = vsub.f32 %v3953_v13, %v1434_v8 }
 0x5af   : > { %v1490_v55 = vsub.f32 %v1474_v18, %v1482_v15  ;;  %2975 = vmatmul.msk.bf16.vlgmr.msrb.gmra.mxu2 %vm482_vm0, %v1621_v14  ;;  %2979 = vmatmul.msk.bf16.vlgmr.msrb.gmra.mxu0 %vm482_vm0, %v1621_v14 }
 0x5b1   : > { %v3227_v63 = vpop.eup %3226  ;;  %v1506_v56 = vadd.f32 1e-05, %v1490_v55 }
 0x5b2   : > { %v1532_v47 = vmul.f32 %v3227_v63, %v1505_v22  ;;  %vm1538_vm4 = vweird.f32 %v3227_v63 }
 0x5b3   : > { %3228 = vrsqrt.f32 %v1506_v56  ;;  %vm1539_vm6 = vmor %vm1537_vm5, %vm1538_vm4  ;;  %vm1547_vm8 = vweird.f32 %v1506_v56 }
 0x5b4   : > { %v1533_v20 = vmul.f32 %v3227_v63, %v1532_v47 }
 0x5b6   : > { %v1534_v21 = vmul.f32 0.5, %v1533_v20 }
 0x5b8   : > { %v1535_v12 = vsub.f32 1.5, %v1534_v21 }
 0x5b9   : > { %v3229_v24 = vpop.eup %3228 }
 0x5ba   : > { %v1536_v33 = vmul.f32 %v3227_v63, %v1535_v12  ;;  %v1542_v6 = vmul.f32 %v3229_v24, %v1506_v56  ;;  %vm1548_vm7 = vweird.f32 %v3229_v24 }
 0x5bb   : > { %vm1549_vm9 = vmor %vm1547_vm8, %vm1548_vm7 }
 0x5bc   : > { %v1543_v17 = vmul.f32 %v3229_v24, %v1542_v6  ;;  %v1540_v44 = vsel %vm1539_vm6, %v3227_v63, %v1536_v33 }
 0x5bd   : > { %v1593_v29 = vmul.f32 %v1540_v44, %v1497_v7 }
 0x5be   : > { %v1544_v16 = vmul.f32 0.5, %v1543_v17 }
 0x5bf   : > { %v1604_v38 = vmul.f32 %v4052_v25, %v1593_v29 }
 0x5c0   : > { %v1545_v28 = vsub.f32 1.5, %v1544_v16 }
 0x5c1   : > { %v1615_v49 = vadd.f32 %v4061_v2, %v1604_v38 }
 0x5c2   : > { %v1546_v32 = vmul.f32 %v3229_v24, %v1545_v28 }
 0x5c4   : > { %v1550_v37 = vsel %vm1549_vm9, %v3229_v24, %v1546_v32 }
 0x5c5   : > { %v1594_v1 = vmul.f32 %v1550_v37, %v1498_v9 }
 0x5c7   : > { %v1421_v42 = vpop.xlane.xlu2 %1420  ;;  %v1605_v39 = vmul.f32 %v4052_v25, %v1594_v1 }
 0x5c8   : > { %v1435_v43 = vmul.f32 %v1421_v42, %v3454_v41 }
 0x5c9   : > { %v1461_v45 = vpop.xlane.xlu0 %1460  ;;  %v1616_v52 = vadd.f32 %v4061_v2, %v1605_v39 }
 0x5ca   : > { %v1483_v5 = vmul.f32 %v1435_v43, %v1435_v43  ;;  %v1475_v51 = vmul.f32 %v1461_v45, %v3454_v41  ;;  %v1499_v6 = vsub.f32 %v3962_v27, %v1435_v43 }
 0x5cb   : > { %v1622_v54 = vpack.c.bf16 %v1616_v52, %v1615_v49 }
 0x5cc   : > { %v1491_v23 = vsub.f32 %v1475_v51, %v1483_v5 }
 0x5cd   : > { %2976 = vmatmul.msk.bf16.gmra.mxu2 %vm482_vm0, %v1622_v54  ;;  %2980 = vmatmul.msk.bf16.gmra.mxu0 %vm482_vm0, %v1622_v54 }
 0x5ce   : > { %v1507_v26 = vadd.f32 1e-05, %v1491_v23 }
 0x5cf   : > { %v1424_v11 = vpop.xlane.xlu1 %1423 }
 0x5d0   : > { %3230 = vrsqrt.f32 %v1507_v26  ;;  %v1436_v30 = vmul.f32 %v1424_v11, %v3454_v41  ;;  %vm1557_vm11 = vweird.f32 %v1507_v26 }
 0x5d1   : > { %v1464_v40 = vpop.xlane.xlu2 %1463 }
 0x5d2   : > { %v1484_v61 = vmul.f32 %v1436_v30, %v1436_v30  ;;  %v1476_v34 = vmul.f32 %v1464_v40, %v3454_v41  ;;  %v1500_v9 = vsub.f32 %v3971_v36, %v1436_v30 }
 0x5d4   : > { %v1492_v59 = vsub.f32 %v1476_v34, %v1484_v61 }
 0x5d6   : > { %v3231_v60 = vpop.eup %3230  ;;  %v1508_v62 = vadd.f32 1e-05, %v1492_v59 }
 0x5d7   : > { %v1552_v48 = vmul.f32 %v3231_v60, %v1507_v26  ;;  %v1427_v4 = vpop.xlane.xlu1 %1426  ;;  %vm1558_vm10 = vweird.f32 %v3231_v60 }
 0x5d8   : > { %3232 = vrsqrt.f32 %v1508_v62  ;;  %v1437_v31 = vmul.f32 %v1427_v4, %v3454_v41  ;;  %vm1559_vm12 = vmor %vm1557_vm11, %vm1558_vm10  ;;  %vm1567_vm14 = vweird.f32 %v1508_v62 }
 0x5d9   : > { %v1553_v57 = vmul.f32 %v3231_v60, %v1552_v48  ;;  %v1467_v22 = vpop.xlane.xlu2 %1466 }
 0x5da   : > { %v1485_v3 = vmul.f32 %v1437_v31, %v1437_v31  ;;  %v1477_v8 = vmul.f32 %v1467_v22, %v3454_v41  ;;  %v1501_v30 = vsub.f32 %v3980_v50, %v1437_v31  ;;  %v1749_v31 = vlaneseq }
 0x5db   : > { %v1554_v58 = vmul.f32 0.5, %v1553_v57 }
 0x5dc   : > { %v1493_v10 = vsub.f32 %v1477_v8, %v1485_v3  ;;  %v3005_v8 = vld [vmem:[%s5399_s10 + $0xe] sm:$0x3] }
 0x5dd   : > { %v1555_v35 = vsub.f32 1.5, %v1554_v58  ;;  %v4105_v58 = vshrl.u32 %v1749_v31, 7 }
 0x5de   : > { %v3233_v15 = vpop.eup %3232  ;;  %v1509_v18 = vadd.f32 1e-05, %v1493_v10 }
 0x5df   : > { %v1556_v14 = vmul.f32 %v3231_v60, %v1555_v35  ;;  %v1562_v55 = vmul.f32 %v3233_v15, %v1508_v62  ;;  %v1430_v63 = vpop.xlane.xlu0 %1429  ;;  %vm1568_vm13 = vweird.f32 %v3233_v15  ;;  %v1751_v10 = vadd.s32 8, %v4105_v58 }
 0x5e0   : > { %3234 = vrsqrt.f32 %v1509_v18  ;;  %v1438_v56 = vmul.f32 %v1430_v63, %v3454_v41  ;;  %vm1569_vm15 = vmor %vm1567_vm14, %vm1568_vm13  ;;  %vm1577_vm2 = vweird.f32 %v1509_v18  ;;  %v4114_v35 = vperm.slane %v3005_v8, 1 }
 0x5e1   : > { %v1563_v47 = vmul.f32 %v3233_v15, %v1562_v55  ;;  %v1470_v20 = vpop.xlane.xlu1 %1469  ;;  %v1560_v24 = vsel %vm1559_vm12, %v3231_v60, %v1556_v14  ;;  %v1752_v14 = vadd.s32 16, %v4105_v58  ;;  %v1758_v55 = vand.u32 7, %v4105_v58 }
 0x5e2   : > { %v1486_v21 = vmul.f32 %v1438_v56, %v1438_v56  ;;  %v1478_v12 = vmul.f32 %v1470_v20, %v3454_v41  ;;  %v1595_v28 = vmul.f32 %v1560_v24, %v1499_v6  ;;  %v1502_v59 = vsub.f32 %v3989_v46, %v1438_v56 }
 0x5e3   : > { %v1564_v33 = vmul.f32 0.5, %v1563_v47  ;;  %v1759_v47 = vand.u32 7, %v1751_v10  ;;  %v4133_v24 = vmul.f32 0.0, %v4114_v35  ;;  %vm4145_vm7 = vcmp.ge.s32.totalorder %v1758_v55, 1 }
 0x5e4   : > { %v1494_v17 = vsub.f32 %v1478_v12, %v1486_v21  ;;  %v1606_v38 = vmul.f32 %v4052_v25, %v1595_v28  ;;  %vm1838_vm9 = vcmp.lt.s32.totalorder %v1758_v55, 7  ;;  %vm2073_vm12 = vcmp.lt.s32.totalorder %v4105_v58, 7 }
 0x5e5   : > { %v1565_v44 = vsub.f32 1.5, %v1564_v33  ;;  %v4135_v33 = vperm.slane %v3005_v8, 0  ;;  %vm1815_vm8 = vcmp.ge.s32.totalorder %v1759_v47, 1  ;;  %vm1839_vm10 = vcmp.lt.s32.totalorder %v1759_v47, 7 }
 0x5e6   : > { %v3235_v16 = vpop.eup %3234  ;;  %v1510_v7 = vadd.f32 1e-05, %v1494_v17  ;;  %v1617_v49 = vadd.f32 %v4061_v2, %v1606_v38  ;;  %v1948_v38 = vld [vmem:[%s5399_s10] sm:$0x3]  ;;  %vm1923_vm14 = vcmp.lt.s32.totalorder %v4105_v58, 1 }
 0x5e7   : > { %v1566_v29 = vmul.f32 %v3233_v15, %v1565_v44  ;;  %v1572_v32 = vmul.f32 %v3235_v16, %v1509_v18  ;;  %vm1578_vm1 = vweird.f32 %v3235_v16  ;;  %v3000_v18 = vld [vmem:[%s5399_s10 + $0x2] sm:$0x3]  ;;  %v4227_v8 = vperm.slane %v1948_v38, 0 }
 0x5e8   : > { %3236 = vrsqrt.f32 %v1510_v7  ;;  %vm1579_vm3 = vmor %vm1577_vm2, %vm1578_vm1  ;;  %vm1587_vm5 = vweird.f32 %v1510_v7  ;;  %v4130_v12 = vperm.slane %v3000_v18, 1 }
 0x5e9   : > { %v1570_v37 = vsel %vm1569_vm15, %v3233_v15, %v1566_v29  ;;  %v1573_v1 = vmul.f32 %v3235_v16, %v1572_v32  ;;  %v1885_v15 = vld [vmem:[%s5400_s11] sm:$0x3]  ;;  %v3001_v29 = vld [vmem:[%s5399_s10 + $0x4] sm:$0x3]  ;;  %v3002_v32 = vld [vmem:[%s5399_s10 + $0x6] sm:$0x3] }
 0x5ea   : > { %v1596_v41 = vmul.f32 %v1570_v37, %v1500_v9  ;;  %v4128_v21 = vperm.slane %v1885_v15, 1  ;;  %v4141_v44 = vperm.slane %v1885_v15, 0  ;;  %v3003_v9 = vld [vmem:[%s5399_s10 + $0xa] sm:$0x3]  ;;  %v4159_v37 = vadd.s32 56, %v4105_v58  ;;  %5518 = vst [vmem:[#allocation28_spill] sm:$0xff] %v4227_v8 }
 0x5eb   : > { %v1574_v42 = vmul.f32 0.5, %v1573_v1  ;;  %v4162_v1 = vmul.f32 0.0, %v4135_v33 }
 0x5ec   : > { %v1607_v39 = vmul.f32 %v4052_v25, %v1596_v41  ;;  %5504 = vst [vmem:[#allocation14_spill] sm:$0xff] %v4159_v37  ;;  %v3004_v41 = vld [vmem:[%s5399_s10 + $0xc] sm:$0x3] }
 0x5ed   : > { %v1575_v43 = vsub.f32 1.5, %v1574_v42  ;;  %v4171_v42 = vadd.s32 24, %v4105_v58  ;;  %v4225_v31 = vperm.slane %v3004_v41, 0 }
 0x5ee   : > { %v3237_v45 = vpop.eup %3236  ;;  %v1618_v52 = vadd.f32 %v4061_v2, %v1607_v39  ;;  %v4173_v39 = vperm.slane %v3001_v29, 1 }
 0x5ef   : > { %v1576_v5 = vmul.f32 %v3235_v16, %v1575_v43  ;;  %v1582_v51 = vmul.f32 %v3237_v45, %v1510_v7  ;;  %vm1588_vm4 = vweird.f32 %v3237_v45  ;;  %v4143_v7 = vperm.slane %v3000_v18, 0  ;;  %5517 = vst [vmem:[#allocation27_spill] sm:$0xff] %v4225_v31 }
 0x5f0   : > { %v1623_v54 = vpack.c.bf16 %v1618_v52, %v1617_v49  ;;  %vm1589_vm6 = vmor %vm1587_vm5, %vm1588_vm4  ;;  %5505 = vst [vmem:[#allocation15_spill] sm:$0xff] %v4173_v39  ;;  %v4175_v43 = vperm.slane %v3002_v32, 1 }
 0x5f1   : > { %v1583_v23 = vmul.f32 %v3237_v45, %v1582_v51  ;;  %v1580_v26 = vsel %vm1579_vm3, %v3235_v16, %v1576_v5  ;;  %v1760_v16 = vand.u32 7, %v1752_v14 }
 0x5f2   : > { %2977 = vmatmul.msk.bf16.gmra.mxu2 %vm482_vm0, %v1623_v54  ;;  %2981 = vmatmul.msk.bf16.gmra.mxu0 %vm482_vm0, %v1623_v54  ;;  %v1597_v61 = vmul.f32 %v1580_v26, %v1501_v30  ;;  %5506 = vst [vmem:[#allocation16_spill] sm:$0xff] %v4175_v43  ;;  %v3006_v54 = vld [vmem:[%s5399_s10 + $0x10] sm:$0x3]  ;;  %v4194_v26 = vperm.slane %v3003_v9, 1  ;;  %v4198_v30 = vperm.slane %v1948_v38, 1 }
 0x5f3   : > { %v1584_v11 = vmul.f32 0.5, %v1583_v23  ;;  %vm1816_vm11 = vcmp.ge.s32.totalorder %v1760_v16, 1  ;;  %vm1840_vm13 = vcmp.lt.s32.totalorder %v1760_v16, 7  ;;  %v4244_v14 = vperm.slane %v3006_v54, 0 }
 0x5f4   : > { %v1608_v48 = vmul.f32 %v4052_v25, %v1597_v61  ;;  %5510 = vst [vmem:[#allocation20_spill] sm:$0xff] %v4194_v26 }
 0x5f5   : > { %v1585_v40 = vsub.f32 1.5, %v1584_v11  ;;  %v4196_v11 = vperm.slane %v3004_v41, 1  ;;  %5519 = vst [vmem:[#allocation29_spill] sm:$0xff] %v4244_v14  ;;  %v4295_v41 = vadd.s32 32, %v4105_v58 }
 0x5f6   : > { %v1619_v57 = vadd.f32 %v4061_v2, %v1608_v48 }
 0x5f7   : > { %v1586_v34 = vmul.f32 %v3237_v45, %v1585_v40  ;;  %5511 = vst [vmem:[#allocation21_spill] sm:$0xff] %v4196_v11  ;;  %v5404_v40 = vand.u32 7, %v4159_v37 }
 0x5f9   : > { %v1590_v60 = vsel %vm1589_vm6, %v3237_v45, %v1586_v34  ;;  %v5405_v45 = vmov 0.0   ;;  %v4204_v34 = vperm.slane %v3001_v29, 0  ;;  %vm1845_vm15 = vcmp.lt.s32.totalorder %v5404_v40, 7 }
 0x5fa   : > { %v1598_v62 = vmul.f32 %v1590_v60, %v1502_v59  ;;  %v4180_v49 = vsel %vm4145_vm7, 1.0, %v5405_v45  ;;  %v4183_v52 = vsel %vm1815_vm8, 1.0, %v5405_v45  ;;  %v4186_v5 = vsel %vm1838_vm9, 1.0, %v5405_v45 }
 0x5fb   : > { %5507 = vst [vmem:[#allocation17_spill] sm:$0xff] %v4180_v49  ;;  %v4189_v51 = vsel %vm1839_vm10, 1.0, %v5405_v45  ;;  %v4207_v59 = vsel %vm1816_vm11, 1.0, %v5405_v45  ;;  %v1761_v60 = vand.u32 7, %v4171_v42  ;;  %v4216_v48 = vmul.f32 %v4183_v52, %v4175_v43 }
 0x5fc   : > { %v1609_v4 = vmul.f32 %v4052_v25, %v1598_v62  ;;  %v1633_v25 = vld [vmem:[%s5398_s9] sm:$0x3]  ;;  %5508 = vst [vmem:[#allocation18_spill] sm:$0xff] %v4183_v52  ;;  %v4212_v62 = vmul.f32 %v4189_v51, %v4173_v39  ;;  %v2216_v10 = vmul.f32 %v4186_v5, %v4194_v26  ;;  %v4242_v18 = vmul.f32 %v4189_v51, %v4204_v34 }
 0x5fd   : > { %v4124_v63 = vperm.slane %v1633_v25, 1  ;;  %v4137_v6 = vperm.slane %v1633_v25, 0  ;;  %5509 = vst [vmem:[#allocation19_spill] sm:$0xff] %v4186_v5  ;;  %v2279_v25 = vmul.f32 %v4180_v49, %v4196_v11  ;;  %vm1817_vm1 = vcmp.ge.s32.totalorder %v1761_v60, 1 }
 0x5fe   : > { %v1620_v22 = vadd.f32 %v4061_v2, %v1609_v4  ;;  %v2999_v2 = vld [vmem:[%s5399_s10 + $0x8] sm:$0x3]  ;;  %5513 = vst [vmem:[#allocation23_spill] sm:$0xff] %v4204_v34  ;;  %v4218_v4 = vperm.slane %v3002_v32, 0  ;;  %v4257_v16 = vsel %vm1840_vm13, 1.0, %v5405_v45  ;;  %v4265_v29 = vmul.f32 %v4180_v49, %v4225_v31 }
 0x5ff   : > { %5499 = vst [vmem:[#allocation11_spill] sm:$0xff] %v4124_v63  ;;  %v4126_v56 = vperm.slane %v2999_v2, 1  ;;  %v4139_v17 = vperm.slane %v2999_v2, 0  ;;  %v1959_v2 = vmul.f32 %v4207_v59, %v4198_v30  ;;  %v4269_v32 = vmul.f32 %v4207_v59, %v4227_v8 }
 0x600   : > { %v1624_v3 = vpack.c.bf16 %v1620_v22, %v1619_v57  ;;  %5500 = vst [vmem:[#allocation12_spill] sm:$0xff] %v4137_v6  ;;  %v4220_v57 = vperm.slane %v3006_v54, 1  ;;  %v4281_v54 = vsel %vm1817_vm1, 1.0, %v5405_v45  ;;  %v4292_v40 = vmul.f32 %v4257_v16, %v4173_v39 }
 0x601   : > { %5501 = vst [vmem:[#allocation13_spill] sm:$0xff] %v4139_v17  ;;  %v4311_v36 = vmul.f32 %v4183_v52, %v4196_v11  ;;  %v4319_v13 = vmul.f32 %v4281_v54, %v4198_v30  ;;  %vm1841_vm2 = vcmp.lt.s32.totalorder %v1761_v60, 7 }
 0x602   : > { %2978 = vmatmul.msk.bf16.gmra.mxu2 %vm482_vm0, %v1624_v3  ;;  %2982 = vmatmul.msk.bf16.gmra.mxu0 %vm482_vm0, %v1624_v3  ;;  %5514 = vst [vmem:[#allocation24_spill] sm:$0xff] %v4218_v4  ;;  %v4223_v3 = vperm.slane %v3003_v9, 0  ;;  %v4272_v9 = vsel %vm1845_vm15, 1.0, %v5405_v45  ;;  %v4315_v27 = vmul.f32 %v4186_v5, %v4220_v57 }
 0x603   : > { %5515 = vst [vmem:[#allocation25_spill] sm:$0xff] %v4220_v57 }
 0x604   : > { %5516 = vst [vmem:[#allocation26_spill] sm:$0xff] %v4223_v3  ;;  %v4261_v28 = vmul.f32 %v4186_v5, %v4223_v3 }
 0x605   : > { %5521 = vst [vmem:[#allocation31_spill] sm:$0xff] %v4257_v16 }
 0x606   : > { %5522 = vst [vmem:[#allocation32_spill] sm:$0xff] %v4272_v9 }
 0x607   : > { %5526 = vst [vmem:[#allocation36_spill] sm:$0xff] %v4315_v27 }
 0x62c   : > { %v1729_v20 = vpop.f32.mrf.mxu0 }
 0x62d   : > { %v4202_v61 = vadd.f32 %v1729_v20, %v4124_v63  ;;  %v4254_v20 = vmul.f32 %v4183_v52, %v4218_v4 }
 0x62f   : > { %5512 = vst [vmem:[#allocation22_spill] sm:$0xff] %v4202_v61  ;;  %v1870_v15 = vmul.f32 %v4126_v56, %v4202_v61  ;;  %v4277_v38 = vmul.f32 %v4130_v12, %v4202_v61  ;;  %v5533_v19 = vrot.slane %v4202_v61, 7 }
 0x631   : > { %5523 = vst [vmem:[#allocation33_spill] sm:$0xff] %v4277_v38 }
 0x632   : > { %v1700_v23 = vpop.f32.mrf.mxu2 }
 0x633   : > { %v4247_v55 = vadd.f32 %v1700_v23, %v4137_v6  ;;  %v4284_v23 = vadd.f32 %v4128_v21, %v1870_v15  ;;  %v4302_v15 = vmul.f32 %v4207_v59, %v4175_v43 }
 0x634   : > { %v1731_v22 = vpop.f32.mrf.mxu0 }
 0x635   : > { %5520 = vst [vmem:[#allocation30_spill] sm:$0xff] %v4247_v55  ;;  %v4250_v47 = vadd.f32 %v1731_v22, %v4124_v63  ;;  %v4288_v22 = vmul.f32 %v4133_v24, %v4202_v61  ;;  %v1869_v42 = vmul.f32 %v4139_v17, %v4247_v55  ;;  %v4306_v24 = vmul.f32 %v4189_v51, %v4194_v26 }
 0x636   : > { %5524 = vst [vmem:[#allocation34_spill] sm:$0xff] %v4284_v23  ;;  %v4324_v53 = vmul.f32 %v4143_v7, %v4247_v55  ;;  %v4329_v0 = vmul.f32 %v4162_v1, %v4247_v55 }
 0x637   : > { %5525 = vst [vmem:[#allocation35_spill] sm:$0xff] %v4288_v22  ;;  %v2060_v45 = vrot.slane %v4250_v47, 1  ;;  %v1872_v22 = vmul.f32 %v4126_v56, %v4250_v47  ;;  %v4338_v49 = vadd.f32 %v4141_v44, %v1869_v42  ;;  %v5532_v60 = vrot.slane %v4250_v47, 7 }
 0x638   : > { %5527 = vst [vmem:[#allocation37_spill] sm:$0xff] %v4324_v53  ;;  %v5530_v53 = vrot.slane %v4202_v61, 1 }
 0x639   : > { %5528 = vst [vmem:[#allocation38_spill] sm:$0xff] %v4329_v0  ;;  %v1937_v42 = vsel %vm1923_vm14, %v5533_v19, %v5532_v60  ;;  %v2030_v0 = vmul.f32 %v4130_v12, %v4250_v47  ;;  %v4377_v19 = vmul.f32 %v4183_v52, %v4225_v31  ;;  %v5538_v60 = vmov 0.0  }
 0x63a   : > { %v1702_v46 = vpop.f32.mrf.mxu2  ;;  %5529 = vst [vmem:[#allocation39_spill] sm:$0xff] %v4338_v49  ;;  %v4344_v50 = vsel %vm2073_vm12, %v5530_v53, %v2060_v45  ;;  %v4363_v53 = vmul.f32 %v4207_v59, %v4218_v4  ;;  %v4371_v49 = vmul.f32 %v4114_v35, %v4250_v47  ;;  %v4380_v37 = vsel %vm1841_vm2, 1.0, %v5538_v60 }
 0x63b   : > { %v4334_v38 = vadd.f32 %v1702_v46, %v4137_v6  ;;  %5531 = vst [vmem:[#allocation40_spill] sm:$0xff] %v4344_v50  ;;  %v4351_v46 = vmul.f32 %v4257_v16, %v4204_v34  ;;  %v4383_v9 = vadd.f32 %v4128_v21, %v1872_v22  ;;  %v4395_v27 = vmul.f32 %v4216_v48, %v1937_v42 }
 0x63c   : > { %5534 = vst [vmem:[#allocation41_spill] sm:$0xff] %v4363_v53  ;;  %v4398_v52 = vmul.f32 %v2216_v10, %v4344_v50  ;;  %v1975_v53 = vmul.f32 %v1959_v2, %v1937_v42  ;;  %v5547_v2 = vrot.slane %v4247_v55, 7 }
 0x63d   : > { %5536 = vst [vmem:[#allocation43_spill] sm:$0xff] %v4371_v49  ;;  %v4392_v49 = vmul.f32 %v4186_v5, %v4244_v14  ;;  %v4408_v5 = vmul.f32 %v4380_v37, %v4173_v39 }
 0x63e   : > { %5537 = vst [vmem:[#allocation44_spill] sm:$0xff] %v4377_v19  ;;  %v2059_v19 = vrot.slane %v4334_v38, 1 }
 0x63f   : > { %5539 = vst [vmem:[#allocation45_spill] sm:$0xff] %v4380_v37 }
 0x640   : > { %5540 = vst [vmem:[#allocation46_spill] sm:$0xff] %v4383_v9  ;;  %v4402_v9 = vmul.f32 %v2279_v25, %v1937_v42  ;;  %v5546_v25 = vrot.slane %v4334_v38, 7 }
 0x641   : > { %5542 = vst [vmem:[#allocation48_spill] sm:$0xff] %v4395_v27  ;;  %v4416_v27 = vmul.f32 %v4281_v54, %v4175_v43  ;;  %v5549_v43 = vrot.slane %v4247_v55, 1  ;;  %v5553_v55 = vand.u32 7, %v4295_v41 }
 0x642   : > { %5543 = vst [vmem:[#allocation49_spill] sm:$0xff] %v4398_v52  ;;  %v1936_v42 = vsel %vm1923_vm14, %v5547_v2, %v5546_v25  ;;  %v4451_v2 = vmul.f32 %v4135_v33, %v4334_v38 }
 0x643   : > { %5544 = vst [vmem:[#allocation50_spill] sm:$0xff] %v4402_v9  ;;  %v4440_v39 = vsel %vm2073_vm12, %v5549_v43, %v2059_v19  ;;  %vm4458_vm3 = vcmp.ge.s32.totalorder %v5553_v55, 1  ;;  %v4474_v55 = vmul.f32 %v4380_v37, %v4204_v34 }
 0x644   : > { %5545 = vst [vmem:[#allocation51_spill] sm:$0xff] %v4416_v27  ;;  %v4477_v27 = vmul.f32 %v4254_v20, %v1936_v42  ;;  %v4493_v20 = vsel %vm4458_vm3, 1.0, %v5538_v60 }
 0x645   : > { %5550 = vst [vmem:[#allocation53_spill] sm:$0xff] %v4440_v39 }
 0x646   : > { %5552 = vst [vmem:[#allocation55_spill] sm:$0xff] %v4451_v2  ;;  %v4469_v2 = vmul.f32 %v4242_v18, %v4440_v39 }
 0x647   : > { %5557 = vst [vmem:[#allocation57_spill] sm:$0xff] %v4477_v27 }
 0x648   : > { %5556 = vst [vmem:[#allocation56_spill] sm:$0xff] %v4469_v2 }
 0x64a   : > { %v1734_v23 = vpop.f32.mrf.mxu0 }
 0x64b   : > { %v4347_v1 = vadd.f32 %v1734_v23, %v4124_v63  ;;  %v4367_v23 = vmul.f32 %v4189_v51, %v4223_v3 }
 0x64d   : > { %5535 = vst [vmem:[#allocation42_spill] sm:$0xff] %v4367_v23  ;;  %v1874_v61 = vmul.f32 %v4126_v56, %v4347_v1  ;;  %v4387_v23 = vmul.f32 %v4212_v62, %v4344_v50  ;;  %v1871_v62 = vmul.f32 %v4139_v17, %v4334_v38  ;;  %v2062_v48 = vrot.slane %v4347_v1, 1 }
 0x64e   : > { %v4432_v50 = vmul.f32 %v4189_v51, %v4220_v57 }
 0x64f   : > { %5541 = vst [vmem:[#allocation47_spill] sm:$0xff] %v4387_v23  ;;  %v1896_v22 = vadd.f32 %v4128_v21, %v1874_v61  ;;  %v2220_v61 = vmul.f32 %v4257_v16, %v4194_v26  ;;  %v2029_v26 = vmul.f32 %v4143_v7, %v4334_v38  ;;  %v4447_v25 = vadd.f32 %v4141_v44, %v1871_v62 }
 0x650   : > { %v1705_v23 = vpop.f32.mrf.mxu2  ;;  %5548 = vst [vmem:[#allocation52_spill] sm:$0xff] %v4432_v50  ;;  %v2085_v50 = vsel %vm2073_vm12, %v2060_v45, %v2062_v48  ;;  %v4481_v45 = vmul.f32 %v4261_v28, %v4440_v39  ;;  %v5560_v28 = vrot.slane %v4250_v47, 7  ;;  %v2282_v47 = vmul.f32 %v4207_v59, %v4225_v31 }
 0x651   : > { %v4412_v10 = vadd.f32 %v1705_v23, %v4137_v6  ;;  %v1991_v9 = vadd.f32 %v1975_v53, %v1896_v22  ;;  %v4428_v23 = vmul.f32 %v4207_v59, %v4196_v11  ;;  %v1960_v22 = vmul.f32 %v4281_v54, %v4227_v8  ;;  %5551 = vst [vmem:[#allocation54_spill] sm:$0xff] %v4447_v25 }
 0x652   : > { %v1736_v52 = vpop.f32.mrf.mxu0  ;;  %v1912_v11 = vrot.slane %v4347_v1, 7  ;;  %v1974_v25 = vmul.f32 %v4269_v32, %v1936_v42  ;;  %5558 = vst [vmem:[#allocation58_spill] sm:$0xff] %v4481_v45  ;;  %v4484_v32 = vmul.f32 %v4265_v29, %v1936_v42  ;;  %v2126_v18 = vmul.f32 %v4292_v40, %v2085_v50 }
 0x653   : > { %v1873_v53 = vmul.f32 %v4139_v17, %v4412_v10  ;;  %v4454_v57 = vadd.f32 %v1736_v52, %v4124_v63  ;;  %v2046_v52 = vadd.f32 %v2030_v0, %v1991_v9  ;;  %v2061_v63 = vrot.slane %v4412_v10, 1 }
 0x654   : > { %5559 = vst [vmem:[#allocation59_spill] sm:$0xff] %v4484_v32  ;;  %v1935_v29 = vsel %vm1923_vm14, %v5560_v28, %v1912_v11  ;;  %v4504_v40 = vmul.f32 %v4281_v54, %v4218_v4  ;;  %v1911_v43 = vrot.slane %v4412_v10, 7  ;;  %v2398_v45 = vmul.f32 %v4189_v51, %v4244_v14 }
 0x655   : > { %v1895_v62 = vadd.f32 %v4141_v44, %v1873_v53  ;;  %v1876_v0 = vmul.f32 %v4126_v56, %v4454_v57  ;;  %v2084_v9 = vsel %vm2073_vm12, %v2059_v19, %v2061_v63  ;;  %v2032_v59 = vmul.f32 %v4130_v12, %v4347_v1 }
 0x657   : > { %v1990_v53 = vadd.f32 %v1974_v25, %v1895_v62  ;;  %v2219_v25 = vmul.f32 %v4257_v16, %v4223_v3  ;;  %v2142_v62 = vadd.f32 %v2126_v18, %v2046_v52  ;;  %v1963_v52 = vmul.f32 %v4493_v20, %v4198_v30 }
 0x658   : > { %v1707_v2 = vpop.f32.mrf.mxu2  ;;  %v2181_v18 = vmul.f32 %v4302_v15, %v1935_v29  ;;  %v1898_v27 = vadd.f32 %v4128_v21, %v1876_v0  ;;  %v5562_v15 = vrot.slane %v4334_v38, 7  ;;  %v4543_v16 = vmul.f32 %v4311_v36, %v1935_v29 }
 0x659   : > { %v4500_v42 = vadd.f32 %v1707_v2, %v4137_v6  ;;  %v2045_v28 = vadd.f32 %v2029_v26, %v1990_v53  ;;  %v5561_v2 = vrot.slane %v4454_v57, 1  ;;  %v4527_v26 = vmul.f32 %v4493_v20, %v4227_v8 }
 0x65a   : > { %v1934_v0 = vsel %vm1923_vm14, %v5562_v15, %v1911_v43  ;;  %v2197_v39 = vadd.f32 %v2181_v18, %v2142_v62  ;;  %v4540_v6 = vmul.f32 %v4306_v24, %v2085_v50  ;;  %5564 = vst [vmem:[#allocation61_spill] sm:$0xff] %v4543_v16  ;;  %v5568_v24 = vld [vmem:[#allocation36_spill] sm:$0xff]  ;;  %v2031_v36 = vmul.f32 %v4143_v7, %v4412_v10 }
 0x65b   : > { %v2083_v32 = vsel %vm2073_vm12, %v2062_v48, %v5561_v2  ;;  %v1875_v19 = vmul.f32 %v4139_v17, %v4500_v42  ;;  %v2125_v48 = vmul.f32 %v4351_v46, %v2084_v9  ;;  %v1977_v2 = vmul.f32 %v4319_v13, %v1935_v29 }
 0x65c   : > { %v2236_v17 = vmul.f32 %v2220_v61, %v2083_v32  ;;  %5563 = vst [vmem:[#allocation60_spill] sm:$0xff] %v4540_v6  ;;  %v4547_v46 = vmul.f32 %v4114_v35, %v4347_v1  ;;  %v5566_v15 = vrot.slane %v4500_v42, 1  ;;  %v5567_v61 = vand.u32 7, %v4295_v41  ;;  %v5570_v1 = vld [vmem:[#allocation41_spill] sm:$0xff] }
 0x65d   : > { %v2141_v51 = vadd.f32 %v2125_v48, %v2045_v28  ;;  %v1993_v53 = vadd.f32 %v1977_v2, %v1898_v27  ;;  %v1897_v38 = vadd.f32 %v4141_v44, %v1875_v19  ;;  %v4557_v62 = vmul.f32 %v5568_v24, %v2085_v50 }
 0x65e   : > { %5565 = vst [vmem:[#allocation62_spill] sm:$0xff] %v4547_v46  ;;  %v2082_v13 = vsel %vm2073_vm12, %v2061_v63, %v5566_v15  ;;  %vm1842_vm4 = vcmp.lt.s32.totalorder %v5567_v61, 7  ;;  %v2180_v29 = vmul.f32 %v5570_v1, %v1934_v0  ;;  %v5571_v27 = vrot.slane %v4454_v57, 7  ;;  %v5574_v61 = vld [vmem:[#allocation44_spill] sm:$0xff] }
 0x65f   : > { %5569 = vst [vmem:[#allocation36_spill] sm:$0xff] %v4557_v62  ;;  %v4568_v18 = vmul.f32 %v4135_v33, %v4412_v10  ;;  %v2252_v63 = vadd.f32 %v2236_v17, %v2197_v39  ;;  %v5446_v41 = vrot.slane %v4500_v42, 7  ;;  %v1976_v19 = vmul.f32 %v1960_v22, %v1934_v0  ;;  %v5576_v10 = vld [vmem:[#allocation42_spill] sm:$0xff] }
 0x660   : > { %v1933_v28 = vsel %vm1923_vm14, %v1912_v11, %v5571_v27  ;;  %v2196_v50 = vadd.f32 %v2180_v29, %v2141_v51  ;;  %v2235_v48 = vmul.f32 %v2219_v25, %v2082_v13  ;;  %v4572_v2 = vsel %vm1842_vm4, 1.0, %v5538_v60  ;;  %v5579_v51 = vld [vmem:[#allocation51_spill] sm:$0xff]  ;;  %v3108_v29 = vld [vmem:[%s5401_s12 + $0x78] sm:$0xff] }
 0x661   : > { %5572 = vst [vmem:[#allocation41_spill] sm:$0xff] %v4568_v18  ;;  %v1755_v15 = vadd.s32 40, %v4105_v58  ;;  %v4576_v24 = vmul.f32 %v5574_v61, %v1934_v0  ;;  %v2048_v1 = vadd.f32 %v2032_v59, %v1993_v53  ;;  %v2299_v11 = vmul.f32 %v4428_v23, %v1933_v28  ;;  %v5580_v0 = vld [vmem:[#allocation52_spill] sm:$0xff]  ;;  %2757 = vmatpush.bf16.msra.mxu3 %v3108_v29 }
 0x662   : > { %5573 = vst [vmem:[#allocation63_spill] sm:$0xff] %v4572_v2  ;;  %v1992_v27 = vadd.f32 %v1976_v19, %v1897_v38  ;;  %v4580_v18 = vmul.f32 %v5576_v10, %v2084_v9  ;;  %v4583_v17 = vmul.f32 %v4392_v49, %v2084_v9  ;;  %v4587_v39 = vmul.f32 %v4130_v12, %v4454_v57 }
 0x663   : > { %5575 = vst [vmem:[#allocation44_spill] sm:$0xff] %v4576_v24  ;;  %v2354_v22 = vmul.f32 %v4114_v35, %v4454_v57  ;;  %v2128_v25 = vmul.f32 %v4408_v5, %v2083_v32  ;;  %v2183_v59 = vmul.f32 %v5579_v51, %v1933_v28  ;;  %v2315_v53 = vadd.f32 %v2299_v11, %v2252_v63  ;;  %v5585_v51 = vld [vmem:[#allocation16_spill] sm:$0xff] }
 0x664   : > { %5577 = vst [vmem:[#allocation42_spill] sm:$0xff] %v4580_v18  ;;  %v1932_v23 = vsel %vm1923_vm14, %v1911_v43, %v5446_v41  ;;  %v4598_v49 = vmul.f32 %v5580_v0, %v2083_v32  ;;  %v2251_v9 = vadd.f32 %v2235_v48, %v2196_v50  ;;  %v1763_v38 = vand.u32 7, %v1755_v15 }
 0x665   : > { %5578 = vst [vmem:[#allocation64_spill] sm:$0xff] %v4583_v17  ;;  %v1756_v19 = vadd.s32 48, %v4105_v58  ;;  %v2144_v5 = vadd.f32 %v2128_v25, %v2048_v1  ;;  %v4606_v63 = vmul.f32 %v4143_v7, %v4500_v42  ;;  %v2047_v61 = vadd.f32 %v2031_v36, %v1992_v27  ;;  %v5584_v1 = vld [vmem:[#allocation15_spill] sm:$0xff] }
 0x666   : > { %5581 = vst [vmem:[#allocation51_spill] sm:$0xff] %v4598_v49  ;;  %v2353_v43 = vmul.f32 %v4135_v33, %v4500_v42  ;;  %v2127_v32 = vmul.f32 %v4474_v55, %v2082_v13  ;;  %v2182_v50 = vmul.f32 %v4504_v40, %v1932_v23  ;;  %v2298_v48 = vmul.f32 %v2282_v47, %v1932_v23  ;;  %v5691_v58 = vld [vmem:[#allocation31_spill] sm:$0xff] }
 0x667   : > { %v1979_v15 = vmul.f32 %v1963_v52, %v1933_v28  ;;  %v4612_v11 = vadd.f32 %v2354_v22, %v2315_v53  ;;  %v4614_v10 = vmul.f32 %v2398_v45, %v2082_v13  ;;  %v4618_v25 = vmul.f32 %v4572_v2, %v5584_v1  ;;  %v5586_v52 = vld [vmem:[#allocation20_spill] sm:$0xff]  ;;  %v5587_v45 = vld [vmem:[#allocation21_spill] sm:$0xff] }
 0x668   : > { %v4622_v36 = vmul.f32 %v4493_v20, %v5585_v51  ;;  %v2314_v27 = vadd.f32 %v2298_v48, %v2251_v9  ;;  %vm1819_vm5 = vcmp.ge.s32.totalorder %v1763_v38, 1  ;;  %vm1843_vm6 = vcmp.lt.s32.totalorder %v1763_v38, 7 }
 0x669   : > { %5582 = vst [vmem:[#allocation52_spill] sm:$0xff] %v4612_v11  ;;  %v1764_v55 = vand.u32 7, %v1756_v19  ;;  %v2143_v40 = vadd.f32 %v2127_v32, %v2047_v61  ;;  %v4624_v47 = vadd.f32 %v2183_v59, %v2144_v5  ;;  %v4628_v28 = vmul.f32 %v4380_v37, %v5586_v52  ;;  %v5590_v61 = vld [vmem:[#allocation32_spill] sm:$0xff]  ;;  %v5591_v32 = vld [vmem:[#allocation11_spill] sm:$0xff] }
 0x66a   : > { %5583 = vst [vmem:[#allocation65_spill] sm:$0xff] %v4614_v10  ;;  %v4632_v13 = vmul.f32 %v4281_v54, %v5587_v45  ;;  %v4635_v22 = vmul.f32 %v4527_v26, %v1932_v23  ;;  %v4639_v53 = vmul.f32 %v4572_v2, %v4204_v34  ;;  %v4643_v0 = vmul.f32 %v4493_v20, %v4218_v4 }
 0x66b   : > { %v4647_v59 = vmul.f32 %v4380_v37, %v4223_v3  ;;  %v4651_v9 = vmul.f32 %v4281_v54, %v4225_v31  ;;  %v2988_v38 = vsel %vm1819_vm5, 1.0, %v5538_v60  ;;  %v4655_v26 = vsel %vm1843_vm6, 1.0, %v5538_v60 }
 0x66c   : > { %5588 = vst [vmem:[#allocation66_spill] sm:$0xff] %v4655_v26  ;;  %v4659_v23 = vmul.f32 %v4572_v2, %v5586_v52  ;;  %v4661_v29 = vadd.f32 %v2353_v43, %v2314_v27  ;;  %v4665_v5 = vmul.f32 %v4493_v20, %v5587_v45  ;;  %vm1820_vm7 = vcmp.ge.s32.totalorder %v1764_v55, 1 }
 0x66d   : > { %v2388_v54 = vmul.f32 0.0, %v5590_v61  ;;  %v4671_v41 = vadd.f32 %v2182_v50, %v2143_v40  ;;  %v4675_v10 = vmul.f32 %v4572_v2, %v4223_v3  ;;  %vm1844_vm8 = vcmp.lt.s32.totalorder %v1764_v55, 7  ;;  %v3107_v50 = vld [vmem:[%s5401_s12 + $0x70] sm:$0xff]  ;;  %v5592_v40 = vld [vmem:[#allocation14_spill] sm:$0xff] }
 0x66e   : > { %5589 = vst [vmem:[#allocation67_spill] sm:$0xff] %v4661_v29  ;;  %v1965_v43 = vmul.f32 %v2988_v38, %v4198_v30  ;;  %v4680_v27 = vmul.f32 %v4655_v26, %v5584_v1  ;;  %v4684_v29 = vmul.f32 %v4493_v20, %v4225_v31  ;;  %v4694_v2 = vmul.f32 %v2988_v38, %v5585_v51 }
 0x66f   : > { %v1739_v19 = vpop.f32.mrf.mxu0  ;;  %v4697_v17 = vmul.f32 %v2988_v38, %v4227_v8  ;;  %v4700_v49 = vsel %vm1820_vm7, 1.0, %v5538_v60  ;;  %v4704_v20 = vmul.f32 %v4655_v26, %v4204_v34  ;;  %v4707_v46 = vmul.f32 %v2988_v38, %v4218_v4  ;;  %2758 = vmatpush.bf16.msra.mxu3 %v3107_v50 }
 0x670   : > { %v4669_v48 = vadd.f32 %v1739_v19, %v5591_v32  ;;  %v5593_v19 = vand.u32 7, %v5592_v40  ;;  %5594 = vst [vmem:[#allocation11_spill] sm:$0xff] %v4694_v2  ;;  %v4710_v40 = vsel %vm1844_vm8, 1.0, %v5538_v60  ;;  %v2410_v62 = vmul.f32 %v4244_v14, %v2388_v54 }
 0x671   : > { %5595 = vst [vmem:[#allocation14_spill] sm:$0xff] %v4700_v49  ;;  %v4721_v6 = vmul.f32 %v4700_v49, %v4198_v30  ;;  %v4725_v61 = vmul.f32 %v4655_v26, %v5586_v52  ;;  %v4728_v50 = vmul.f32 %v2988_v38, %v5587_v45  ;;  %v4744_v52 = vmul.f32 %v4700_v49, %v5585_v51  ;;  %v5612_v51 = vld [vmem:[#allocation53_spill] sm:$0xff] }
 0x672   : > { %vm1821_vm9 = vcmp.ge.s32.totalorder %v5593_v19, 1  ;;  %v1878_v55 = vmul.f32 %v4126_v56, %v4669_v48  ;;  %5596 = vst [vmem:[#allocation68_spill] sm:$0xff] %v4704_v20  ;;  %v5599_v19 = vld [vmem:[#allocation25_spill] sm:$0xff]  ;;  %v2066_v16 = vrot.slane %v4669_v48, 1  ;;  %v4748_v45 = vmul.f32 %v4700_v49, %v4227_v8 }
 0x673   : > { %5597 = vst [vmem:[#allocation69_spill] sm:$0xff] %v4707_v46  ;;  %v2411_v11 = vmul.f32 %v5599_v19, %v2388_v54  ;;  %v4716_v18 = vsel %vm1821_vm9, 1.0, %v5538_v60  ;;  %v5604_v54 = vld [vmem:[#allocation12_spill] sm:$0xff] }
 0x674   : > { %5598 = vst [vmem:[#allocation70_spill] sm:$0xff] %v4710_v40  ;;  %v1900_v24 = vadd.f32 %v4128_v21, %v1878_v55  ;;  %v5602_v55 = vld [vmem:[#allocation31_spill] sm:$0xff]  ;;  %v4752_v60 = vmul.f32 %v4716_v18, %v4198_v30 }
 0x675   : > { %5600 = vst [vmem:[#allocation71_spill] sm:$0xff] %v4716_v18  ;;  %v1710_v37 = vpop.f32.mrf.mxu2  ;;  %v4732_v46 = vmul.f32 %v5602_v55, %v5599_v19  ;;  %v5609_v55 = vrot.slane %v4454_v57, 1  ;;  %v5611_v19 = vld [vmem:[#allocation13_spill] sm:$0xff]  ;;  %v4772_v18 = vmul.f32 %v4114_v35, %v4669_v48 }
 0x676   : > { %5601 = vst [vmem:[#allocation72_spill] sm:$0xff] %v4721_v6  ;;  %v1995_v20 = vadd.f32 %v1979_v15, %v1900_v24  ;;  %v4736_v14 = vadd.f32 %v1710_v37, %v5604_v54  ;;  %v4740_v6 = vmul.f32 %v4710_v40, %v5584_v1  ;;  %v5607_v24 = vld [vmem:[#allocation40_spill] sm:$0xff]  ;;  %v2036_v15 = vmul.f32 %v4130_v12, %v4669_v48 }
 0x677   : > { %5603 = vst [vmem:[#allocation73_spill] sm:$0xff] %v4732_v46  ;;  %v1741_v2 = vpop.f32.mrf.mxu0  ;;  %v4755_v37 = vmul.f32 %v2411_v11, %v5607_v24  ;;  %v4763_v46 = vsel %vm2073_vm12, %v5609_v55, %v2066_v16  ;;  %v4768_v1 = vmul.f32 %v2410_v62, %v5612_v51  ;;  %v5615_v55 = vrot.slane %v4669_v48, 7 }
 0x678   : > { %5605 = vst [vmem:[#allocation12_spill] sm:$0xff] %v4748_v45  ;;  %v1877_v8 = vmul.f32 %v5611_v19, %v4736_v14  ;;  %v2065_v11 = vrot.slane %v4736_v14, 1  ;;  %v4776_v24 = vadd.f32 %v1741_v2, %v5591_v32  ;;  %v2050_v51 = vadd.f32 %v4587_v39, %v1995_v20 }
 0x679   : > { %5606 = vst [vmem:[#allocation74_spill] sm:$0xff] %v4752_v60  ;;  %v5616_v60 = vrot.slane %v4454_v57, 7  ;;  %v4792_v45 = vmul.f32 %v4700_v49, %v4218_v4  ;;  %v2130_v2 = vmul.f32 %v4618_v25, %v4763_v46  ;;  %v4800_v57 = vmul.f32 %v4655_v26, %v4223_v3  ;;  %v5621_v4 = vld [vmem:[#allocation17_spill] sm:$0xff] }
 0x67a   : > { %5608 = vst [vmem:[#allocation40_spill] sm:$0xff] %v4755_v37  ;;  %v4780_v37 = vmul.f32 %v4710_v40, %v4204_v34  ;;  %v2238_v34 = vmul.f32 %v4628_v28, %v4763_v46  ;;  %v1915_v39 = vrot.slane %v4736_v14, 7  ;;  %v5619_v20 = vrot.slane %v4500_v42, 1 }
 0x67b   : > { %5610 = vst [vmem:[#allocation75_spill] sm:$0xff] %v4763_v46  ;;  %v1931_v62 = vsel %vm1923_vm14, %v5616_v60, %v5615_v55  ;;  %v4803_v60 = vmul.f32 %v2988_v38, %v4225_v31  ;;  %v1880_v25 = vmul.f32 %v4126_v56, %v4776_v24  ;;  %v2068_v38 = vrot.slane %v4776_v24, 1 }
 0x67c   : > { %5613 = vst [vmem:[#allocation13_spill] sm:$0xff] %v4768_v1  ;;  %v1899_v1 = vadd.f32 %v4141_v44, %v1877_v8  ;;  %v4811_v55 = vsel %vm2073_vm12, %v5619_v20, %v2065_v11  ;;  %v2185_v28 = vmul.f32 %v4622_v36, %v1931_v62  ;;  %v2301_v26 = vmul.f32 %v4632_v13, %v1931_v62 }
 0x67d   : > { %5614 = vst [vmem:[#allocation53_spill] sm:$0xff] %v4780_v37  ;;  %v1981_v3 = vmul.f32 %v1965_v43, %v1931_v62  ;;  %v1712_v31 = vpop.f32.mrf.mxu2  ;;  %v2146_v46 = vadd.f32 %v2130_v2, %v2050_v51  ;;  %v4821_v49 = vmul.f32 0.0, %v5621_v4  ;;  %v2129_v20 = vmul.f32 %v4639_v53, %v4811_v55  ;;  %v5623_v2 = vld [vmem:[#allocation18_spill] sm:$0xff] }
 0x67e   : > { %5617 = vst [vmem:[#allocation76_spill] sm:$0xff] %v4792_v45  ;;  %v1994_v8 = vadd.f32 %v4635_v22, %v1899_v1  ;;  %v1902_v22 = vadd.f32 %v4128_v21, %v1880_v25  ;;  %v2237_v36 = vmul.f32 %v4647_v59, %v4811_v55  ;;  %v4829_v13 = vsel %vm2073_vm12, %v2066_v16, %v2068_v38 }
 0x67f   : > { %5618 = vst [vmem:[#allocation77_spill] sm:$0xff] %v4803_v60  ;;  %v4832_v43 = vadd.f32 %v1712_v31, %v5604_v54  ;;  %v5622_v62 = vrot.slane %v4500_v42, 7  ;;  %v4841_v53 = vmul.f32 %v5623_v2, %v4198_v30  ;;  %v4844_v59 = vmul.f32 0.0, %v4130_v12  ;;  %v1744_v25 = vpop.f32.mrf.mxu0  ;;  %v3106_v42 = vld [vmem:[%s5401_s12 + $0x68] sm:$0xff] }
 0x680   : > { %5620 = vst [vmem:[#allocation78_spill] sm:$0xff] %v4811_v55  ;;  %v2049_v1 = vadd.f32 %v4606_v63, %v1994_v8  ;;  %v2254_v63 = vadd.f32 %v2238_v34, %v4624_v47  ;;  %v1918_v16 = vrot.slane %v4776_v24, 7  ;;  %v5624_v34 = vld [vmem:[#allocation19_spill] sm:$0xff]  ;;  %v1997_v55 = vadd.f32 %v1981_v3, %v1902_v22  ;;  %2759 = vmatpush.bf16.msra.mxu3 %v3106_v42 }
 0x681   : > { %v1930_v51 = vsel %vm1923_vm14, %v5622_v62, %v1915_v39  ;;  %v1879_v31 = vmul.f32 %v5611_v19, %v4832_v43  ;;  %v4850_v47 = vmul.f32 0.0, %v5624_v34  ;;  %v2035_v62 = vmul.f32 %v4143_v7, %v4736_v14 }
 0x682   : > { %v2145_v8 = vadd.f32 %v2129_v20, %v2049_v1  ;;  %v2201_v2 = vadd.f32 %v2185_v28, %v2146_v46  ;;  %v2240_v1 = vmul.f32 %v4659_v23, %v4829_v13  ;;  %v2184_v20 = vmul.f32 %v4643_v0, %v1930_v51 }
 0x683   : > { %v2253_v40 = vadd.f32 %v2237_v36, %v4671_v41  ;;  %v1901_v37 = vadd.f32 %v4141_v44, %v1879_v31  ;;  %v2067_v34 = vrot.slane %v4832_v43, 1  ;;  %v2317_v60 = vadd.f32 %v2301_v26, %v2254_v63 }
 0x684   : > { %v2300_v45 = vmul.f32 %v4651_v9, %v1930_v51  ;;  %v1917_v4 = vrot.slane %v4832_v43, 7  ;;  %v4866_v3 = vadd.f32 %v1744_v25, %v5591_v32  ;;  %v5625_v46 = vrot.slane %v4669_v48, 7 }
 0x685   : > { %v1980_v41 = vmul.f32 %v4697_v17, %v1930_v51  ;;  %v4877_v23 = vsel %vm2073_vm12, %v2065_v11, %v2067_v34  ;;  %v2200_v26 = vadd.f32 %v2184_v20, %v2145_v8  ;;  %v2052_v9 = vadd.f32 %v2036_v15, %v1997_v55 }
 0x686   : > { %v1929_v0 = vsel %vm1923_vm14, %v5625_v46, %v1918_v16  ;;  %v2256_v28 = vadd.f32 %v2240_v1, %v2201_v2  ;;  %v2239_v22 = vmul.f32 %v4675_v10, %v4877_v23  ;;  %v1882_v48 = vmul.f32 %v4126_v56, %v4866_v3  ;;  %v5626_v1 = vld [vmem:[#allocation11_spill] sm:$0xff]  ;;  %v5628_v46 = vld [vmem:[#allocation68_spill] sm:$0xff] }
 0x687   : > { %v2316_v36 = vadd.f32 %v2300_v45, %v2253_v40  ;;  %v2355_v63 = vmul.f32 %v4135_v33, %v4736_v14  ;;  %v1996_v17 = vadd.f32 %v1980_v41, %v1901_v37  ;;  %v4887_v51 = vmul.f32 %v4198_v30, %v4821_v49  ;;  %v1715_v40 = vpop.f32.mrf.mxu2  ;;  %v1746_v25 = vpop.f32.mrf.mxu0 }
 0x688   : > { %v2132_v11 = vmul.f32 %v4680_v27, %v4829_v13  ;;  %v2303_v15 = vmul.f32 %v4665_v5, %v1929_v0  ;;  %v1928_v10 = vsel %vm1923_vm14, %v1915_v39, %v1917_v4  ;;  %v5480_v45 = vrot.slane %v4866_v3, 1 }
 0x689   : > { %v4898_v14 = vadd.f32 %v4772_v18, %v2317_v60  ;;  %v2038_v30 = vmul.f32 %v4130_v12, %v4776_v24  ;;  %v2255_v37 = vadd.f32 %v2239_v22, %v2200_v26  ;;  %v1920_v55 = vrot.slane %v4866_v3, 7  ;;  %v3105_v22 = vld [vmem:[%s5401_s12 + $0x60] sm:$0xff] }
 0x68a   : > { %v2148_v27 = vadd.f32 %v2132_v11, %v2052_v9  ;;  %v2319_v2 = vadd.f32 %v2303_v15, %v2256_v28  ;;  %v2358_v5 = vmul.f32 %v4114_v35, %v4776_v24  ;;  %v1904_v8 = vadd.f32 %v4128_v21, %v1882_v48  ;;  %v3100_v28 = vld [vmem:[%s5401_s12 + $0x38] sm:$0xff]  ;;  %2760 = vmatpush.bf16.msra.mxu3 %v3105_v22 }
 0x68b   : > { %v2051_v39 = vadd.f32 %v2035_v62, %v1996_v17  ;;  %v2302_v31 = vmul.f32 %v4684_v29, %v1928_v10  ;;  %v4911_v18 = vsel %vm2073_vm12, %v2068_v38, %v5480_v45  ;;  %v4914_v60 = vadd.f32 %v1715_v40, %v5604_v54  ;;  %v5627_v62 = vld [vmem:[#allocation72_spill] sm:$0xff]  ;;  %2728 = vmatpush.bf16.msra.mxu1 %v3100_v28 }
 0x68c   : > { %v4916_v42 = vadd.f32 %v2355_v63, %v2316_v36  ;;  %v2187_v20 = vmul.f32 %v5626_v1, %v1929_v0  ;;  %v4921_v24 = vmul.f32 %v4143_v7, %v4832_v43  ;;  %v1983_v29 = vmul.f32 %v5627_v62, %v1929_v0 }
 0x68d   : > { %v2131_v41 = vmul.f32 %v5628_v46, %v4877_v23  ;;  %v2318_v26 = vadd.f32 %v2302_v31, %v2255_v37  ;;  %v2357_v38 = vmul.f32 %v4135_v33, %v4832_v43  ;;  %v1927_v9 = vsel %vm1923_vm14, %v1918_v16, %v1920_v55  ;;  %v5629_v16 = vld [vmem:[#allocation69_spill] sm:$0xff] }
 0x68e   : > { %v1999_v48 = vadd.f32 %v1983_v29, %v1904_v8  ;;  %v2203_v0 = vadd.f32 %v2187_v20, %v2148_v27  ;;  %v2242_v36 = vmul.f32 %v4725_v61, %v4911_v18  ;;  %v4939_v63 = vadd.f32 %v1746_v25, %v5591_v32  ;;  %v3099_v37 = vld [vmem:[%s5401_s12 + $0x30] sm:$0xff]  ;;  %v5631_v29 = vld [vmem:[#allocation12_spill] sm:$0xff] }
 0x68f   : > { %v4941_v17 = vadd.f32 %v2358_v5, %v2319_v2  ;;  %v2147_v11 = vadd.f32 %v2131_v41, %v2051_v39  ;;  %v2186_v15 = vmul.f32 %v5629_v16, %v1928_v10  ;;  %v1881_v40 = vmul.f32 %v5611_v19, %v4914_v60  ;;  %v3104_v5 = vld [vmem:[%s5401_s12 + $0x58] sm:$0xff]  ;;  %2729 = vmatpush.bf16.msra.mxu1 %v3099_v37 }
 0x690   : > { %v4951_v27 = vmul.f32 %v4130_v12, %v4866_v3  ;;  %v4954_v61 = vmul.f32 %v4744_v52, %v1927_v9  ;;  %v2360_v32 = vmul.f32 %v4114_v35, %v4866_v3  ;;  %v5478_v2 = vrot.slane %v4914_v60, 1  ;;  %2761 = vmatpush.bf16.msra.mxu3 %v3104_v5  ;;  %v5639_v5 = vld [vmem:[#allocation16_spill] sm:$0xff] }
 0x691   : > { %v4962_v8 = vadd.f32 %v2357_v38, %v2318_v26  ;;  %v2134_v39 = vmul.f32 %v4740_v6, %v4911_v18  ;;  %v2305_v12 = vmul.f32 %v4728_v50, %v1927_v9  ;;  %v5479_v52 = vrot.slane %v4914_v60, 7  ;;  %v3098_v6 = vld [vmem:[%s5401_s12 + $0x28] sm:$0xff]  ;;  %v5633_v38 = vld [vmem:[#allocation22_spill] sm:$0xff] }
 0x692   : > { %v2054_v31 = vadd.f32 %v2038_v30, %v1999_v48  ;;  %v2258_v25 = vadd.f32 %v2242_v36, %v2203_v0  ;;  %v1922_v1 = vrot.slane %v4939_v63, 7  ;;  %v2072_v20 = vrot.slane %v4939_v63, 1  ;;  %v3103_v48 = vld [vmem:[%s5401_s12 + $0x50] sm:$0xff]  ;;  %v5636_v0 = vld [vmem:[#allocation15_spill] sm:$0xff] }
 0x693   : > { %5630 = vst [vmem:[#allocation19_spill] sm:$0xff] %v4962_v8  ;;  %v1903_v62 = vadd.f32 %v4141_v44, %v1881_v40  ;;  %v1982_v46 = vmul.f32 %v5631_v29, %v1928_v10  ;;  %v4974_v41 = vmul.f32 %v4143_v7, %v4914_v60  ;;  %v2202_v26 = vadd.f32 %v2186_v15, %v2147_v11  ;;  %v5638_v40 = vld [vmem:[#allocation34_spill] sm:$0xff]  ;;  %v5641_v29 = vld [vmem:[#allocation76_spill] sm:$0xff] }
 0x694   : > { %v4985_v50 = vsel %vm2073_vm12, %v2067_v34, %v5478_v2  ;;  %v1884_v10 = vmul.f32 %v4126_v56, %v4939_v63  ;;  %v4991_v30 = vsel %vm1923_vm14, %v1920_v55, %v1922_v1  ;;  %v5634_v28 = vrot.slane %v5633_v38, 7  ;;  %2730 = vmatpush.bf16.msra.mxu1 %v3098_v6  ;;  %2762 = vmatpush.bf16.msra.mxu3 %v3103_v48  ;;  %v5643_v6 = vld [vmem:[#allocation77_spill] sm:$0xff] }
 0x695   : > { %5632 = vst [vmem:[#allocation11_spill] sm:$0xff] %v4985_v50  ;;  %v5008_v56 = vsel %vm1923_vm14, %v1917_v4, %v5479_v52  ;;  %v1971_v34 = vmul.f32 %v4887_v51, %v4991_v30  ;;  %v2106_v36 = vmul.f32 %v5636_v0, %v4850_v47  ;;  %v2150_v11 = vadd.f32 %v2134_v39, %v2054_v31  ;;  %v5640_v39 = vld [vmem:[#allocation17_spill] sm:$0xff]  ;;  %v1717_v31 = vpop.f32.mrf.mxu2 }
 0x696   : > { %v4997_v22 = vsel %vm1923_vm14, %v1922_v1, %v5634_v28  ;;  %v2321_v16 = vadd.f32 %v2305_v12, %v2258_v25  ;;  %v5018_v15 = vmul.f32 %v4135_v33, %v4914_v60  ;;  %v5637_v43 = vrot.slane %v5633_v38, 1  ;;  %v3097_v25 = vld [vmem:[%s5401_s12 + $0x20] sm:$0xff]  ;;  %v5642_v28 = vld [vmem:[#allocation74_spill] sm:$0xff] }
 0x697   : > { %5635 = vst [vmem:[#allocation72_spill] sm:$0xff] %v4997_v22  ;;  %v1973_v55 = vmul.f32 %v4841_v53, %v4997_v22  ;;  %v2241_v51 = vmul.f32 %v4800_v57, %v4985_v50  ;;  %v1987_v53 = vadd.f32 %v1971_v34, %v5638_v40  ;;  %v2026_v37 = vmul.f32 %v4844_v59, %v4939_v63  ;;  %v3102_v59 = vld [vmem:[%s5401_s12 + $0x48] sm:$0xff]  ;;  %v5644_v40 = vld [vmem:[#allocation46_spill] sm:$0xff] }
 0x698   : > { %v5024_v4 = vsel %vm2073_vm12, %v2072_v20, %v5637_v43  ;;  %v2161_v12 = vmul.f32 %v5640_v39, %v5639_v5  ;;  %v1998_v1 = vadd.f32 %v1982_v46, %v1903_v62  ;;  %v5038_v38 = vmul.f32 %v5641_v29, %v5008_v56  ;;  %v5645_v29 = vld [vmem:[#allocation53_spill] sm:$0xff]  ;;  %2731 = vmatpush.bf16.msra.mxu1 %v3097_v25 }
 0x699   : > { %v1906_v57 = vadd.f32 %v4128_v21, %v1884_v10  ;;  %v1985_v34 = vmul.f32 %v5642_v28, %v1927_v9  ;;  %v2304_v43 = vmul.f32 %v5643_v6, %v5008_v56  ;;  %v1989_v2 = vadd.f32 %v1973_v55, %v5644_v40  ;;  %v5646_v10 = vld [vmem:[#allocation20_spill] sm:$0xff]  ;;  %v5647_v9 = vld [vmem:[#allocation70_spill] sm:$0xff]  ;;  %2763 = vmatpush.bf16.msra.mxu3 %v3102_v59 }
 0x69a   : > { %v2042_v52 = vadd.f32 %v2026_v37, %v1987_v53  ;;  %v2122_v62 = vmul.f32 %v2106_v36, %v5024_v4  ;;  %v5049_v46 = vadd.f32 %v2360_v32, %v2321_v16  ;;  %v2133_v21 = vmul.f32 %v5645_v29, %v4985_v50  ;;  %v3096_v36 = vld [vmem:[%s5401_s12 + $0x18] sm:$0xff]  ;;  %v3095_v29 = vld [vmem:[%s5401_s12 + $0x10] sm:$0xff] }
 0x69b   : > { %v2228_v48 = vmul.f32 %v5647_v9, %v5646_v10  ;;  %v5056_v28 = vadd.f32 %v1717_v31, %v5604_v54  ;;  %v2257_v45 = vadd.f32 %v2241_v51, %v2202_v26  ;;  %v5648_v8 = vrot.slane %v4866_v3, 1  ;;  %v5649_v26 = vld [vmem:[#allocation28_spill] sm:$0xff]  ;;  %v5651_v31 = vld [vmem:[#allocation18_spill] sm:$0xff] }
 0x69c   : > { %v2138_v53 = vadd.f32 %v2122_v62, %v2042_v52  ;;  %v2177_v32 = vmul.f32 %v2161_v12, %v4997_v22  ;;  %v2053_v16 = vadd.f32 %v4921_v24, %v1998_v1  ;;  %v2001_v37 = vadd.f32 %v1985_v34, %v1906_v57  ;;  %v5650_v52 = vld [vmem:[#allocation33_spill] sm:$0xff]  ;;  %v5653_v57 = vld [vmem:[#allocation30_spill] sm:$0xff]  ;;  %2732 = vmatpush.bf16.msra.mxu1 %v3096_v36 }
 0x69d   : > { %v5062_v55 = vsel %vm2073_vm12, %v5648_v8, %v2072_v20  ;;  %v1921_v54 = vrot.slane %v5056_v28, 7  ;;  %v1954_v3 = vmul.f32 %v5649_v26, %v4821_v49  ;;  %v3101_v8 = vld [vmem:[%s5401_s12 + $0x40] sm:$0xff]  ;;  %v2044_v20 = vadd.f32 %v5650_v52, %v1989_v2  ;;  %v5661_v36 = vld [vmem:[#allocation54_spill] sm:$0xff] }
 0x69e   : > { %v2193_v51 = vadd.f32 %v2177_v32, %v2138_v53  ;;  %v2205_v12 = vadd.f32 %v4954_v61, %v2150_v11  ;;  %v1956_v25 = vmul.f32 %v5651_v31, %v5649_v26  ;;  %v2244_v24 = vmul.f32 %v2228_v48, %v5062_v55  ;;  %v5655_v11 = vld [vmem:[#allocation32_spill] sm:$0xff]  ;;  %v5656_v53 = vld [vmem:[#allocation49_spill] sm:$0xff]  ;;  %2764 = vmatpush.bf16.msra.mxu3 %v3101_v8  ;;  %v5660_v52 = vld [vmem:[#allocation39_spill] sm:$0xff] }
 0x69f   : > { %v5652_v1 = vrot.slane %v4914_v60, 7  ;;  %v5654_v34 = vrot.slane %v5653_v57, 7  ;;  %v2009_v2 = vmul.f32 0.0, %v4143_v7  ;;  %v2320_v61 = vadd.f32 %v2304_v43, %v2257_v45  ;;  %v5657_v7 = vld [vmem:[#allocation23_spill] sm:$0xff]  ;;  %v5659_v43 = vld [vmem:[#allocation14_spill] sm:$0xff] }
 0x6a0   : > { %v2120_v6 = vmul.f32 %v5655_v11, %v5636_v0  ;;  %v2056_v48 = vadd.f32 %v4951_v27, %v2001_v37  ;;  %v2248_v32 = vadd.f32 %v5656_v53, %v2193_v51  ;;  %v2105_v45 = vmul.f32 %v5657_v7, %v4850_v47  ;;  %v5658_v0 = vld [vmem:[#allocation21_spill] sm:$0xff]  ;;  %v5663_v27 = vld [vmem:[#allocation71_spill] sm:$0xff]  ;;  %2733 = vmatpush.bf16.msra.mxu1 %v3095_v29 }
 0x6a1   : > { %v5084_v49 = vsel %vm1923_vm14, %v5652_v1, %v1921_v54  ;;  %v5090_v59 = vsel %vm1923_vm14, %v1921_v54, %v5654_v34  ;;  %v2071_v54 = vrot.slane %v5056_v28, 1  ;;  %v2025_v1 = vmul.f32 %v2009_v2, %v5056_v28  ;;  %v5662_v34 = vld [vmem:[#allocation47_spill] sm:$0xff] }
 0x6a2   : > { %v1970_v40 = vmul.f32 %v1954_v3, %v5084_v49  ;;  %v1972_v62 = vmul.f32 %v1956_v25, %v5090_v59  ;;  %v2291_v3 = vmul.f32 %v5659_v43, %v5658_v0  ;;  %v2140_v22 = vadd.f32 %v5662_v34, %v2044_v20  ;;  %v5665_v0 = vld [vmem:[#allocation37_spill] sm:$0xff] }
 0x6a3   : > { %v2175_v37 = vmul.f32 %v5663_v27, %v5639_v5  ;;  %v2260_v51 = vadd.f32 %v2244_v24, %v2205_v12  ;;  %v5664_v53 = vrot.slane %v5653_v57, 1  ;;  %v3094_v5 = vld [vmem:[%s5401_s12 + $0x8] sm:$0xff]  ;;  %v2136_v20 = vmul.f32 %v2120_v6, %v5062_v55  ;;  %v5667_v24 = vld [vmem:[#allocation50_spill] sm:$0xff] }
 0x6a4   : > { %v1986_v31 = vadd.f32 %v1970_v40, %v5660_v52  ;;  %v1988_v25 = vadd.f32 %v1972_v62, %v5661_v36  ;;  %v5666_v62 = vld [vmem:[#allocation24_spill] sm:$0xff]  ;;  %v2230_v12 = vmul.f32 %v5655_v11, %v5646_v10  ;;  %v2311_v57 = vadd.f32 %v5667_v24, %v2248_v32  ;;  %2734 = vmatpush.bf16.msra.mxu1 %v3094_v5  ;;  %v5677_v5 = vld [vmem:[#allocation42_spill] sm:$0xff]  ;;  %v5678_v24 = vld [vmem:[#allocation75_spill] sm:$0xff] }
 0x6a5   : > { %v5117_v47 = vsel %vm2073_vm12, %v2071_v54, %v5664_v53  ;;  %v2160_v2 = vmul.f32 %v5640_v39, %v5666_v62  ;;  %v2149_v36 = vadd.f32 %v2133_v21, %v2053_v16  ;;  %v5138_v6 = vadd.f32 %v2136_v20, %v2056_v48  ;;  %v5673_v53 = vld [vmem:[#allocation60_spill] sm:$0xff] }
 0x6a6   : > { %v2041_v8 = vadd.f32 %v2025_v1, %v1986_v31  ;;  %v2043_v50 = vadd.f32 %v5665_v0, %v1988_v25  ;;  %v2121_v40 = vmul.f32 %v2105_v45, %v5117_v47  ;;  %v1883_v0 = vmul.f32 %v5611_v19, %v5056_v28  ;;  %v5668_v31 = vld [vmem:[#allocation56_spill] sm:$0xff] }
 0x6a7   : > { %v2307_v45 = vmul.f32 %v2291_v3, %v4991_v30  ;;  %v2176_v29 = vmul.f32 %v2160_v2, %v5090_v59  ;;  %v5136_v25 = vadd.f32 %v5018_v15, %v2320_v61  ;;  %v1968_v10 = vmul.f32 %v5663_v27, %v5649_v26  ;;  %v5669_v3 = vld [vmem:[#allocation48_spill] sm:$0xff]  ;;  %v5670_v15 = vld [vmem:[#allocation43_spill] sm:$0xff]  ;;  %v5671_v26 = vld [vmem:[#allocation57_spill] sm:$0xff] }
 0x6a8   : > { %v2137_v52 = vadd.f32 %v2121_v40, %v2041_v8  ;;  %v2139_v39 = vadd.f32 %v5668_v31, %v2043_v50  ;;  %v5143_v32 = vmul.f32 %v2175_v37, %v4991_v30  ;;  %v2195_v34 = vadd.f32 %v5669_v3, %v2140_v22  ;;  %v3093_v61 = vld [vmem:[%s5401_s12] sm:$0xff]  ;;  %v5672_v37 = vld [vmem:[#allocation58_spill] sm:$0xff]  ;;  %v5674_v8 = vld [vmem:[#allocation25_spill] sm:$0xff] }
 0x6a9   : > { %v2323_v19 = vadd.f32 %v2307_v45, %v2260_v51  ;;  %v2362_v50 = vmul.f32 %v4114_v35, %v4939_v63  ;;  %v1905_v21 = vadd.f32 %v4141_v44, %v1883_v0  ;;  %v2366_v16 = vadd.f32 %v5670_v15, %v2311_v57  ;;  %v5675_v40 = vld [vmem:[#allocation45_spill] sm:$0xff]  ;;  %v5676_v63 = vld [vmem:[#allocation36_spill] sm:$0xff]  ;;  %2735 = vmatpush.bf16.msra.mxu1 %v3093_v61 }
 0x6aa   : > { %v2192_v1 = vadd.f32 %v2176_v29, %v2137_v52  ;;  %v2194_v48 = vadd.f32 %v5671_v26, %v2139_v39  ;;  %v5155_v30 = vmul.f32 %v2230_v12, %v5024_v4  ;;  %v2250_v22 = vadd.f32 %v5673_v53, %v2195_v34  ;;  %v5679_v57 = vld [vmem:[#allocation73_spill] sm:$0xff]  ;;  %v5680_v12 = vld [vmem:[#allocation59_spill] sm:$0xff]  ;;  %v5683_v34 = vld [vmem:[#allocation52_spill] sm:$0xff] }
 0x6ab   : > { %v2403_v35 = vmul.f32 %v5675_v40, %v5674_v8  ;;  %v1984_v44 = vmul.f32 %v1968_v10, %v5008_v56  ;;  %v5163_v2 = vadd.f32 %v5676_v63, %v2366_v16  ;;  %v2417_v0 = vmul.f32 %v5679_v57, %v5678_v24  ;;  %v5681_v31 = vld [vmem:[#allocation61_spill] sm:$0xff]  ;;  %v5682_v10 = vld [vmem:[#allocation44_spill] sm:$0xff]  ;;  %v5685_v26 = vld [vmem:[#allocation55_spill] sm:$0xff] }
 0x6ac   : > { %v2247_v51 = vadd.f32 %v5672_v37, %v2192_v1  ;;  %v2249_v20 = vadd.f32 %v5677_v5, %v2194_v48  ;;  %v5168_v45 = vadd.f32 %v2362_v50, %v2323_v19  ;;  %v2313_v39 = vadd.f32 %v5681_v31, %v2250_v22  ;;  %v5684_v50 = vld [vmem:[#allocation62_spill] sm:$0xff]  ;;  %v5688_v22 = vld [vmem:[#allocation51_spill] sm:$0xff]  ;;  %v5692_v24 = vld [vmem:[#allocation65_spill] sm:$0xff] }
 0x6ad   : > { %v2419_v29 = vmul.f32 %v2403_v35, %v4829_v13  ;;  %v2000_v1 = vadd.f32 %v1984_v44, %v1905_v21  ;;  %v2461_v56 = vmul.f32 %v5163_v2, %v5163_v2  ;;  %v5177_v15 = vadd.f32 %v2417_v0, %v5683_v34  ;;  %v5689_v44 = vld [vmem:[#allocation64_spill] sm:$0xff] }
 0x6ae   : > { %v2310_v52 = vadd.f32 %v5680_v12, %v2247_v51  ;;  %v2312_v3 = vadd.f32 %v5682_v10, %v2249_v20  ;;  %v2119_v19 = vmul.f32 %v5655_v11, %v5657_v7  ;;  %v2368_v16 = vadd.f32 %v5684_v50, %v2313_v39  ;;  %v5687_v51 = vld [vmem:[#allocation41_spill] sm:$0xff] }
 0x6af   : > { %v5184_v61 = vadd.f32 %v2419_v29, %v4898_v14  ;;  %v5686_v13 = vrot.slane %v4914_v60, 1  ;;  %v2477_v37 = vmul.f32 %v2461_v56, %v5163_v2  ;;  %v2465_v7 = vmul.f32 %v5177_v15, %v5177_v15  ;;  %v5690_v60 = vld [vmem:[#allocation29_spill] sm:$0xff] }
 0x6b0   : > { %v2365_v48 = vadd.f32 %v5685_v26, %v2310_v52  ;;  %v2367_v53 = vadd.f32 %v5687_v51, %v2312_v3  ;;  %v5197_v35 = vadd.f32 %v5688_v22, %v2368_v16  ;;  %v2055_v5 = vadd.f32 %v4974_v41, %v2000_v1  ;;  %v5693_v52 = vld [vmem:[#allocation26_spill] sm:$0xff] }
 0x6b1   : > { %v5190_v21 = vsel %vm2073_vm12, %v5686_v13, %v2071_v54  ;;  %v2467_v14 = vmul.f32 %v5184_v61, %v5184_v61  ;;  %v2400_v54 = vmul.f32 %v5691_v58, %v5690_v60  ;;  %v2493_v20 = vmul.f32 0.044715, %v2477_v37 }
 0x6b2   : > { %v5200_v63 = vadd.f32 %v5689_v44, %v2365_v48  ;;  %v5208_v57 = vadd.f32 %v5692_v24, %v2367_v53  ;;  %v2402_v0 = vmul.f32 %v5675_v40, %v5690_v60  ;;  %v2135_v12 = vmul.f32 %v2119_v19, %v5190_v21  ;;  %v5694_v19 = vld [vmem:[#allocation78_spill] sm:$0xff]  ;;  %v5695_v53 = vld [vmem:[#allocation67_spill] sm:$0xff] }
 0x6b3   : > { %v2227_v31 = vmul.f32 %v5647_v9, %v5693_v52  ;;  %v2463_v39 = vmul.f32 %v5197_v35, %v5197_v35  ;;  %v2174_v41 = vmul.f32 %v5663_v27, %v5666_v62  ;;  %v2509_v1 = vadd.f32 %v2493_v20, %v5163_v2  ;;  %v5696_v20 = vld [vmem:[#allocation27_spill] sm:$0xff] }
 0x6b4   : > { %v2460_v29 = vmul.f32 %v5200_v63, %v5200_v63  ;;  %v2462_v56 = vmul.f32 %v5208_v57, %v5208_v57  ;;  %v2481_v40 = vmul.f32 %v2465_v7, %v5177_v15  ;;  %v2483_v34 = vmul.f32 %v2467_v14, %v5184_v61 }
 0x6b5   : > { %v2479_v10 = vmul.f32 %v2463_v39, %v5197_v35  ;;  %v2416_v50 = vmul.f32 %v2400_v54, %v5694_v19  ;;  %v2204_v16 = vadd.f32 %v5038_v38, %v2149_v36  ;;  %v2525_v26 = vmul.f32 0.7978846, %v2509_v1 }
 0x6b6   : > { %v2476_v3 = vmul.f32 %v2460_v29, %v5200_v63  ;;  %v2478_v62 = vmul.f32 %v2462_v56, %v5208_v57  ;;  %v2418_v48 = vmul.f32 %v2402_v0, %v4877_v23  ;;  %v2243_v13 = vmul.f32 %v2227_v31, %v5190_v21  ;;  %v5697_v56 = vld [vmem:[#allocation63_spill] sm:$0xff] }
 0x6b7   : > { %v2495_v37 = vmul.f32 0.044715, %v2479_v10  ;;  %v5234_v7 = vadd.f32 %v2416_v50, %v5695_v53  ;;  %3238 = vtanh.f32 %v2525_v26  ;;  %v2497_v44 = vmul.f32 0.044715, %v2481_v40 }
 0x6b8   : > { %v2492_v51 = vmul.f32 0.044715, %v2476_v3  ;;  %v2494_v22 = vmul.f32 0.044715, %v2478_v62  ;;  %v5237_v14 = vadd.f32 %v2418_v48, %v4916_v42  ;;  %v5239_v58 = vadd.f32 %v2135_v12, %v2055_v5  ;;  %v5698_v3 = vld [vmem:[#allocation66_spill] sm:$0xff] }
 0x6b9   : > { %v2511_v38 = vadd.f32 %v2495_v37, %v5197_v35  ;;  %v2499_v23 = vmul.f32 0.044715, %v2483_v34  ;;  %v5244_v54 = vmul.f32 %v2174_v41, %v5084_v49  ;;  %v2290_v24 = vmul.f32 %v5659_v43, %v5696_v20 }
 0x6ba   : > { %v2508_v36 = vadd.f32 %v2492_v51, %v5200_v63  ;;  %v2510_v0 = vadd.f32 %v2494_v22, %v5208_v57  ;;  %v2464_v31 = vmul.f32 %v5234_v7, %v5234_v7  ;;  %v2259_v42 = vadd.f32 %v2243_v13, %v2204_v16 }
 0x6bb   : > { %v2527_v39 = vmul.f32 0.7978846, %v2511_v38  ;;  %v2466_v12 = vmul.f32 %v5237_v14, %v5237_v14  ;;  %v2513_v1 = vadd.f32 %v2497_v44, %v5177_v15  ;;  %v2405_v40 = vmul.f32 %v5697_v56, %v5674_v8 }
 0x6bc   : > { %v2524_v5 = vmul.f32 0.7978846, %v2508_v36  ;;  %v2526_v29 = vmul.f32 0.7978846, %v2510_v0  ;;  %v2480_v41 = vmul.f32 %v2464_v31, %v5234_v7  ;;  %v2515_v43 = vadd.f32 %v2499_v23, %v5184_v61 }
 0x6bd   : > { %3240 = vtanh.f32 %v2527_v39  ;;  %v2482_v10 = vmul.f32 %v2466_v12, %v5237_v14  ;;  %v2407_v34 = vmul.f32 %v5698_v3, %v5674_v8  ;;  %v3239_v19 = vpop.eup %3238  ;;  %v2421_v16 = vmul.f32 %v2405_v40, %v4911_v18 }
 0x6be   : > { %3242 = vtanh.f32 %v2524_v5  ;;  %v2496_v50 = vmul.f32 0.044715, %v2480_v41  ;;  %v2404_v26 = vmul.f32 %v5697_v56, %v5690_v60  ;;  %v2406_v13 = vmul.f32 %v5698_v3, %v5690_v60  ;;  %v5700_v56 = vld [vmem:[#allocation19_spill] sm:$0xff] }
 0x6bf   : > { %3244 = vtanh.f32 %v2526_v29  ;;  %v2498_v62 = vmul.f32 0.044715, %v2482_v10  ;;  %v2423_v48 = vmul.f32 %v2407_v34, %v5062_v55  ;;  %v2306_v37 = vmul.f32 %v2290_v24, %v5084_v49  ;;  %v5699_v24 = vld [vmem:[#allocation11_spill] sm:$0xff] }
 0x6c0   : > { %v2557_v51 = vadd.f32 1.0, %v3239_v19  ;;  %v2529_v53 = vmul.f32 0.7978846, %v2513_v1  ;;  %v5269_v22 = vadd.f32 %v2421_v16, %v4941_v17  ;;  %v2229_v18 = vmul.f32 %v5655_v11, %v5693_v52 }
 0x6c1   : > { %v2531_v44 = vmul.f32 0.7978846, %v2515_v43  ;;  %v2514_v38 = vadd.f32 %v2498_v62, %v5237_v14  ;;  %v5275_v36 = vadd.f32 %v2423_v48, %v5049_v46  ;;  %v2322_v55 = vadd.f32 %v2306_v37, %v2259_v42 }
 0x6c2   : > { %v2361_v23 = vmul.f32 %v4135_v33, %v5056_v28  ;;  %v2445_v49 = vmul.f32 0.5, %v5163_v2  ;;  %v2420_v0 = vmul.f32 %v2404_v26, %v5699_v24  ;;  %v2447_v17 = vmul.f32 0.5, %v5197_v35 }
 0x6c3   : > { %v3241_v31 = vpop.eup %3240  ;;  %v2512_v39 = vadd.f32 %v2496_v50, %v5234_v7  ;;  %v2471_v11 = vmul.f32 %v5275_v36, %v5275_v36  ;;  %v2422_v52 = vmul.f32 %v2406_v13, %v5190_v21  ;;  %3246 = vtanh.f32 %v2529_v53 }
 0x6c4   : > { %v3243_v46 = vpop.eup %3242  ;;  %v2559_v5 = vadd.f32 1.0, %v3241_v31  ;;  %v2573_v42 = vmul.f32 %v2557_v51, %v2445_v49  ;;  %v2469_v33 = vmul.f32 %v5269_v22, %v5269_v22  ;;  %v2444_v2 = vmul.f32 0.5, %v5200_v63  ;;  %v5702_v31 = vld [vmem:[#allocation72_spill] sm:$0xff] }
 0x6c5   : > { %v3245_v28 = vpop.eup %3244  ;;  %v2556_v12 = vadd.f32 1.0, %v3243_v46  ;;  %3248 = vtanh.f32 %v2531_v44  ;;  %v2530_v35 = vmul.f32 0.7978846, %v2514_v38  ;;  %v2446_v1 = vmul.f32 0.5, %v5208_v57  ;;  %v5701_v38 = vld [vmem:[#allocation21_spill] sm:$0xff] }
 0x6c6   : > { %v2575_v29 = vmul.f32 %v2559_v5, %v2447_v17  ;;  %v2558_v41 = vadd.f32 1.0, %v3245_v28  ;;  %v5291_v40 = vadd.f32 %v2420_v0, %v5700_v56  ;;  %v2528_v43 = vmul.f32 0.7978846, %v2512_v39 }
 0x6c7   : > { %v2572_v21 = vmul.f32 %v2556_v12, %v2444_v2  ;;  %v2487_v10 = vmul.f32 %v2471_v11, %v5275_v36  ;;  %v5295_v3 = vadd.f32 %v2422_v52, %v5136_v25  ;;  %v2485_v63 = vmul.f32 %v2469_v33, %v5269_v22 }
 0x6c8   : > { %v2589_v34 = vpack.c.bf16 %v2575_v29, %v2573_v42  ;;  %v2574_v19 = vmul.f32 %v2558_v41, %v2446_v1  ;;  %v2207_v50 = vadd.f32 %v5143_v32, %v5138_v6  ;;  %v2245_v57 = vmul.f32 %v2229_v18, %v5117_v47 }
 0x6c9   : > { %3250 = vtanh.f32 %v2530_v35  ;;  %v2468_v16 = vmul.f32 %v5291_v40, %v5291_v40  ;;  %v2470_v26 = vmul.f32 %v5295_v3, %v5295_v3  ;;  %v3247_v62 = vpop.eup %3246  ;;  %v2377_v48 = vadd.f32 %v2361_v23, %v2322_v55  ;;  %v5703_v35 = vld [vmem:[#allocation35_spill] sm:$0xff] }
 0x6ca   : > { %2765 = vmatmul.bf16.vlgmr.msra.gmra.mxu3 %v2589_v34  ;;  %v2588_v25 = vpack.c.bf16 %v2574_v19, %v2572_v21  ;;  %v2449_v13 = vmul.f32 0.5, %v5177_v15  ;;  %v2270_v37 = vmul.f32 0.0, %v5663_v27  ;;  %3252 = vtanh.f32 %v2528_v43  ;;  %v5704_v43 = vld [vmem:[#allocation40_spill] sm:$0xff]  ;;  %v5705_v19 = vld [vmem:[#allocation38_spill] sm:$0xff] }
 0x6cb   : > { %v3249_v51 = vpop.eup %3248  ;;  %v2503_v6 = vmul.f32 0.044715, %v2487_v10  ;;  %v2484_v32 = vmul.f32 %v2468_v16, %v5291_v40  ;;  %v2486_v53 = vmul.f32 %v2470_v26, %v5295_v3  ;;  %v2501_v18 = vmul.f32 0.044715, %v2485_v63 }
 0x6cc   : > { %2736 = vmatmul.bf16.vlgmr.msra.gmra.mxu1 %v2588_v25  ;;  %v2262_v44 = vadd.f32 %v5155_v30, %v2207_v50  ;;  %v2293_v49 = vmul.f32 %v5701_v38, %v2270_v37  ;;  %v2409_v55 = vmul.f32 %v5647_v9, %v5674_v8  ;;  %v2451_v15 = vmul.f32 0.5, %v5184_v61  ;;  %v5706_v25 = vld [vmem:[#allocation13_spill] sm:$0xff] }
 0x6cd   : > { %v2561_v23 = vadd.f32 1.0, %v3247_v62  ;;  %v2450_v27 = vmul.f32 0.5, %v5237_v14  ;;  %v2502_v24 = vmul.f32 0.044715, %v2486_v53  ;;  %v2563_v0 = vadd.f32 1.0, %v3249_v51 }
 0x6ce   : > { %v2309_v17 = vmul.f32 %v2293_v49, %v5702_v31  ;;  %v2425_v39 = vmul.f32 %v2409_v55, %v5024_v4  ;;  %v2206_v11 = vadd.f32 %v5244_v54, %v5239_v58  ;;  %v2519_v52 = vadd.f32 %v2503_v6, %v5275_v36 }
 0x6cf   : > { %v3251_v30 = vpop.eup %3250  ;;  %v2500_v46 = vmul.f32 0.044715, %v2484_v32  ;;  %v2292_v8 = vmul.f32 %v5696_v20, %v2270_v37  ;;  %v2408_v61 = vmul.f32 %v5647_v9, %v5690_v60  ;;  %v2517_v14 = vadd.f32 %v2501_v18, %v5269_v22 }
 0x6d0   : > { %v2325_v5 = vadd.f32 %v2309_v17, %v2262_v44  ;;  %v5325_v42 = vadd.f32 %v2425_v39, %v5168_v45  ;;  %v2261_v33 = vadd.f32 %v2245_v57, %v2206_v11  ;;  %v3253_v4 = vpop.eup %3252  ;;  %v2577_v28 = vmul.f32 %v2561_v23, %v2449_v13 }
 0x6d1   : > { %v2518_v58 = vadd.f32 %v2502_v24, %v5295_v3  ;;  %v2308_v54 = vmul.f32 %v2292_v8, %v5090_v59  ;;  %v2424_v2 = vmul.f32 %v2408_v61, %v5117_v47  ;;  %v2579_v12 = vmul.f32 %v2563_v0, %v2451_v15 }
 0x6d2   : > { %v2562_v20 = vadd.f32 1.0, %v3251_v30  ;;  %v2380_v29 = vadd.f32 %v5703_v35, %v2325_v5  ;;  %v2473_v9 = vmul.f32 %v5325_v42, %v5325_v42  ;;  %v2535_v60 = vmul.f32 0.7978846, %v2519_v52 }
 0x6d3   : > { %v2516_v45 = vadd.f32 %v2500_v46, %v5291_v40  ;;  %v2324_v1 = vadd.f32 %v2308_v54, %v2261_v33  ;;  %v5334_v41 = vadd.f32 %v2424_v2, %v2377_v48  ;;  %v2560_v56 = vadd.f32 1.0, %v3253_v4 }
 0x6d4   : > { %v2533_v21 = vmul.f32 0.7978846, %v2517_v14  ;;  %v2443_v10 = vadd.f32 %v5704_v43, %v2380_v29  ;;  %v2489_v59 = vmul.f32 %v2473_v9, %v5325_v42  ;;  %v2448_v47 = vmul.f32 0.5, %v5234_v7 }
 0x6d5   : > { %v2534_v34 = vmul.f32 0.7978846, %v2518_v58  ;;  %v2379_v63 = vadd.f32 %v5705_v19, %v2324_v1  ;;  %v2472_v50 = vmul.f32 %v5334_v41, %v5334_v41  ;;  %v2591_v57 = vpack.c.bf16 %v2579_v12, %v2577_v28 }
 0x6d6   : > { %v2578_v16 = vmul.f32 %v2562_v20, %v2450_v27  ;;  %v2475_v26 = vmul.f32 %v2443_v10, %v2443_v10  ;;  %v2505_v62 = vmul.f32 0.044715, %v2489_v59  ;;  %3254 = vtanh.f32 %v2535_v60 }
 0x6d7   : > { %v2532_v48 = vmul.f32 0.7978846, %v2516_v45  ;;  %v2442_v13 = vadd.f32 %v5706_v25, %v2379_v63  ;;  %v2488_v37 = vmul.f32 %v2472_v50, %v5334_v41  ;;  %v2576_v51 = vmul.f32 %v2560_v56, %v2448_v47 }
 0x6d8   : > { %3256 = vtanh.f32 %v2533_v21  ;;  %v2491_v6 = vmul.f32 %v2475_v26, %v2443_v10  ;;  %v2521_v7 = vadd.f32 %v2505_v62, %v5325_v42  ;;  %v2455_v8 = vmul.f32 0.5, %v5275_v36 }
 0x6d9   : > { %3258 = vtanh.f32 %v2534_v34  ;;  %v2474_v32 = vmul.f32 %v2442_v13, %v2442_v13  ;;  %v2504_v53 = vmul.f32 0.044715, %v2488_v37  ;;  %v2590_v18 = vpack.c.bf16 %v2578_v16, %v2576_v51  ;;  %v5708_v37 = vld [vmem:[#allocation4_spill] sm:$0xff] }
 0x6da   : > { %2770 = vmatmul.bf16.gmra.mxu3 %v2591_v57  ;;  %v2507_v44 = vmul.f32 0.044715, %v2491_v6  ;;  %v2537_v38 = vmul.f32 0.7978846, %v2521_v7  ;;  %3260 = vtanh.f32 %v2532_v48  ;;  %v2453_v5 = vmul.f32 0.5, %v5269_v22 }
 0x6db   : > { %v2490_v49 = vmul.f32 %v2474_v32, %v2442_v13  ;;  %v2520_v55 = vadd.f32 %v2504_v53, %v5334_v41  ;;  %v2454_v4 = vmul.f32 0.5, %v5295_v3  ;;  %v2452_v20 = vmul.f32 0.5, %v5291_v40 }
 0x6dc   : > { %2741 = vmatmul.bf16.gmra.mxu1 %v2590_v18  ;;  %v2523_v15 = vadd.f32 %v2507_v44, %v2443_v10  ;;  %3262 = vtanh.f32 %v2537_v38  ;;  %v3255_v23 = vpop.eup %3254  ;;  %v2457_v29 = vmul.f32 0.5, %v5325_v42  ;;  %v2459_v9 = vmul.f32 0.5, %v2443_v10  ;;  %v3139_v10 = vld [vmem:[%s5402_s13] ss:$0 sm:$0xff]  ;;  %v5709_v18 = vld [vmem:[#allocation5_spill] sm:$0xff] }
 0x6dd   : > { %v2506_v27 = vmul.f32 0.044715, %v2490_v49  ;;  %v2536_v24 = vmul.f32 0.7978846, %v2520_v55  ;;  %v2567_v11 = vadd.f32 1.0, %v3255_v23  ;;  %v2456_v43 = vmul.f32 0.5, %v5334_v41 }
 0x6de   : > { %v3257_v0 = vpop.eup %3256  ;;  %v2539_v31 = vmul.f32 0.7978846, %v2523_v15  ;;  %v2458_v59 = vmul.f32 0.5, %v2442_v13  ;;  %v5707_v41 = vld [vmem:[#allocation3_spill] sm:$0xff]  ;;  %v5710_v23 = vld [vmem:[#allocation6_spill] sm:$0xff] }
 0x6df   : > { %v3259_v17 = vpop.eup %3258  ;;  %v2522_v39 = vadd.f32 %v2506_v27, %v2442_v13  ;;  %3264 = vtanh.f32 %v2536_v24  ;;  %v2565_v61 = vadd.f32 1.0, %v3257_v0  ;;  %v2583_v33 = vmul.f32 %v2567_v11, %v2455_v8 }
 0x6e0   : > { %3266 = vtanh.f32 %v2539_v31  ;;  %v3261_v30 = vpop.eup %3260  ;;  %v2566_v14 = vadd.f32 1.0, %v3259_v17 }
 0x6e1   : > { %v2538_v52 = vmul.f32 0.7978846, %v2522_v39  ;;  %v2564_v28 = vadd.f32 1.0, %v3261_v30  ;;  %v2581_v12 = vmul.f32 %v2565_v61, %v2453_v5  ;;  %v5711_v39 = vld [vmem:[#allocation7_spill] sm:$0xff]  ;;  %v5712_v61 = vld [vmem:[#allocation8_spill] sm:$0xff] }
 0x6e2   : > { %v3263_v46 = vpop.eup %3262  ;;  %v2582_v35 = vmul.f32 %v2566_v14, %v2454_v4 }
 0x6e3   : > { %3268 = vtanh.f32 %v2538_v52  ;;  %v2569_v54 = vadd.f32 1.0, %v3263_v46  ;;  %v2593_v60 = vpack.c.bf16 %v2583_v33, %v2581_v12  ;;  %v2580_v45 = vmul.f32 %v2564_v28, %v2452_v20 }
 0x6e5   : > { %v3265_v58 = vpop.eup %3264  ;;  %v2585_v22 = vmul.f32 %v2569_v54, %v2457_v29  ;;  %v2592_v3 = vpack.c.bf16 %v2582_v35, %v2580_v45  ;;  %v5714_v29 = vld [vmem:[#allocation10_spill] sm:$0xff] }
 0x6e6   : > { %v3267_v2 = vpop.eup %3266  ;;  %v2568_v1 = vadd.f32 1.0, %v3265_v58  ;;  %v5713_v58 = vld [vmem:[#allocation9_spill] sm:$0xff] }
 0x6e7   : > { %v2571_v36 = vadd.f32 1.0, %v3267_v2 }
 0x6e8   : > { %v2584_v40 = vmul.f32 %v2568_v1, %v2456_v43 }
 0x6e9   : > { %v3269_v56 = vpop.eup %3268  ;;  %v2587_v21 = vmul.f32 %v2571_v36, %v2459_v9 }
 0x6ea   : > { %2775 = vmatmul.bf16.gmra.mxu3 %v2593_v60  ;;  %v2570_v47 = vadd.f32 1.0, %v3269_v56 }
 0x6eb   : > { %v2595_v34 = vpack.c.bf16 %v2587_v21, %v2585_v22 }
 0x6ec   : > { %2746 = vmatmul.bf16.gmra.mxu1 %v2592_v3  ;;  %v2586_v19 = vmul.f32 %v2570_v47, %v2458_v59 }
 0x6ee   : > { %v2594_v42 = vpack.c.bf16 %v2586_v19, %v2584_v40 }
 0x6fa   : > { %2780 = vmatmul.bf16.gmra.mxu3 %v2595_v34 }
 0x6fc   : > { %2751 = vmatmul.bf16.gmra.mxu1 %v2594_v42 }
 0x749   : > { %v2737_v63 = vpop.f32.mrf.mxu1 }
 0x74a   : > { %v2738_v50 = vadd.f32 %v3139_v10, %v2737_v63 }
 0x74d   : > { %v2766_v57 = vpop.f32.mrf.mxu3 }
 0x74e   : > { %v2767_v16 = vadd.f32 %v2766_v57, %v2738_v50 }
 0x750   : > { %v2786_v26 = vadd.f32 %v2767_v16, %v5707_v41 }
 0x751   : > { %v2739_v62 = vpop.f32.mrf.mxu1 }
 0x752   : > { %2794 = vst.msk [vmem:[%s5360_s19] sm:$0xff] %vm482_vm0, %v2786_v26  ;;  %v2740_v48 = vadd.f32 %v3139_v10, %v2739_v62 }
 0x755   : > { %v2768_v25 = vpop.f32.mrf.mxu3 }
 0x756   : > { %v2769_v13 = vadd.f32 %v2768_v25, %v2740_v48 }
 0x758   : > { %v2787_v51 = vadd.f32 %v2769_v13, %v5708_v37 }
 0x759   : > { %v2742_v6 = vpop.f32.mrf.mxu1 }
 0x75a   : > { %2795 = vst.msk [vmem:[%s5360_s19 + $0x8] sm:$0xff] %vm482_vm0, %v2787_v51  ;;  %v2743_v7 = vadd.f32 %v3139_v10, %v2742_v6 }
 0x75d   : > { %v2771_v32 = vpop.f32.mrf.mxu3 }
 0x75e   : > { %v2772_v53 = vadd.f32 %v2771_v32, %v2743_v7 }
 0x760   : > { %v2788_v44 = vadd.f32 %v2772_v53, %v5709_v18 }
 0x761   : > { %v2744_v38 = vpop.f32.mrf.mxu1 }
 0x762   : > { %2796 = vst.msk [vmem:[%s5360_s19 + $0x10] sm:$0xff] %vm482_vm0, %v2788_v44  ;;  %v2745_v49 = vadd.f32 %v3139_v10, %v2744_v38 }
 0x765   : > { %v2773_v55 = vpop.f32.mrf.mxu3 }
 0x766   : > { %v2774_v15 = vadd.f32 %v2773_v55, %v2745_v49 }
 0x768   : > { %v2789_v27 = vadd.f32 %v2774_v15, %v5710_v23 }
 0x769   : > { %v2747_v24 = vpop.f32.mrf.mxu1 }
 0x76a   : > { %2797 = vst.msk [vmem:[%s5360_s19 + $0x18] sm:$0xff] %vm482_vm0, %v2789_v27  ;;  %v2748_v0 = vadd.f32 %v3139_v10, %v2747_v24 }
 0x76d   : > { %v2776_v31 = vpop.f32.mrf.mxu3 }
 0x76e   : > { %v2777_v17 = vadd.f32 %v2776_v31, %v2748_v0 }
 0x770   : > { %v2790_v11 = vadd.f32 %v2777_v17, %v5711_v39 }
 0x771   : > { %v2749_v30 = vpop.f32.mrf.mxu1 }
 0x772   : > { %2798 = vst.msk [vmem:[%s5360_s19 + $0x20] sm:$0xff] %vm482_vm0, %v2790_v11  ;;  %v2750_v52 = vadd.f32 %v3139_v10, %v2749_v30 }
 0x775   : > { %v2778_v46 = vpop.f32.mrf.mxu3 }
 0x776   : > { %v2779_v8 = vadd.f32 %v2778_v46, %v2750_v52 }
 0x778   : > { %v2791_v14 = vadd.f32 %v2779_v8, %v5712_v61 }
 0x779   : > { %v2752_v5 = vpop.f32.mrf.mxu1 }
 0x77a   : > { %2799 = vst.msk [vmem:[%s5360_s19 + $0x28] sm:$0xff] %vm482_vm0, %v2791_v14  ;;  %v2753_v33 = vadd.f32 %v3139_v10, %v2752_v5 }
 0x77d   : > { %v2781_v4 = vpop.f32.mrf.mxu3 }
 0x77e   : > { %v2782_v28 = vadd.f32 %v2781_v4, %v2753_v33 }
 0x780   : > { %v2792_v54 = vadd.f32 %v2782_v28, %v5713_v58 }
 0x781   : > { %v2754_v2 = vpop.f32.mrf.mxu1 }
 0x782   : > { %2800 = vst.msk [vmem:[%s5360_s19 + $0x30] sm:$0xff] %vm482_vm0, %v2792_v54  ;;  %v2755_v12 = vadd.f32 %v3139_v10, %v2754_v2 }
 0x785   : > { %v2783_v20 = vpop.f32.mrf.mxu3 }
 0x786   : > { %v2784_v35 = vadd.f32 %v2783_v20, %v2755_v12 }
 0x788   : > { %v2793_v9 = vadd.f32 %v2784_v35, %v5714_v29 }
 0x78a   : > { %2801 = vst.msk [vmem:[%s5360_s19 + $0x38] sm:$0xff] %vm482_vm0, %v2793_v9 }
 0x78b PF: > { %s24_s29 = sadd.s32 1, %s3284_s29  }
 0x78c   : > { %p21_p4 = scmp.ge.s32.totalorder %s24_s29, 4  }
 0x78e   :  { %23 = sbr.rel (!%p21_p4) target bundleno = 1 (0x1), region = 114 }

</bundles_post_ra>
